<compile_context>
chip_gen: v6e
topology: v6e:2x2x1
jax: 0.10.0
libtpu: 0.0.40
codegen_flags: <defaults>
</compile_context>

<pallas_src>
import jax
import jax.numpy as jnp
from jax import lax
from jax.experimental import pallas as pl
from jax.experimental.pallas import tpu as pltpu


# ----------------------------------------------------------------------------
# The single fused Pallas kernel (one grid step == one batch sample)
# ----------------------------------------------------------------------------

def _fused_st_corr_kernel(
    x_ref,                               # (1, c_in*N, L)
    k1_ref, b1_ref,                      # conv1 (1x1):      (CN, c_in*N), (CN, 1)
    tc0_ref, tc1_ref, tc2_ref, btc_ref,  # time_conv taps:   (CN, c_in*N) x3, (CN, 1)
    g0_ref, g1_ref, g2_ref, bg_ref,      # cheby(+Lap) taps: (2CN, CN) x3, (2CN, 1)
    sml_ref, spl_ref,                    # (L, L) temporal shift matrices (right-mult)
    rmn_ref, rpn_ref,                    # (N, N) node shift matrices (left-mult)
    a1_ref, a2_ref,                      # TATT 1x1 convs:   (N, CN), (C, CN)
    wd10t_ref, wd11t_ref,                # conv_d1 taps^T:   (L, L)
    wd20_ref, wd21_ref,                  # conv_d2 taps:     (C, C)
    wt_ref, bt_ref, vt_ref,              # w^T (C, N), b^T (L, L), v^T (L, L)
    bnsc_ref, bnsh_ref,                  # folded BatchNorm1d (eval):  (L, 1)
    maskt_ref,                           # additive mask^T:  (L, L)
    lnw_ref, lnb_ref,                    # LayerNorm affine: (CN, L)
    out_ref, tcoef_ref,                  # outputs: (1, CN, L), (1, L, L)
):
    mm = lambda a, b: jnp.dot(a, b, preferred_element_type=jnp.float32)
    leaky = lambda t: jnp.where(t >= 0, t, 0.01 * t)
    sigmoid = lambda t: 1.0 / (1.0 + jnp.exp(-t))

    x = x_ref[0]                          # (c_in*N, L)
    sml = sml_ref[...]
    spl = spl_ref[...]

    # ---- x_input = conv1(x)  (1x1 conv with bias) -----------------------------
    x_input = mm(k1_ref[...], x) + b1_ref[...]                       # (CN, L)

    # ---- x_1 = leaky_relu(time_conv(x))   ((1,Kt) conv, padding (0,1)) --------
    xm = mm(x, sml)                       # x[..., t-1] (zero padded)
    xp = mm(x, spl)                       # x[..., t+1] (zero padded)
    x1 = leaky(mm(tc0_ref[...], xm) + mm(tc1_ref[...], x) + mm(tc2_ref[...], xp)
               + btc_ref[...])                                       # (CN, L)

    # ---- Chebyshev GCN (Laplacians folded into taps) + gated fusion -----------
    x1m = mm(x1, sml)
    x1p = mm(x1, spl)
    xg = (mm(g0_ref[...], x1m) + mm(g1_ref[...], x1) + mm(g2_ref[...], x1p)
          + bg_ref[...])                                             # (2*CN, L)
    cn = x1.shape[0]
    x1g = sigmoid(xg[cn:]) * leaky(xg[:cn])                          # (CN, L)

    # ---- TATT_1 (transposed pipeline -> returned T_coef^T falls out directly) -
    h0 = mm(a1_ref[...], x1g)                                        # (N, L) = f1^T
    h = (mm(mm(rmn_ref[...], h0), wd10t_ref[...])
         + mm(mm(rpn_ref[...], h0), wd11t_ref[...]))                 # (N, L) = conv_d1(f1)^T
    f2 = mm(a2_ref[...], x1g)                                        # (C, L)
    f2d = (mm(wd20_ref[...], mm(f2, sml))
           + mm(wd21_ref[...], mm(f2, spl)))                         # (C, L) = conv_d2(f2)
    q1 = mm(wt_ref[...], h)                                          # (C, L) = (f1d @ w)^T
    mt = mm(jnp.transpose(f2d), q1) + bt_ref[...]                    # (L, L) = (f1d@w@f2d + b)^T
    lgt = mm(sigmoid(mt), vt_ref[...])                               # (L, L) = (v @ sigmoid(.))^T
    # TODO(synk): BatchNorm1d folded with running statistics (eval mode), not batch stats.
    zt = lgt * bnsc_ref[...] + bnsh_ref[...] + maskt_ref[...]
    zt = zt - jnp.max(zt, axis=0, keepdims=True)
    e = jnp.exp(zt)
    t_coef = e / jnp.sum(e, axis=0, keepdims=True)                   # softmax(.., -1)^T
    tcoef_ref[0] = t_coef

    # ---- einsum('bcnl,blq->bcnq') + residual + LayerNorm([c_out, N, L]) -------
    y = leaky(mm(x1g, t_coef)) + x_input                             # (CN, L)
    mu = jnp.mean(y, keepdims=True)
    var = jnp.mean((y - mu) ** 2, keepdims=True)
    out_ref[0] = (y - mu) * lax.rsqrt(var + 1e-5) * lnw_ref[...] + lnb_ref[...]


# ----------------------------------------------------------------------------
# Wrapper: fold parameters into matmul-ready constants and call the fused kernel
# ----------------------------------------------------------------------------

def _cheby_polys(adj, K):
    n = adj.shape[0]
    l0 = jnp.eye(n, dtype=jnp.float32)
    l1 = adj.astype(jnp.float32)
    polys = [l0, l1]
    for _ in range(2, K):
        l2 = 2.0 * (adj @ l1) - l0
        l0, l1 = l1, l2
        polys.append(l2)
    return jnp.stack(polys, 0)                                       # (K, N, N)


def spatial_temporal_corr_forward(x, supports, params, K=3, Kt=3):
    B, c_in, N, L = x.shape
    c_out = params['conv1_w'].shape[0]
    assert L == 24, "TATT_1 hard-codes a 24x24 attention mask, so tem_size must be 24."
    assert Kt == 3, "The (1,Kt) convs use padding (0,1); 'same' output requires Kt == 3."

    f32 = jnp.float32
    i_n = jnp.eye(N, dtype=f32)
    i_c = jnp.eye(c_out, dtype=f32)
    cn = c_out * N

    # Temporal shift matrices (right-multiply): (X @ sml)[:, t] = X[:, t-1], zero padded.
    il = jnp.arange(L)
    sml = (il[:, None] == il[None, :] - 1).astype(f32)
    spl = (il[:, None] == il[None, :] + 1).astype(f32)
    # Node shift matrices (left-multiply): (rmn @ H)[n, :] = H[n-1, :], zero padded.
    im = jnp.arange(N)
    rmn = (im[None, :] == im[:, None] - 1).astype(f32)
    rpn = (im[None, :] == im[:, None] + 1).astype(f32)

    # conv1 (1x1) lifted into the (c_out*N, c_in*N) row space.
    k1 = jnp.kron(params['conv1_w'].astype(f32), i_n)
    b1 = jnp.repeat(params['conv1_b'].astype(f32), N)[:, None]

    # time_conv (1,Kt): one lifted weight per tap (t-1, t, t+1).
    wtc = params['time_conv_w'].astype(f32)
    tc_taps = [jnp.kron(wtc[:, :, 0, kt], i_n) for kt in range(Kt)]
    btc = jnp.repeat(params['time_conv_b'].astype(f32), N)[:, None]

    # Chebyshev GCN: fold the stacked Laplacians straight into the gated conv taps.
    lap = _cheby_polys(supports.astype(f32), K)                      # (K, N, N)
    kch = jnp.kron(i_c, lap.reshape(K * N, N))                       # (K*c_out*N, c_out*N)
    wg = params['cheby_w'].astype(f32)
    g_taps = [jnp.kron(wg[:, :, 0, kt], i_n) @ kch for kt in range(Kt)]
    bg = jnp.repeat(params['cheby_b'].astype(f32), N)[:, None]

    # TATT_1 parameters.
    a1 = jnp.kron(params['tatt_conv1_w'].astype(f32).reshape(1, c_out), i_n)   # (N, CN)
    a2 = jnp.kron(i_c, params['tatt_conv2_w'].astype(f32).reshape(1, N))       # (C, CN)
    wd1 = params['tatt_convd1_w'].astype(f32)
    wd2 = params['tatt_convd2_w'].astype(f32)
    wd10t, wd11t = wd1[:, :, 0].T, wd1[:, :, 1].T
    wd20, wd21 = wd2[:, :, 0], wd2[:, :, 1]
    wt = params['tatt_w'].astype(f32).T
    bt = params['tatt_b'].astype(f32).T
    vt = params['tatt_v'].astype(f32).T
    bn_scale = params['tatt_bn_gamma'] / jnp.sqrt(params['tatt_bn_var'] + 1e-5)
    bn_shift = params['tatt_bn_beta'] - params['tatt_bn_mean'] * bn_scale
    bnsc = bn_scale.astype(f32)[:, None]
    bnsh = bn_shift.astype(f32)[:, None]
    maskt = params['tatt_mask'].astype(f32).T

    lnw = params['ln_w'].astype(f32).reshape(cn, L)
    lnb = params['ln_b'].astype(f32).reshape(cn, L)

    x2 = x.astype(f32).reshape(B, c_in * N, L)

    consts = [k1, b1, tc_taps[0], tc_taps[1], tc_taps[2], btc,
              g_taps[0], g_taps[1], g_taps[2], bg,
              sml, spl, rmn, rpn, a1, a2,
              wd10t, wd11t, wd20, wd21, wt, bt, vt,
              bnsc, bnsh, maskt, lnw, lnb]
    const_specs = [pl.BlockSpec(c.shape, lambda b: (0, 0)) for c in consts]

    out2, t_coef = pl.pallas_call(
        _fused_st_corr_kernel,
        out_shape=(jax.ShapeDtypeStruct((B, cn, L), f32),
                   jax.ShapeDtypeStruct((B, L, L), f32)),
        grid=(B,),
        in_specs=[pl.BlockSpec((1, c_in * N, L), lambda b: (b, 0, 0))] + const_specs,
        out_specs=(pl.BlockSpec((1, cn, L), lambda b: (b, 0, 0)),
                   pl.BlockSpec((1, L, L), lambda b: (b, 0, 0))),
        compiler_params=pltpu.CompilerParams(dimension_semantics=("parallel",)),
    )(x2, *consts)

    return out2.reshape(B, c_out, N, L), supports, t_coef


# ----------------------------------------------------------------------------
# Deterministic setup + run
# ----------------------------------------------------------------------------

if __name__ == "__main__":
    B, c_in, c_out, N, L, K, Kt = 2, 4, 8, 16, 24, 3, 3

    key = jax.random.PRNGKey(0)
    keys = jax.random.split(key, 16)

    def u(k, shape, scale=0.1):
        return jax.random.uniform(k, shape, jnp.float32, -scale, scale)

    # 24x24 block-diagonal attention mask from TATT_1.__init__
    A = jnp.zeros((24, 24), jnp.float32)
    A = A.at[:12, :12].set(1.0)
    A = A.at[12:, 12:].set(1.0)
    mask = (-1e13) * (1.0 - A)

    params = {
        'conv1_w': u(keys[0], (c_out, c_in)),
        'conv1_b': u(keys[1], (c_out,)),
        'time_conv_w': u(keys[2], (c_out, c_in, 1, Kt)),
        'time_conv_b': u(keys[3], (c_out,)),
        'cheby_w': u(keys[4], (2 * c_out, K * c_out, 1, Kt)),
        'cheby_b': u(keys[5], (2 * c_out,)),
        'tatt_conv1_w': u(keys[6], (1, c_out)),            # Conv2d(c_out, 1, 1x1), no bias
        'tatt_conv2_w': u(keys[7], (1, N)),                # Conv2d(num_nodes, 1, 1x1), no bias
        'tatt_convd1_w': u(keys[8], (L, L, 2)),            # Conv1d(L, L, k=2, d=2, p=1), no bias
        'tatt_convd2_w': u(keys[9], (c_out, c_out, 2)),    # Conv1d(C, C, k=2, d=2, p=1), no bias
        'tatt_w': u(keys[10], (N, c_out), scale=(6.0 / (N + c_out)) ** 0.5),
        'tatt_b': jnp.zeros((L, L), jnp.float32),
        'tatt_v': u(keys[11], (L, L), scale=(6.0 / (L + L)) ** 0.5),
        'tatt_bn_gamma': jnp.ones((L,), jnp.float32),
        'tatt_bn_beta': jnp.zeros((L,), jnp.float32),
        'tatt_bn_mean': jnp.zeros((L,), jnp.float32),
        'tatt_bn_var': jnp.ones((L,), jnp.float32),
        'tatt_mask': mask,
        'ln_w': jnp.ones((c_out, N, L), jnp.float32),
        'ln_b': jnp.zeros((c_out, N, L), jnp.float32),
    }

    x = jax.random.normal(keys[12], (B, c_in, N, L), jnp.float32)
    adj = jax.random.uniform(keys[13], (N, N), jnp.float32)
    adj = (adj + adj.T) / 2.0
    adj = adj / jnp.sum(adj, axis=1, keepdims=True)   # row-normalized adjacency

    fwd = jax.jit(spatial_temporal_corr_forward, static_argnames=("K", "Kt"))
    out, supports_out, T_coef = fwd(x, adj, params, K=K, Kt=Kt)
    jax.block_until_ready((out, T_coef))

    assert out.shape == (B, c_out, N, L) and T_coef.shape == (B, L, L)
    assert bool(jnp.isfinite(out).all()) and bool(jnp.isfinite(T_coef).all())
    print("KERNEL_OK")
</pallas_src>

<mosaic_0001>
module attributes {stable_mosaic.version = 11 : i64} {
  func.func @_fused_st_corr_kernel(%arg0: i32, %arg1: memref<1x64x24xf32, #tpu.memory_space<vmem>>, %arg2: memref<128x64xf32, #tpu.memory_space<vmem>>, %arg3: memref<128x1xf32, #tpu.memory_space<vmem>>, %arg4: memref<128x64xf32, #tpu.memory_space<vmem>>, %arg5: memref<128x64xf32, #tpu.memory_space<vmem>>, %arg6: memref<128x64xf32, #tpu.memory_space<vmem>>, %arg7: memref<128x1xf32, #tpu.memory_space<vmem>>, %arg8: memref<256x128xf32, #tpu.memory_space<vmem>>, %arg9: memref<256x128xf32, #tpu.memory_space<vmem>>, %arg10: memref<256x128xf32, #tpu.memory_space<vmem>>, %arg11: memref<256x1xf32, #tpu.memory_space<vmem>>, %arg12: memref<24x24xf32, #tpu.memory_space<vmem>>, %arg13: memref<24x24xf32, #tpu.memory_space<vmem>>, %arg14: memref<16x16xf32, #tpu.memory_space<vmem>>, %arg15: memref<16x16xf32, #tpu.memory_space<vmem>>, %arg16: memref<16x128xf32, #tpu.memory_space<vmem>>, %arg17: memref<8x128xf32, #tpu.memory_space<vmem>>, %arg18: memref<24x24xf32, #tpu.memory_space<vmem>>, %arg19: memref<24x24xf32, #tpu.memory_space<vmem>>, %arg20: memref<8x8xf32, #tpu.memory_space<vmem>>, %arg21: memref<8x8xf32, #tpu.memory_space<vmem>>, %arg22: memref<8x16xf32, #tpu.memory_space<vmem>>, %arg23: memref<24x24xf32, #tpu.memory_space<vmem>>, %arg24: memref<24x24xf32, #tpu.memory_space<vmem>>, %arg25: memref<24x1xf32, #tpu.memory_space<vmem>>, %arg26: memref<24x1xf32, #tpu.memory_space<vmem>>, %arg27: memref<24x24xf32, #tpu.memory_space<vmem>>, %arg28: memref<128x24xf32, #tpu.memory_space<vmem>>, %arg29: memref<128x24xf32, #tpu.memory_space<vmem>>, %arg30: memref<1x128x24xf32, #tpu.memory_space<vmem>>, %arg31: memref<1x24x24xf32, #tpu.memory_space<vmem>>) attributes {dimension_semantics = [#tpu.dimension_semantics<parallel>], iteration_bounds = array<i64: 2>, scalar_prefetch = 0 : i64, scratch_operands = 0 : i64, tpu.core_type = #tpu.core_type<tc>, window_params = [{transform_indices = @transform_0, window_bounds = array<i64: 1, 64, 24>}, {pipeline_mode = #tpu.pipeline_mode<synchronous>, transform_indices = @transform_1, window_bounds = array<i64: 128, 64>}, {pipeline_mode = #tpu.pipeline_mode<synchronous>, transform_indices = @transform_2, window_bounds = array<i64: 128, 1>}, {pipeline_mode = #tpu.pipeline_mode<synchronous>, transform_indices = @transform_3, window_bounds = array<i64: 128, 64>}, {pipeline_mode = #tpu.pipeline_mode<synchronous>, transform_indices = @transform_4, window_bounds = array<i64: 128, 64>}, {pipeline_mode = #tpu.pipeline_mode<synchronous>, transform_indices = @transform_5, window_bounds = array<i64: 128, 64>}, {pipeline_mode = #tpu.pipeline_mode<synchronous>, transform_indices = @transform_6, window_bounds = array<i64: 128, 1>}, {pipeline_mode = #tpu.pipeline_mode<synchronous>, transform_indices = @transform_7, window_bounds = array<i64: 256, 128>}, {pipeline_mode = #tpu.pipeline_mode<synchronous>, transform_indices = @transform_8, window_bounds = array<i64: 256, 128>}, {pipeline_mode = #tpu.pipeline_mode<synchronous>, transform_indices = @transform_9, window_bounds = array<i64: 256, 128>}, {pipeline_mode = #tpu.pipeline_mode<synchronous>, transform_indices = @transform_10, window_bounds = array<i64: 256, 1>}, {pipeline_mode = #tpu.pipeline_mode<synchronous>, transform_indices = @transform_11, window_bounds = array<i64: 24, 24>}, {pipeline_mode = #tpu.pipeline_mode<synchronous>, transform_indices = @transform_12, window_bounds = array<i64: 24, 24>}, {pipeline_mode = #tpu.pipeline_mode<synchronous>, transform_indices = @transform_13, window_bounds = array<i64: 16, 16>}, {pipeline_mode = #tpu.pipeline_mode<synchronous>, transform_indices = @transform_14, window_bounds = array<i64: 16, 16>}, {pipeline_mode = #tpu.pipeline_mode<synchronous>, transform_indices = @transform_15, window_bounds = array<i64: 16, 128>}, {pipeline_mode = #tpu.pipeline_mode<synchronous>, transform_indices = @transform_16, window_bounds = array<i64: 8, 128>}, {pipeline_mode = #tpu.pipeline_mode<synchronous>, transform_indices = @transform_17, window_bounds = array<i64: 24, 24>}, {pipeline_mode = #tpu.pipeline_mode<synchronous>, transform_indices = @transform_18, window_bounds = array<i64: 24, 24>}, {pipeline_mode = #tpu.pipeline_mode<synchronous>, transform_indices = @transform_19, window_bounds = array<i64: 8, 8>}, {pipeline_mode = #tpu.pipeline_mode<synchronous>, transform_indices = @transform_20, window_bounds = array<i64: 8, 8>}, {pipeline_mode = #tpu.pipeline_mode<synchronous>, transform_indices = @transform_21, window_bounds = array<i64: 8, 16>}, {pipeline_mode = #tpu.pipeline_mode<synchronous>, transform_indices = @transform_22, window_bounds = array<i64: 24, 24>}, {pipeline_mode = #tpu.pipeline_mode<synchronous>, transform_indices = @transform_23, window_bounds = array<i64: 24, 24>}, {pipeline_mode = #tpu.pipeline_mode<synchronous>, transform_indices = @transform_24, window_bounds = array<i64: 24, 1>}, {pipeline_mode = #tpu.pipeline_mode<synchronous>, transform_indices = @transform_25, window_bounds = array<i64: 24, 1>}, {pipeline_mode = #tpu.pipeline_mode<synchronous>, transform_indices = @transform_26, window_bounds = array<i64: 24, 24>}, {pipeline_mode = #tpu.pipeline_mode<synchronous>, transform_indices = @transform_27, window_bounds = array<i64: 128, 24>}, {pipeline_mode = #tpu.pipeline_mode<synchronous>, transform_indices = @transform_28, window_bounds = array<i64: 128, 24>}, {transform_indices = @transform_29, window_bounds = array<i64: 1, 128, 24>}, {transform_indices = @transform_30, window_bounds = array<i64: 1, 24, 24>}]} {
    %c0 = arith.constant 0 : index
    %c0_0 = arith.constant 0 : index
    %c0_1 = arith.constant 0 : index
    %0 = vector.load %arg1[%c0, %c0_0, %c0_1] : memref<1x64x24xf32, #tpu.memory_space<vmem>>, vector<1x64x24xf32>
    %1 = vector.shape_cast %0 : vector<1x64x24xf32> to vector<64x24xf32>
    %c0_2 = arith.constant 0 : index
    %c0_3 = arith.constant 0 : index
    %2 = vector.load %arg12[%c0_2, %c0_3] : memref<24x24xf32, #tpu.memory_space<vmem>>, vector<24x24xf32>
    %c0_4 = arith.constant 0 : index
    %c0_5 = arith.constant 0 : index
    %3 = vector.load %arg13[%c0_4, %c0_5] : memref<24x24xf32, #tpu.memory_space<vmem>>, vector<24x24xf32>
    %c0_6 = arith.constant 0 : index
    %c0_7 = arith.constant 0 : index
    %4 = vector.load %arg2[%c0_6, %c0_7] : memref<128x64xf32, #tpu.memory_space<vmem>>, vector<128x64xf32>
    %cst = arith.constant dense<0.000000e+00> : vector<128x24xf32>
    %5 = tpu.matmul %4, %1, %cst {dimension_numbers = #tpu.dot_dimension_numbers<[1], [0], [0], [1], [0, 0, 1, 1], [], []>} : vector<128x64xf32>, vector<64x24xf32>, vector<128x24xf32> -> vector<128x24xf32>
    %c0_8 = arith.constant 0 : index
    %c0_9 = arith.constant 0 : index
    %6 = vector.load %arg3[%c0_8, %c0_9] : memref<128x1xf32, #tpu.memory_space<vmem>>, vector<128x1xf32>
    %7 = vector.broadcast %6 : vector<128x1xf32> to vector<128x24xf32>
    %8 = arith.addf %5, %7 : vector<128x24xf32>
    %cst_10 = arith.constant dense<0.000000e+00> : vector<64x24xf32>
    %9 = tpu.matmul %1, %2, %cst_10 {dimension_numbers = #tpu.dot_dimension_numbers<[1], [0], [0], [1], [0, 0, 1, 1], [], []>} : vector<64x24xf32>, vector<24x24xf32>, vector<64x24xf32> -> vector<64x24xf32>
    %cst_11 = arith.constant dense<0.000000e+00> : vector<64x24xf32>
    %10 = tpu.matmul %1, %3, %cst_11 {dimension_numbers = #tpu.dot_dimension_numbers<[1], [0], [0], [1], [0, 0, 1, 1], [], []>} : vector<64x24xf32>, vector<24x24xf32>, vector<64x24xf32> -> vector<64x24xf32>
    %c0_12 = arith.constant 0 : index
    %c0_13 = arith.constant 0 : index
    %11 = vector.load %arg4[%c0_12, %c0_13] : memref<128x64xf32, #tpu.memory_space<vmem>>, vector<128x64xf32>
    %cst_14 = arith.constant dense<0.000000e+00> : vector<128x24xf32>
    %12 = tpu.matmul %11, %9, %cst_14 {dimension_numbers = #tpu.dot_dimension_numbers<[1], [0], [0], [1], [0, 0, 1, 1], [], []>} : vector<128x64xf32>, vector<64x24xf32>, vector<128x24xf32> -> vector<128x24xf32>
    %c0_15 = arith.constant 0 : index
    %c0_16 = arith.constant 0 : index
    %13 = vector.load %arg5[%c0_15, %c0_16] : memref<128x64xf32, #tpu.memory_space<vmem>>, vector<128x64xf32>
    %cst_17 = arith.constant dense<0.000000e+00> : vector<128x24xf32>
    %14 = tpu.matmul %13, %1, %cst_17 {dimension_numbers = #tpu.dot_dimension_numbers<[1], [0], [0], [1], [0, 0, 1, 1], [], []>} : vector<128x64xf32>, vector<64x24xf32>, vector<128x24xf32> -> vector<128x24xf32>
    %15 = arith.addf %12, %14 : vector<128x24xf32>
    %c0_18 = arith.constant 0 : index
    %c0_19 = arith.constant 0 : index
    %16 = vector.load %arg6[%c0_18, %c0_19] : memref<128x64xf32, #tpu.memory_space<vmem>>, vector<128x64xf32>
    %cst_20 = arith.constant dense<0.000000e+00> : vector<128x24xf32>
    %17 = tpu.matmul %16, %10, %cst_20 {dimension_numbers = #tpu.dot_dimension_numbers<[1], [0], [0], [1], [0, 0, 1, 1], [], []>} : vector<128x64xf32>, vector<64x24xf32>, vector<128x24xf32> -> vector<128x24xf32>
    %18 = arith.addf %15, %17 : vector<128x24xf32>
    %c0_21 = arith.constant 0 : index
    %c0_22 = arith.constant 0 : index
    %19 = vector.load %arg7[%c0_21, %c0_22] : memref<128x1xf32, #tpu.memory_space<vmem>>, vector<128x1xf32>
    %20 = vector.broadcast %19 : vector<128x1xf32> to vector<128x24xf32>
    %21 = arith.addf %18, %20 : vector<128x24xf32>
    %cst_23 = arith.constant 0.000000e+00 : f32
    %22 = vector.broadcast %cst_23 : f32 to vector<128x24xf32>
    %23 = arith.cmpf oge, %21, %22 : vector<128x24xf32>
    %cst_24 = arith.constant 0.00999999977 : f32
    %24 = vector.broadcast %cst_24 : f32 to vector<128x24xf32>
    %25 = arith.mulf %24, %21 : vector<128x24xf32>
    %26 = arith.select %23, %21, %25 : vector<128x24xi1>, vector<128x24xf32>
    %cst_25 = arith.constant dense<0.000000e+00> : vector<128x24xf32>
    %27 = tpu.matmul %26, %2, %cst_25 {dimension_numbers = #tpu.dot_dimension_numbers<[1], [0], [0], [1], [0, 0, 1, 1], [], []>} : vector<128x24xf32>, vector<24x24xf32>, vector<128x24xf32> -> vector<128x24xf32>
    %cst_26 = arith.constant dense<0.000000e+00> : vector<128x24xf32>
    %28 = tpu.matmul %26, %3, %cst_26 {dimension_numbers = #tpu.dot_dimension_numbers<[1], [0], [0], [1], [0, 0, 1, 1], [], []>} : vector<128x24xf32>, vector<24x24xf32>, vector<128x24xf32> -> vector<128x24xf32>
    %c0_27 = arith.constant 0 : index
    %c0_28 = arith.constant 0 : index
    %29 = vector.load %arg8[%c0_27, %c0_28] : memref<256x128xf32, #tpu.memory_space<vmem>>, vector<256x128xf32>
    %cst_29 = arith.constant dense<0.000000e+00> : vector<256x24xf32>
    %30 = tpu.matmul %29, %27, %cst_29 {dimension_numbers = #tpu.dot_dimension_numbers<[1], [0], [0], [1], [0, 0, 1, 1], [], []>} : vector<256x128xf32>, vector<128x24xf32>, vector<256x24xf32> -> vector<256x24xf32>
    %c0_30 = arith.constant 0 : index
    %c0_31 = arith.constant 0 : index
    %31 = vector.load %arg9[%c0_30, %c0_31] : memref<256x128xf32, #tpu.memory_space<vmem>>, vector<256x128xf32>
    %cst_32 = arith.constant dense<0.000000e+00> : vector<256x24xf32>
    %32 = tpu.matmul %31, %26, %cst_32 {dimension_numbers = #tpu.dot_dimension_numbers<[1], [0], [0], [1], [0, 0, 1, 1], [], []>} : vector<256x128xf32>, vector<128x24xf32>, vector<256x24xf32> -> vector<256x24xf32>
    %33 = arith.addf %30, %32 : vector<256x24xf32>
    %c0_33 = arith.constant 0 : index
    %c0_34 = arith.constant 0 : index
    %34 = vector.load %arg10[%c0_33, %c0_34] : memref<256x128xf32, #tpu.memory_space<vmem>>, vector<256x128xf32>
    %cst_35 = arith.constant dense<0.000000e+00> : vector<256x24xf32>
    %35 = tpu.matmul %34, %28, %cst_35 {dimension_numbers = #tpu.dot_dimension_numbers<[1], [0], [0], [1], [0, 0, 1, 1], [], []>} : vector<256x128xf32>, vector<128x24xf32>, vector<256x24xf32> -> vector<256x24xf32>
    %36 = arith.addf %33, %35 : vector<256x24xf32>
    %c0_36 = arith.constant 0 : index
    %c0_37 = arith.constant 0 : index
    %37 = vector.load %arg11[%c0_36, %c0_37] : memref<256x1xf32, #tpu.memory_space<vmem>>, vector<256x1xf32>
    %38 = vector.broadcast %37 : vector<256x1xf32> to vector<256x24xf32>
    %39 = arith.addf %36, %38 : vector<256x24xf32>
    %40 = vector.extract_strided_slice %39 {offsets = [128, 0], sizes = [128, 24], strides = [1, 1]} : vector<256x24xf32> to vector<128x24xf32>
    %cst_38 = arith.constant 0.000000e+00 : f32
    %41 = vector.broadcast %cst_38 : f32 to vector<128x24xf32>
    %42 = arith.subf %41, %40 : vector<128x24xf32>
    %43 = math.exp %42 : vector<128x24xf32>
    %cst_39 = arith.constant 1.000000e+00 : f32
    %44 = vector.broadcast %cst_39 : f32 to vector<128x24xf32>
    %45 = arith.addf %44, %43 : vector<128x24xf32>
    %cst_40 = arith.constant 1.000000e+00 : f32
    %46 = vector.broadcast %cst_40 : f32 to vector<128x24xf32>
    %47 = arith.divf %46, %45 : vector<128x24xf32>
    %48 = vector.extract_strided_slice %39 {offsets = [0, 0], sizes = [128, 24], strides = [1, 1]} : vector<256x24xf32> to vector<128x24xf32>
    %cst_41 = arith.constant 0.000000e+00 : f32
    %49 = vector.broadcast %cst_41 : f32 to vector<128x24xf32>
    %50 = arith.cmpf oge, %48, %49 : vector<128x24xf32>
    %cst_42 = arith.constant 0.00999999977 : f32
    %51 = vector.broadcast %cst_42 : f32 to vector<128x24xf32>
    %52 = arith.mulf %51, %48 : vector<128x24xf32>
    %53 = arith.select %50, %48, %52 : vector<128x24xi1>, vector<128x24xf32>
    %54 = arith.mulf %47, %53 : vector<128x24xf32>
    %c0_43 = arith.constant 0 : index
    %c0_44 = arith.constant 0 : index
    %55 = vector.load %arg16[%c0_43, %c0_44] : memref<16x128xf32, #tpu.memory_space<vmem>>, vector<16x128xf32>
    %cst_45 = arith.constant dense<0.000000e+00> : vector<16x24xf32>
    %56 = tpu.matmul %55, %54, %cst_45 {dimension_numbers = #tpu.dot_dimension_numbers<[1], [0], [0], [1], [0, 0, 1, 1], [], []>} : vector<16x128xf32>, vector<128x24xf32>, vector<16x24xf32> -> vector<16x24xf32>
    %c0_46 = arith.constant 0 : index
    %c0_47 = arith.constant 0 : index
    %57 = vector.load %arg14[%c0_46, %c0_47] : memref<16x16xf32, #tpu.memory_space<vmem>>, vector<16x16xf32>
    %cst_48 = arith.constant dense<0.000000e+00> : vector<16x24xf32>
    %58 = tpu.matmul %57, %56, %cst_48 {dimension_numbers = #tpu.dot_dimension_numbers<[1], [0], [0], [1], [0, 0, 1, 1], [], []>} : vector<16x16xf32>, vector<16x24xf32>, vector<16x24xf32> -> vector<16x24xf32>
    %c0_49 = arith.constant 0 : index
    %c0_50 = arith.constant 0 : index
    %59 = vector.load %arg18[%c0_49, %c0_50] : memref<24x24xf32, #tpu.memory_space<vmem>>, vector<24x24xf32>
    %cst_51 = arith.constant dense<0.000000e+00> : vector<16x24xf32>
    %60 = tpu.matmul %58, %59, %cst_51 {dimension_numbers = #tpu.dot_dimension_numbers<[1], [0], [0], [1], [0, 0, 1, 1], [], []>} : vector<16x24xf32>, vector<24x24xf32>, vector<16x24xf32> -> vector<16x24xf32>
    %c0_52 = arith.constant 0 : index
    %c0_53 = arith.constant 0 : index
    %61 = vector.load %arg15[%c0_52, %c0_53] : memref<16x16xf32, #tpu.memory_space<vmem>>, vector<16x16xf32>
    %cst_54 = arith.constant dense<0.000000e+00> : vector<16x24xf32>
    %62 = tpu.matmul %61, %56, %cst_54 {dimension_numbers = #tpu.dot_dimension_numbers<[1], [0], [0], [1], [0, 0, 1, 1], [], []>} : vector<16x16xf32>, vector<16x24xf32>, vector<16x24xf32> -> vector<16x24xf32>
    %c0_55 = arith.constant 0 : index
    %c0_56 = arith.constant 0 : index
    %63 = vector.load %arg19[%c0_55, %c0_56] : memref<24x24xf32, #tpu.memory_space<vmem>>, vector<24x24xf32>
    %cst_57 = arith.constant dense<0.000000e+00> : vector<16x24xf32>
    %64 = tpu.matmul %62, %63, %cst_57 {dimension_numbers = #tpu.dot_dimension_numbers<[1], [0], [0], [1], [0, 0, 1, 1], [], []>} : vector<16x24xf32>, vector<24x24xf32>, vector<16x24xf32> -> vector<16x24xf32>
    %65 = arith.addf %60, %64 : vector<16x24xf32>
    %c0_58 = arith.constant 0 : index
    %c0_59 = arith.constant 0 : index
    %66 = vector.load %arg17[%c0_58, %c0_59] : memref<8x128xf32, #tpu.memory_space<vmem>>, vector<8x128xf32>
    %cst_60 = arith.constant dense<0.000000e+00> : vector<8x24xf32>
    %67 = tpu.matmul %66, %54, %cst_60 {dimension_numbers = #tpu.dot_dimension_numbers<[1], [0], [0], [1], [0, 0, 1, 1], [], []>} : vector<8x128xf32>, vector<128x24xf32>, vector<8x24xf32> -> vector<8x24xf32>
    %c0_61 = arith.constant 0 : index
    %c0_62 = arith.constant 0 : index
    %68 = vector.load %arg20[%c0_61, %c0_62] : memref<8x8xf32, #tpu.memory_space<vmem>>, vector<8x8xf32>
    %cst_63 = arith.constant dense<0.000000e+00> : vector<8x24xf32>
    %69 = tpu.matmul %67, %2, %cst_63 {dimension_numbers = #tpu.dot_dimension_numbers<[1], [0], [0], [1], [0, 0, 1, 1], [], []>} : vector<8x24xf32>, vector<24x24xf32>, vector<8x24xf32> -> vector<8x24xf32>
    %cst_64 = arith.constant dense<0.000000e+00> : vector<8x24xf32>
    %70 = tpu.matmul %68, %69, %cst_64 {dimension_numbers = #tpu.dot_dimension_numbers<[1], [0], [0], [1], [0, 0, 1, 1], [], []>} : vector<8x8xf32>, vector<8x24xf32>, vector<8x24xf32> -> vector<8x24xf32>
    %c0_65 = arith.constant 0 : index
    %c0_66 = arith.constant 0 : index
    %71 = vector.load %arg21[%c0_65, %c0_66] : memref<8x8xf32, #tpu.memory_space<vmem>>, vector<8x8xf32>
    %cst_67 = arith.constant dense<0.000000e+00> : vector<8x24xf32>
    %72 = tpu.matmul %67, %3, %cst_67 {dimension_numbers = #tpu.dot_dimension_numbers<[1], [0], [0], [1], [0, 0, 1, 1], [], []>} : vector<8x24xf32>, vector<24x24xf32>, vector<8x24xf32> -> vector<8x24xf32>
    %cst_68 = arith.constant dense<0.000000e+00> : vector<8x24xf32>
    %73 = tpu.matmul %71, %72, %cst_68 {dimension_numbers = #tpu.dot_dimension_numbers<[1], [0], [0], [1], [0, 0, 1, 1], [], []>} : vector<8x8xf32>, vector<8x24xf32>, vector<8x24xf32> -> vector<8x24xf32>
    %74 = arith.addf %70, %73 : vector<8x24xf32>
    %c0_69 = arith.constant 0 : index
    %c0_70 = arith.constant 0 : index
    %75 = vector.load %arg22[%c0_69, %c0_70] : memref<8x16xf32, #tpu.memory_space<vmem>>, vector<8x16xf32>
    %cst_71 = arith.constant dense<0.000000e+00> : vector<8x24xf32>
    %76 = tpu.matmul %75, %65, %cst_71 {dimension_numbers = #tpu.dot_dimension_numbers<[1], [0], [0], [1], [0, 0, 1, 1], [], []>} : vector<8x16xf32>, vector<16x24xf32>, vector<8x24xf32> -> vector<8x24xf32>
    %77 = tpu.transpose %74, [1, 0] : vector<8x24xf32> -> vector<24x8xf32>
    %cst_72 = arith.constant dense<0.000000e+00> : vector<24x24xf32>
    %78 = tpu.matmul %77, %76, %cst_72 {dimension_numbers = #tpu.dot_dimension_numbers<[1], [0], [0], [1], [0, 0, 1, 1], [], []>} : vector<24x8xf32>, vector<8x24xf32>, vector<24x24xf32> -> vector<24x24xf32>
    %c0_73 = arith.constant 0 : index
    %c0_74 = arith.constant 0 : index
    %79 = vector.load %arg23[%c0_73, %c0_74] : memref<24x24xf32, #tpu.memory_space<vmem>>, vector<24x24xf32>
    %80 = arith.addf %78, %79 : vector<24x24xf32>
    %cst_75 = arith.constant 0.000000e+00 : f32
    %81 = vector.broadcast %cst_75 : f32 to vector<24x24xf32>
    %82 = arith.subf %81, %80 : vector<24x24xf32>
    %83 = math.exp %82 : vector<24x24xf32>
    %cst_76 = arith.constant 1.000000e+00 : f32
    %84 = vector.broadcast %cst_76 : f32 to vector<24x24xf32>
    %85 = arith.addf %84, %83 : vector<24x24xf32>
    %cst_77 = arith.constant 1.000000e+00 : f32
    %86 = vector.broadcast %cst_77 : f32 to vector<24x24xf32>
    %87 = arith.divf %86, %85 : vector<24x24xf32>
    %c0_78 = arith.constant 0 : index
    %c0_79 = arith.constant 0 : index
    %88 = vector.load %arg24[%c0_78, %c0_79] : memref<24x24xf32, #tpu.memory_space<vmem>>, vector<24x24xf32>
    %cst_80 = arith.constant dense<0.000000e+00> : vector<24x24xf32>
    %89 = tpu.matmul %87, %88, %cst_80 {dimension_numbers = #tpu.dot_dimension_numbers<[1], [0], [0], [1], [0, 0, 1, 1], [], []>} : vector<24x24xf32>, vector<24x24xf32>, vector<24x24xf32> -> vector<24x24xf32>
    %c0_81 = arith.constant 0 : index
    %c0_82 = arith.constant 0 : index
    %90 = vector.load %arg25[%c0_81, %c0_82] : memref<24x1xf32, #tpu.memory_space<vmem>>, vector<24x1xf32>
    %91 = vector.broadcast %90 : vector<24x1xf32> to vector<24x24xf32>
    %92 = arith.mulf %89, %91 : vector<24x24xf32>
    %c0_83 = arith.constant 0 : index
    %c0_84 = arith.constant 0 : index
    %93 = vector.load %arg26[%c0_83, %c0_84] : memref<24x1xf32, #tpu.memory_space<vmem>>, vector<24x1xf32>
    %94 = vector.broadcast %93 : vector<24x1xf32> to vector<24x24xf32>
    %95 = arith.addf %92, %94 : vector<24x24xf32>
    %c0_85 = arith.constant 0 : index
    %c0_86 = arith.constant 0 : index
    %96 = vector.load %arg27[%c0_85, %c0_86] : memref<24x24xf32, #tpu.memory_space<vmem>>, vector<24x24xf32>
    %97 = arith.addf %95, %96 : vector<24x24xf32>
    %cst_87 = arith.constant dense<0xFF800000> : vector<24xf32>
    %98 = vector.multi_reduction <maximumf>, %97, %cst_87 [0] : vector<24x24xf32> to vector<24xf32>
    %99 = vector.shape_cast %98 : vector<24xf32> to vector<1x24xf32>
    %100 = vector.broadcast %99 : vector<1x24xf32> to vector<24x24xf32>
    %101 = arith.subf %97, %100 : vector<24x24xf32>
    %102 = math.exp %101 : vector<24x24xf32>
    %cst_88 = arith.constant dense<0.000000e+00> : vector<24xf32>
    %103 = vector.multi_reduction <add>, %102, %cst_88 [0] : vector<24x24xf32> to vector<24xf32>
    %104 = vector.shape_cast %103 : vector<24xf32> to vector<1x24xf32>
    %105 = vector.broadcast %104 : vector<1x24xf32> to vector<24x24xf32>
    %106 = arith.divf %102, %105 : vector<24x24xf32>
    %c0_89 = arith.constant 0 : index
    %c0_90 = arith.constant 0 : index
    %c0_91 = arith.constant 0 : index
    %107 = vector.load %arg31[%c0_89, %c0_90, %c0_91] : memref<1x24x24xf32, #tpu.memory_space<vmem>>, vector<1x24x24xf32>
    %108 = vector.shape_cast %107 : vector<1x24x24xf32> to vector<24x24xf32>
    %109 = vector.shape_cast %106 : vector<24x24xf32> to vector<1x24x24xf32>
    tpu.vector_store %arg31[%c0_89, %c0_90, %c0_91], %109 {strides = array<i32>} : memref<1x24x24xf32, #tpu.memory_space<vmem>>, vector<1x24x24xf32>,
    %cst_92 = arith.constant dense<0.000000e+00> : vector<128x24xf32>
    %110 = tpu.matmul %54, %106, %cst_92 {dimension_numbers = #tpu.dot_dimension_numbers<[1], [0], [0], [1], [0, 0, 1, 1], [], []>} : vector<128x24xf32>, vector<24x24xf32>, vector<128x24xf32> -> vector<128x24xf32>
    %cst_93 = arith.constant 0.000000e+00 : f32
    %111 = vector.broadcast %cst_93 : f32 to vector<128x24xf32>
    %112 = arith.cmpf oge, %110, %111 : vector<128x24xf32>
    %cst_94 = arith.constant 0.00999999977 : f32
    %113 = vector.broadcast %cst_94 : f32 to vector<128x24xf32>
    %114 = arith.mulf %113, %110 : vector<128x24xf32>
    %115 = arith.select %112, %110, %114 : vector<128x24xi1>, vector<128x24xf32>
    %116 = arith.addf %115, %8 : vector<128x24xf32>
    %117 = vector.shape_cast %116 : vector<128x24xf32> to vector<1x128x24xf32>
    %cst_95 = arith.constant dense<0.000000e+00> : vector<1xf32>
    %118 = vector.multi_reduction <add>, %117, %cst_95 [1, 2] : vector<1x128x24xf32> to vector<1xf32>
    %119 = vector.shape_cast %118 : vector<1xf32> to vector<1x1x1xf32>
    %120 = vector.extract %119[0, 0, 0] : f32 from vector<1x1x1xf32>
    %121 = vector.broadcast %120 : f32 to vector<1x1xf32>
    %cst_96 = arith.constant 3.072000e+03 : f32
    %122 = vector.broadcast %cst_96 : f32 to vector<1x1xf32>
    %123 = arith.divf %121, %122 : vector<1x1xf32>
    %124 = vector.broadcast %123 : vector<1x1xf32> to vector<128x24xf32>
    %125 = arith.subf %116, %124 : vector<128x24xf32>
    %126 = arith.mulf %125, %125 : vector<128x24xf32>
    %127 = vector.shape_cast %126 : vector<128x24xf32> to vector<1x128x24xf32>
    %cst_97 = arith.constant dense<0.000000e+00> : vector<1xf32>
    %128 = vector.multi_reduction <add>, %127, %cst_97 [1, 2] : vector<1x128x24xf32> to vector<1xf32>
    %129 = vector.shape_cast %128 : vector<1xf32> to vector<1x1x1xf32>
    %130 = vector.extract %129[0, 0, 0] : f32 from vector<1x1x1xf32>
    %131 = vector.broadcast %130 : f32 to vector<1x1xf32>
    %cst_98 = arith.constant 3.072000e+03 : f32
    %132 = vector.broadcast %cst_98 : f32 to vector<1x1xf32>
    %133 = arith.divf %131, %132 : vector<1x1xf32>
    %134 = vector.broadcast %123 : vector<1x1xf32> to vector<128x24xf32>
    %135 = arith.subf %116, %134 : vector<128x24xf32>
    %cst_99 = arith.constant 9.99999974E-6 : f32
    %136 = vector.broadcast %cst_99 : f32 to vector<1x1xf32>
    %137 = arith.addf %133, %136 : vector<1x1xf32>
    %138 = math.rsqrt %137 : vector<1x1xf32>
    %139 = vector.broadcast %138 : vector<1x1xf32> to vector<128x24xf32>
    %140 = arith.mulf %135, %139 : vector<128x24xf32>
    %c0_100 = arith.constant 0 : index
    %c0_101 = arith.constant 0 : index
    %141 = vector.load %arg28[%c0_100, %c0_101] : memref<128x24xf32, #tpu.memory_space<vmem>>, vector<128x24xf32>
    %142 = arith.mulf %140, %141 : vector<128x24xf32>
    %c0_102 = arith.constant 0 : index
    %c0_103 = arith.constant 0 : index
    %143 = vector.load %arg29[%c0_102, %c0_103] : memref<128x24xf32, #tpu.memory_space<vmem>>, vector<128x24xf32>
    %144 = arith.addf %142, %143 : vector<128x24xf32>
    %c0_104 = arith.constant 0 : index
    %c0_105 = arith.constant 0 : index
    %c0_106 = arith.constant 0 : index
    %145 = vector.load %arg30[%c0_104, %c0_105, %c0_106] : memref<1x128x24xf32, #tpu.memory_space<vmem>>, vector<1x128x24xf32>
    %146 = vector.shape_cast %145 : vector<1x128x24xf32> to vector<128x24xf32>
    %147 = vector.shape_cast %144 : vector<128x24xf32> to vector<1x128x24xf32>
    tpu.vector_store %arg30[%c0_104, %c0_105, %c0_106], %147 {strides = array<i32>} : memref<1x128x24xf32, #tpu.memory_space<vmem>>, vector<1x128x24xf32>,
    return
  }
  func.func @transform_0(%arg0: i32) -> (i32, i32, i32) {
    %c0_i32 = arith.constant 0 : i32
    %c0_i32_0 = arith.constant 0 : i32
    %c0_i32_1 = arith.constant 0 : i32
    return %arg0, %c0_i32, %c0_i32_0 : i32, i32, i32
  }
  func.func @transform_1(%arg0: i32) -> (i32, i32) {
    %c0_i32 = arith.constant 0 : i32
    %c0_i32_0 = arith.constant 0 : i32
    %c0_i32_1 = arith.constant 0 : i32
    return %c0_i32, %c0_i32_0 : i32, i32
  }
  func.func @transform_2(%arg0: i32) -> (i32, i32) {
    %c0_i32 = arith.constant 0 : i32
    %c0_i32_0 = arith.constant 0 : i32
    %c0_i32_1 = arith.constant 0 : i32
    return %c0_i32, %c0_i32_0 : i32, i32
  }
  func.func @transform_3(%arg0: i32) -> (i32, i32) {
    %c0_i32 = arith.constant 0 : i32
    %c0_i32_0 = arith.constant 0 : i32
    %c0_i32_1 = arith.constant 0 : i32
    return %c0_i32, %c0_i32_0 : i32, i32
  }
  func.func @transform_4(%arg0: i32) -> (i32, i32) {
    %c0_i32 = arith.constant 0 : i32
    %c0_i32_0 = arith.constant 0 : i32
    %c0_i32_1 = arith.constant 0 : i32
    return %c0_i32, %c0_i32_0 : i32, i32
  }
  func.func @transform_5(%arg0: i32) -> (i32, i32) {
    %c0_i32 = arith.constant 0 : i32
    %c0_i32_0 = arith.constant 0 : i32
    %c0_i32_1 = arith.constant 0 : i32
    return %c0_i32, %c0_i32_0 : i32, i32
  }
  func.func @transform_6(%arg0: i32) -> (i32, i32) {
    %c0_i32 = arith.constant 0 : i32
    %c0_i32_0 = arith.constant 0 : i32
    %c0_i32_1 = arith.constant 0 : i32
    return %c0_i32, %c0_i32_0 : i32, i32
  }
  func.func @transform_7(%arg0: i32) -> (i32, i32) {
    %c0_i32 = arith.constant 0 : i32
    %c0_i32_0 = arith.constant 0 : i32
    %c0_i32_1 = arith.constant 0 : i32
    return %c0_i32, %c0_i32_0 : i32, i32
  }
  func.func @transform_8(%arg0: i32) -> (i32, i32) {
    %c0_i32 = arith.constant 0 : i32
    %c0_i32_0 = arith.constant 0 : i32
    %c0_i32_1 = arith.constant 0 : i32
    return %c0_i32, %c0_i32_0 : i32, i32
  }
  func.func @transform_9(%arg0: i32) -> (i32, i32) {
    %c0_i32 = arith.constant 0 : i32
    %c0_i32_0 = arith.constant 0 : i32
    %c0_i32_1 = arith.constant 0 : i32
    return %c0_i32, %c0_i32_0 : i32, i32
  }
  func.func @transform_10(%arg0: i32) -> (i32, i32) {
    %c0_i32 = arith.constant 0 : i32
    %c0_i32_0 = arith.constant 0 : i32
    %c0_i32_1 = arith.constant 0 : i32
    return %c0_i32, %c0_i32_0 : i32, i32
  }
  func.func @transform_11(%arg0: i32) -> (i32, i32) {
    %c0_i32 = arith.constant 0 : i32
    %c0_i32_0 = arith.constant 0 : i32
    %c0_i32_1 = arith.constant 0 : i32
    return %c0_i32, %c0_i32_0 : i32, i32
  }
  func.func @transform_12(%arg0: i32) -> (i32, i32) {
    %c0_i32 = arith.constant 0 : i32
    %c0_i32_0 = arith.constant 0 : i32
    %c0_i32_1 = arith.constant 0 : i32
    return %c0_i32, %c0_i32_0 : i32, i32
  }
  func.func @transform_13(%arg0: i32) -> (i32, i32) {
    %c0_i32 = arith.constant 0 : i32
    %c0_i32_0 = arith.constant 0 : i32
    %c0_i32_1 = arith.constant 0 : i32
    return %c0_i32, %c0_i32_0 : i32, i32
  }
  func.func @transform_14(%arg0: i32) -> (i32, i32) {
    %c0_i32 = arith.constant 0 : i32
    %c0_i32_0 = arith.constant 0 : i32
    %c0_i32_1 = arith.constant 0 : i32
    return %c0_i32, %c0_i32_0 : i32, i32
  }
  func.func @transform_15(%arg0: i32) -> (i32, i32) {
    %c0_i32 = arith.constant 0 : i32
    %c0_i32_0 = arith.constant 0 : i32
    %c0_i32_1 = arith.constant 0 : i32
    return %c0_i32, %c0_i32_0 : i32, i32
  }
  func.func @transform_16(%arg0: i32) -> (i32, i32) {
    %c0_i32 = arith.constant 0 : i32
    %c0_i32_0 = arith.constant 0 : i32
    %c0_i32_1 = arith.constant 0 : i32
    return %c0_i32, %c0_i32_0 : i32, i32
  }
  func.func @transform_17(%arg0: i32) -> (i32, i32) {
    %c0_i32 = arith.constant 0 : i32
    %c0_i32_0 = arith.constant 0 : i32
    %c0_i32_1 = arith.constant 0 : i32
    return %c0_i32, %c0_i32_0 : i32, i32
  }
  func.func @transform_18(%arg0: i32) -> (i32, i32) {
    %c0_i32 = arith.constant 0 : i32
    %c0_i32_0 = arith.constant 0 : i32
    %c0_i32_1 = arith.constant 0 : i32
    return %c0_i32, %c0_i32_0 : i32, i32
  }
  func.func @transform_19(%arg0: i32) -> (i32, i32) {
    %c0_i32 = arith.constant 0 : i32
    %c0_i32_0 = arith.constant 0 : i32
    %c0_i32_1 = arith.constant 0 : i32
    return %c0_i32, %c0_i32_0 : i32, i32
  }
  func.func @transform_20(%arg0: i32) -> (i32, i32) {
    %c0_i32 = arith.constant 0 : i32
    %c0_i32_0 = arith.constant 0 : i32
    %c0_i32_1 = arith.constant 0 : i32
    return %c0_i32, %c0_i32_0 : i32, i32
  }
  func.func @transform_21(%arg0: i32) -> (i32, i32) {
    %c0_i32 = arith.constant 0 : i32
    %c0_i32_0 = arith.constant 0 : i32
    %c0_i32_1 = arith.constant 0 : i32
    return %c0_i32, %c0_i32_0 : i32, i32
  }
  func.func @transform_22(%arg0: i32) -> (i32, i32) {
    %c0_i32 = arith.constant 0 : i32
    %c0_i32_0 = arith.constant 0 : i32
    %c0_i32_1 = arith.constant 0 : i32
    return %c0_i32, %c0_i32_0 : i32, i32
  }
  func.func @transform_23(%arg0: i32) -> (i32, i32) {
    %c0_i32 = arith.constant 0 : i32
    %c0_i32_0 = arith.constant 0 : i32
    %c0_i32_1 = arith.constant 0 : i32
    return %c0_i32, %c0_i32_0 : i32, i32
  }
  func.func @transform_24(%arg0: i32) -> (i32, i32) {
    %c0_i32 = arith.constant 0 : i32
    %c0_i32_0 = arith.constant 0 : i32
    %c0_i32_1 = arith.constant 0 : i32
    return %c0_i32, %c0_i32_0 : i32, i32
  }
  func.func @transform_25(%arg0: i32) -> (i32, i32) {
    %c0_i32 = arith.constant 0 : i32
    %c0_i32_0 = arith.constant 0 : i32
    %c0_i32_1 = arith.constant 0 : i32
    return %c0_i32, %c0_i32_0 : i32, i32
  }
  func.func @transform_26(%arg0: i32) -> (i32, i32) {
    %c0_i32 = arith.constant 0 : i32
    %c0_i32_0 = arith.constant 0 : i32
    %c0_i32_1 = arith.constant 0 : i32
    return %c0_i32, %c0_i32_0 : i32, i32
  }
  func.func @transform_27(%arg0: i32) -> (i32, i32) {
    %c0_i32 = arith.constant 0 : i32
    %c0_i32_0 = arith.constant 0 : i32
    %c0_i32_1 = arith.constant 0 : i32
    return %c0_i32, %c0_i32_0 : i32, i32
  }
  func.func @transform_28(%arg0: i32) -> (i32, i32) {
    %c0_i32 = arith.constant 0 : i32
    %c0_i32_0 = arith.constant 0 : i32
    %c0_i32_1 = arith.constant 0 : i32
    return %c0_i32, %c0_i32_0 : i32, i32
  }
  func.func @transform_29(%arg0: i32) -> (i32, i32, i32) {
    %c0_i32 = arith.constant 0 : i32
    %c0_i32_0 = arith.constant 0 : i32
    %c0_i32_1 = arith.constant 0 : i32
    return %arg0, %c0_i32, %c0_i32_0 : i32, i32, i32
  }
  func.func @transform_30(%arg0: i32) -> (i32, i32, i32) {
    %c0_i32 = arith.constant 0 : i32
    %c0_i32_0 = arith.constant 0 : i32
    %c0_i32_1 = arith.constant 0 : i32
    return %arg0, %c0_i32, %c0_i32_0 : i32, i32, i32
  }
}

</mosaic_0001>

<bundles_post_ra>
// kernel: spatial_temporal_corr_forward.1
= control target key start
LH: loop header
LB: loop body
LE: loop exit
PB: predicated region body
PF: predicated region fallthrough
CT: control target
= control target key end

     0   :  { %s7148_s6 = smov 1   ;;  %s7149_s10 = smov 2   ;;  %s8747_s0 = inlined_call_operand.smem [shape: u32[31], index: -1, kind: input, shape index: {}] }
   0x1   :  { %s7193_s5 = sld [smem:[%s8747_s0]]   ;;  %s7150_s14 = smov 3  }
   0x2   :  { %s7198_s9 = sld [smem:[%s8747_s0 + %s7148_s6]]   ;;  %s7151_s18 = smov 4  }
   0x3   :  { %s7203_s13 = sld [smem:[%s8747_s0 + %s7149_s10]]   ;;  %s7152_s22 = smov 5  }
   0x4   :  { %s7208_s17 = sld [smem:[%s8747_s0 + %s7150_s14]]   ;;  %s7153_s26 = smov 6  }
   0x5   :  { %s7213_s21 = sld [smem:[%s8747_s0 + %s7151_s18]]   ;;  %s7154_s30 = smov 7  }
   0x6   :  { %s7218_s25 = sld [smem:[%s8747_s0 + %s7152_s22]]   ;;  %s7155_s4 = smov 8  }
   0x7   :  { %8773 = sst [smem:[#allocation8_spill]] %s7193_s5  ;;  %s7156_s10 = smov 9  }
   0x8   :  { %8774 = sst [smem:[#allocation9_spill]] %s7198_s9  ;;  %s7157_s15 = smov 10  }
   0x9   :  { %8775 = sst [smem:[#allocation10_spill]] %s7203_s13  ;;  %s7158_s20 = smov 11  }
   0xa   :  { %8776 = sst [smem:[#allocation11_spill]] %s7208_s17  ;;  %s7160_s1 = smov 13  }
   0xb   :  { %s7223_s29 = sld [smem:[%s8747_s0 + %s7153_s26]]   ;;  %s7159_s26 = smov 12  }
   0xc   :  { %s7228_s3 = sld [smem:[%s8747_s0 + %s7154_s30]]   ;;  %s7161_s7 = smov 14  }
   0xd   :  { %s7233_s8 = sld [smem:[%s8747_s0 + %s7155_s4]]   ;;  %s7163_s22 = smov 16  }
   0xe   :  { %s7238_s14 = sld [smem:[%s8747_s0 + %s7156_s10]]   ;;  %s7164_s28 = smov 17  }
   0xf   :  { %s7243_s19 = sld [smem:[%s8747_s0 + %s7157_s15]]   ;;  %s7162_s15 = smov 15  }
  0x10   :  { %s7248_s24 = sld [smem:[%s8747_s0 + %s7158_s20]]  }
  0x11   :  { %s7253_s30 = sld [smem:[%s8747_s0 + %s7159_s26]]  }
  0x12   :  { %8777 = sst [smem:[#allocation12_spill]] %s7228_s3 }
  0x13   :  { %8778 = sst [smem:[#allocation13_spill]] %s7233_s8 }
  0x14   :  { %8779 = sst [smem:[#allocation14_spill]] %s7238_s14 }
  0x15   :  { %8780 = sst [smem:[#allocation15_spill]] %s7243_s19 }
  0x16   :  { %s7258_s6 = sld [smem:[%s8747_s0 + %s7160_s1]]  }
  0x17   :  { %s7263_s12 = sld [smem:[%s8747_s0 + %s7161_s7]]   ;;  %s7165_s7 = smov 18  }
  0x18   :  { %s7268_s20 = sld [smem:[%s8747_s0 + %s7162_s15]]   ;;  %s7166_s15 = smov 19  }
  0x19   :  { %s7273_s27 = sld [smem:[%s8747_s0 + %s7163_s22]]   ;;  %s7167_s22 = smov 20  }
  0x1a   :  { %s7278_s4 = sld [smem:[%s8747_s0 + %s7164_s28]]   ;;  %s7168_s28 = smov 21  }
  0x1c   :  { %8781 = sst [smem:[#allocation16_spill]] %s7258_s6 }
  0x1d   :  { %8782 = sst [smem:[#allocation17_spill]] %s7263_s12 }
  0x1e   :  { %8783 = sst [smem:[#allocation18_spill]] %s7268_s20 }
  0x1f   :  { %8784 = sst [smem:[#allocation19_spill]] %s7273_s27 }
  0x20   :  { %8785 = sst [smem:[#allocation20_spill]] %s7278_s4 }
  0x21   :  { %s7283_s12 = sld [smem:[%s8747_s0 + %s7165_s7]]   ;;  %s7169_s7 = smov 22  }
  0x22   :  { %s7288_s6 = sld [smem:[%s8747_s0 + %s7166_s15]]   ;;  %s7170_s15 = smov 23  }
  0x23   :  { %s7293_s27 = sld [smem:[%s8747_s0 + %s7167_s22]]   ;;  %s7171_s22 = smov 24  }
  0x24   :  { %s7298_s4 = sld [smem:[%s8747_s0 + %s7168_s28]]   ;;  %s7172_s28 = smov 25  }
  0x27   :  { %8786 = sst [smem:[#allocation21_spill]] %s7283_s12 }
  0x28   :  { %8787 = sst [smem:[#allocation22_spill]] %s7288_s6 }
  0x29   :  { %8788 = sst [smem:[#allocation23_spill]] %s7293_s27 }
  0x2a   :  { %8789 = sst [smem:[#allocation24_spill]] %s7298_s4 }
  0x2b   :  { %s7303_s12 = sld [smem:[%s8747_s0 + %s7169_s7]]   ;;  %s7173_s7 = smov 26  }
  0x2c   :  { %s7308_s6 = sld [smem:[%s8747_s0 + %s7170_s15]]   ;;  %s7174_s15 = smov 27  }
  0x2d   :  { %s7313_s27 = sld [smem:[%s8747_s0 + %s7171_s22]]   ;;  %s7175_s22 = smov 28  }
  0x2e   :  { %s7318_s4 = sld [smem:[%s8747_s0 + %s7172_s28]]   ;;  %s7176_s28 = smov 29  }
  0x2f   :  { %s7333_s20 = sld [smem:[%s8747_s0 + %s7175_s22]]  }
  0x30   :  { %s7338_s14 = sld [smem:[%s8747_s0 + %s7176_s28]]  }
  0x31   :  { %8790 = sst [smem:[#allocation25_spill]] %s7303_s12 }
  0x32   :  { %8791 = sst [smem:[#allocation26_spill]] %s7308_s6 }
  0x33   :  { %s7323_s12 = sld [smem:[%s8747_s0 + %s7173_s7]]   ;;  %s7177_s7 = smov 30  }
  0x34   :  { %8792 = sst [smem:[#allocation27_spill]] %s7318_s4 }
  0x35   :  { %s7328_s6 = sld [smem:[%s8747_s0 + %s7174_s15]]  }
  0x39   :  { %8793 = sst [smem:[#allocation28_spill]] %s7323_s12 }
  0x3a   :  { %s7343_s12 = sld [smem:[%s8747_s0 + %s7177_s7]]  }
  0x3b   :  { %67 = vsyncpa [#allocation3], 0 }
  0x3c   :  { %69 = vsyncpa [#allocation3 + $0x1], 0 }
  0x3d   :  { %70 = vsyncpa [#allocation5], 0 }
  0x3e   :  { %72 = vsyncpa [#allocation5 + $0x1], 0  ;;  %s7345_s15 = smov 0   ;;  %s7347_s16 = smov 0  }
  0x3f   :  { %s7349_s18 = smov 0   ;;  %s7351_s22 = smov 0  }
  0x40 LB: > { %s8794_s19 = sld [smem:[#allocation15_spill]]  ;;  %s7366_s0 = sadd.s32 4294967295, %s7146_s22   ;;  %s7142_s18 = sphi %s7349_s18, %s8898_s18   ;;  %s7138_s16 = sphi %s7347_s16, %s8897_s16   ;;  %s7134_s15 = sphi %s7345_s15, %s8896_s15   ;;  %s7146_s22 = sphi %s7351_s22, %s8899_s22  }
  0x41   : > { %s8795_s17 = sld [smem:[#allocation11_spill]]  ;;  %s5623_s23 = sadd.s32 4294967294, %s7146_s22  }
  0x42   : > { %s8796_s13 = sld [smem:[#allocation10_spill]]  ;;  %s7370_s26 = sadd.s32 1, %s7146_s22  }
  0x43   : > { %s8797_s9 = sld [smem:[#allocation9_spill]]  ;;  %s699_s28 = sadd.s32 1, %s7142_s18 }
  0x44   : > { %s8798_s8 = sld [smem:[#allocation13_spill]]  ;;  %s696_s1 = ssub.s32 %s7146_s22, %s7370_s26 }
  0x45   : > { %s8799_s4 = sld [smem:[#allocation27_spill]]  ;;  %p709_p0 = scmp.ne.s32.totalorder %s7142_s18, %s7138_s16 }
  0x46   : > { %s8800_s3 = sld [smem:[#allocation12_spill]]  ;;  %p697_p1 = scmp.eq.s32.totalorder %s696_s1, 0 }
  0x47   : > { %p710_p2 = scmp.eq.s32.totalorder %s7366_s0, 1  ;;  %p715_p3 = scmp.ne.s32.totalorder %s7138_s16, %s7134_s15 }
  0x48   : > { %p716_p4 = scmp.eq.s32.totalorder %s5623_s23, 1  ;;  %p5626_p7 = scmp.ge.s32.totalorder %s7146_s22, 1 }
  0x49   : > { %s7381_s2 = scalar_select %p697_p1, %s7142_s18, %s699_s28  }
  0x4a   : > { %p7383_p5 = por %p710_p2, %p709_p0  ;;  %p7387_p6 = por %p716_p4, %p715_p3 }
  0x4b   : > { %p852_p8 = scmp.lt.s32.totalorder %s7146_s22, 3 }
  0x4d   : > { %p853_p9 = pnand %p5626_p7, %p852_p8 }
  0x4f   : > { %856 = sbr.rel (%p853_p9) target bundleno = 3276 (0xccc), region = 136 }
  0x54   : > { %v7394_v0 = vld [vmem:[%s7248_s24 + $0x10] sm:$0xff]  ;;  %v7397_v1 = vld [vmem:[%s7248_s24 + $0x8] sm:$0xff]  ;;  %p935_p10 = scmp.lt.s32.totalorder %s7366_s0, 1  ;;  %s8803_s5 = sld [smem:[#allocation8_spill]]  ;;  %v7178_v2 = vmov 0   ;;  %v7403_v3 = vld [vmem:[%s7248_s24] sm:$0xff] }
  0x55   : > { %6222 = vmatprep.subr.mxu1 %v7394_v0  ;;  %6963 = vset.pattern.permute.xlu1 %v7178_v2  ;;  %v2140_v4 = vld [vmem:[%s7223_s29 + $0x10] sm:$0xff]  ;;  %vm1260_vm0 = vcmask 195584   ;;  %v2141_v6 = vld [vmem:[%s7223_s29 + $0x18] sm:$0xff]  ;;  %v7426_v10 = vld [vmem:[%s7253_s30 + $0x8] sm:$0xff]  ;;  %vm1066_vm1 = vcmask 523264   ;;  %s8820_s1 = sld [smem:[#allocation14_spill]] }
  0x56   : > { %6223 = vmatpush3.msra.mxu1 %v7394_v0  ;;  %s936_s11 = scalar_select %p935_p10, %s7366_s0, 1  ;;  %6962 = vset.pattern.permute.xlu0 %v7178_v2  ;;  %v7410_v5 = vld [vmem:[%s7253_s30 + $0x10] sm:$0xff]  ;;  %v7438_v13 = vld [vmem:[%s7253_s30] sm:$0xff]  ;;  %v2143_v15 = vld [vmem:[%s7223_s29 + $0x28] sm:$0xff] }
  0x57   : > { %6224 = vmatprep.subr.mxu1 %v7397_v1  ;;  %2166 = vperm.xlu1 %6963, %v2140_v4   ;;  %v2145_v18 = vld [vmem:[%s7223_s29 + $0x38] sm:$0xff]  ;;  %v954_v19 = vld [vmem:[%s8797_s9] sm:$0xff]  ;;  %v2147_v20 = vld [vmem:[%s7223_s29 + $0x48] sm:$0xff] }
  0x58   : > { %6225 = vmatpush3.msra.mxu1 %v7397_v1  ;;  %s5783_s23 = sshll.u32 %s936_s11, 6  ;;  %6198 = vmatprep.mubr.msk.f32.mxu0 %vm1066_vm1, %v954_v19  ;;  %v2149_v21 = vld [vmem:[%s7223_s29 + $0x58] sm:$0xff]  ;;  %v955_v22 = vld [vmem:[%s8797_s9 + $0x8] sm:$0xff]  ;;  %v956_v24 = vld [vmem:[%s8797_s9 + $0x10] sm:$0xff]  ;;  %s8823_s11 = sld [smem:[#allocation18_spill]] }
  0x59   : > { %6226 = vmatprep.subr.mxu1 %v7403_v3  ;;  %v2151_v23 = vld [vmem:[%s7223_s29 + $0x68] sm:$0xff]  ;;  %v2153_v25 = vld [vmem:[%s7223_s29 + $0x78] sm:$0xff]  ;;  %v3469_v26 = vld [vmem:[%s8794_s19 + $0xf0] sm:$0xff] }
  0x5a   : > { %s939_s28 = scalar_lea.vmem %s8803_s5, %s5783_s23  ;;  %6227 = vmatpush3.msra.mxu1 %v7403_v3  ;;  %v3467_v27 = vld [vmem:[%s8794_s19 + $0xe0] sm:$0xff]  ;;  %v3465_v28 = vld [vmem:[%s8794_s19 + $0xd0] sm:$0xff]  ;;  %v957_v35 = vld [vmem:[%s8797_s9 + $0x18] sm:$0xff]  ;;  %s8869_s23 = sld [smem:[#allocation16_spill]] }
  0x5b   : > { %v7416_v7 = vld [vmem:[%s939_s28] sm:$0xff]  ;;  %v7418_v8 = vld [vmem:[%s939_s28 + $0x8] sm:$0xff]  ;;  %v7420_v9 = vld [vmem:[%s939_s28 + $0x10] sm:$0xff]  ;;  %6240 = vmatprep.subr.mxu1 %v7410_v5  ;;  %2171 = vperm.xlu1 %6963, %v2141_v6  }
  0x5c   : > { %6228 = vmatprep.mubr.msk.f32.mxu1 %vm1260_vm0, %v7416_v7  ;;  %v7432_v11 = vld [vmem:[%s939_s28 + $0x18] sm:$0xff]  ;;  %v944_v14 = vld [vmem:[%s939_s28 + $0x20] sm:$0xff]  ;;  %v945_v16 = vld [vmem:[%s939_s28 + $0x28] sm:$0xff] }
  0x5d   : > { %6229 = vmatmul.mubr.msk.f32.vlgmr.msra.gmra.mxu1 %vm1260_vm0, %v7418_v8  ;;  %v7435_v12 = vld [vmem:[%s939_s28 + $0x38] sm:$0xff]  ;;  %v946_v17 = vld [vmem:[%s939_s28 + $0x30] sm:$0xff]  ;;  %v3463_v29 = vld [vmem:[%s8794_s19 + $0xc0] sm:$0xff]  ;;  %s8870_s28 = sld [smem:[#allocation19_spill]] }
  0x5e   : > { %6231 = vmatprep.mubr.msk.f32.mxu1 %vm1260_vm0, %v7420_v9  ;;  %6241 = vmatpush3.msra.mxu1 %v7410_v5  ;;  %v3461_v30 = vld [vmem:[%s8794_s19 + $0xb0] sm:$0xff]  ;;  %v3459_v31 = vld [vmem:[%s8794_s19 + $0xa0] sm:$0xff]  ;;  %v959_v38 = vld [vmem:[%s8797_s9 + $0x28] sm:$0xff] }
  0x5f   : > { %6242 = vmatprep.subr.mxu1 %v7426_v10  ;;  %6182 = vmatprep.subr.mxu0 %v7435_v12  ;;  %v3457_v32 = vld [vmem:[%s8794_s19 + $0x90] sm:$0xff]  ;;  %v3455_v33 = vld [vmem:[%s8794_s19 + $0x80] sm:$0xff]  ;;  %v961_v41 = vld [vmem:[%s8797_s9 + $0x38] sm:$0xff] }
  0x60   : > { %6243 = vmatpush3.msra.mxu1 %v7426_v10  ;;  %6183 = vmatpush3.msra.mxu0 %v7435_v12  ;;  %v3453_v34 = vld [vmem:[%s8794_s19 + $0x70] sm:$0xff]  ;;  %v3451_v36 = vld [vmem:[%s8794_s19 + $0x60] sm:$0xff]  ;;  %v1512_v43 = vld [vmem:[%s7213_s21 + $0x8] sm:$0xff] }
  0x61   : > { %6232 = vmatmul.mubr.msk.f32.gmra.mxu1 %vm1260_vm0, %v7432_v11  ;;  %6244 = vmatprep.subr.mxu1 %v7438_v13  ;;  %v958_v37 = vld [vmem:[%s8797_s9 + $0x20] sm:$0xff]  ;;  %v3449_v39 = vld [vmem:[%s8794_s19 + $0x50] sm:$0xff]  ;;  %v963_v46 = vld [vmem:[%s8797_s9 + $0x48] sm:$0xff] }
  0x62   : > { %6234 = vmatprep.mubr.msk.f32.mxu1 %vm1260_vm0, %v944_v14  ;;  %6245 = vmatpush3.msra.mxu1 %v7438_v13  ;;  %v960_v40 = vld [vmem:[%s8797_s9 + $0x30] sm:$0xff]  ;;  %v1511_v42 = vld [vmem:[%s7213_s21] sm:$0xff]  ;;  %v1514_v48 = vld [vmem:[%s7213_s21 + $0x18] sm:$0xff] }
  0x63   : > { %2181 = vperm.xlu1 %6963, %v2143_v15   ;;  %6184 = vmatprep.subr.mxu0 %v946_v17  ;;  %v3447_v44 = vld [vmem:[%s8794_s19 + $0x40] sm:$0xff]  ;;  %v1513_v47 = vld [vmem:[%s7213_s21 + $0x10] sm:$0xff]  ;;  %v965_v51 = vld [vmem:[%s8797_s9 + $0x58] sm:$0xff] }
  0x64   : > { %6185 = vmatpush3.msra.mxu0 %v946_v17  ;;  %6258 = vmatprep.subr.mxu1 %v7435_v12  ;;  %v962_v45 = vld [vmem:[%s8797_s9 + $0x40] sm:$0xff]  ;;  %v3445_v49 = vld [vmem:[%s8794_s19 + $0x30] sm:$0xff]  ;;  %v1516_v53 = vld [vmem:[%s7213_s21 + $0x28] sm:$0xff] }
  0x65   : > { %6235 = vmatmul.mubr.msk.f32.gmra.mxu1 %vm1260_vm0, %v945_v16  ;;  %6186 = vmatprep.subr.mxu0 %v945_v16  ;;  %v964_v50 = vld [vmem:[%s8797_s9 + $0x50] sm:$0xff]  ;;  %v1515_v52 = vld [vmem:[%s7213_s21 + $0x20] sm:$0xff]  ;;  %v967_v56 = vld [vmem:[%s8797_s9 + $0x68] sm:$0xff] }
  0x66   : > { %6237 = vmatprep.mubr.msk.f32.mxu1 %vm1260_vm0, %v946_v17  ;;  %6187 = vmatpush3.msra.mxu0 %v945_v16  ;;  %v3443_v54 = vld [vmem:[%s8794_s19 + $0x20] sm:$0xff]  ;;  %v1517_v57 = vld [vmem:[%s7213_s21 + $0x30] sm:$0xff]  ;;  %v1518_v59 = vld [vmem:[%s7213_s21 + $0x38] sm:$0xff] }
  0x67   : > { %2191 = vperm.xlu1 %6963, %v2145_v18   ;;  %6188 = vmatprep.subr.mxu0 %v944_v14  ;;  %v966_v55 = vld [vmem:[%s8797_s9 + $0x60] sm:$0xff]  ;;  %v3441_v60 = vld [vmem:[%s8794_s19 + $0x10] sm:$0xff]  ;;  %v969_v62 = vld [vmem:[%s8797_s9 + $0x78] sm:$0xff] }
  0x68   : > { %6189 = vmatpush3.msra.mxu0 %v944_v14  ;;  %v2138_v58 = vld [vmem:[%s7223_s29] sm:$0xff]  ;;  %v968_v61 = vld [vmem:[%s8797_s9 + $0x70] sm:$0xff]  ;;  %v2139_v2 = vld [vmem:[%s7223_s29 + $0x8] sm:$0xff] }
  0x69   : > { %6238 = vmatmul.mubr.msk.f32.gmra.mxu1 %vm1260_vm0, %v7435_v12  ;;  %6190 = vmatprep.subr.mxu0 %v7432_v11  ;;  %v1519_v63 = vld [vmem:[%s7213_s21 + $0x40] sm:$0xff]  ;;  %v1520_v4 = vld [vmem:[%s7213_s21 + $0x48] sm:$0xff]  ;;  %v2144_v15 = vld [vmem:[%s7223_s29 + $0x30] sm:$0xff] }
  0x6a   : > { %6246 = vmatprep.mubr.msk.f32.mxu1 %vm1260_vm0, %v7416_v7  ;;  %6191 = vmatpush3.msra.mxu0 %v7432_v11  ;;  %v3439_v6 = vld [vmem:[%s8794_s19] sm:$0xff]  ;;  %v1525_v18 = vld [vmem:[%s7213_s21 + $0x70] sm:$0xff] }
  0x6b   : > { %2201 = vperm.xlu1 %6963, %v2147_v20   ;;  %6192 = vmatprep.subr.mxu0 %v7420_v9  ;;  %v2146_v19 = vld [vmem:[%s7223_s29 + $0x40] sm:$0xff]  ;;  %v1526_v20 = vld [vmem:[%s7213_s21 + $0x78] sm:$0xff] }
  0x6c   : > { %6193 = vmatpush3.msra.mxu0 %v7420_v9  ;;  %2156 = vperm.xlu0 %6962, %v2138_v58   ;;  %v3440_v58 = vld [vmem:[%s8794_s19 + $0x8] sm:$0xff] }
  0x6d   : > { %6247 = vmatmul.mubr.msk.f32.vlgmr.msra.gmra.mxu1 %vm1260_vm0, %v7418_v8  ;;  %6194 = vmatprep.subr.mxu0 %v7418_v8 }
  0x6e   : > { %6249 = vmatprep.mubr.msk.f32.mxu1 %vm1260_vm0, %v7420_v9  ;;  %6195 = vmatpush3.msra.mxu0 %v7418_v8 }
  0x6f   : > { %2211 = vperm.xlu1 %6963, %v2149_v21   ;;  %6196 = vmatprep.subr.mxu0 %v7416_v7  ;;  %v4908_v21 = vld [vmem:[%s7313_s27 + $0x10] sm:$0xff] }
  0x70   : > { %6197 = vmatpush3.msra.mxu0 %v7416_v7  ;;  %6259 = vmatpush3.msra.mxu1 %v7435_v12 }
  0x71   : > { %6250 = vmatmul.mubr.msk.f32.gmra.mxu1 %vm1260_vm0, %v7432_v11  ;;  %6199 = vmatmul.mubr.msk.f32.vlgmr.msra.gmra.mxu0 %vm1066_vm1, %v955_v22  ;;  %v2148_v22 = vld [vmem:[%s7223_s29 + $0x50] sm:$0xff] }
  0x72   : > { %6252 = vmatprep.mubr.msk.f32.mxu1 %vm1260_vm0, %v944_v14  ;;  %6260 = vmatprep.subr.mxu1 %v946_v17 }
  0x73   : > { %2221 = vperm.xlu1 %6963, %v2151_v23   ;;  %6261 = vmatpush3.msra.mxu1 %v946_v17  ;;  %v4927_v23 = vld [vmem:[%s8799_s4] sm:$0xff] }
  0x74   : > { %6262 = vmatprep.subr.mxu1 %v945_v16  ;;  %6201 = vmatprep.mubr.msk.f32.mxu0 %vm1066_vm1, %v956_v24  ;;  %v1913_v24 = vld [vmem:[%s7218_s25] sm:$0xff] }
  0x75   : > { %6253 = vmatmul.mubr.msk.f32.gmra.mxu1 %vm1260_vm0, %v945_v16  ;;  %6202 = vmatmul.mubr.msk.f32.gmra.mxu0 %vm1066_vm1, %v957_v35  ;;  %v3464_v35 = vld [vmem:[%s8794_s19 + $0xc8] sm:$0xff] }
  0x76   : > { %6255 = vmatprep.mubr.msk.f32.mxu1 %vm1260_vm0, %v946_v17  ;;  %6263 = vmatpush3.msra.mxu1 %v945_v16  ;;  %v1524_v16 = vld [vmem:[%s7213_s21 + $0x68] sm:$0xff] }
  0x77   : > { %2231 = vperm.xlu1 %6963, %v2153_v25   ;;  %6264 = vmatprep.subr.mxu1 %v944_v14  ;;  %v4907_v17 = vld [vmem:[%s7313_s27 + $0x8] sm:$0xff]  ;;  %v2150_v25 = vld [vmem:[%s7223_s29 + $0x60] sm:$0xff] }
  0x78   : > { %6265 = vmatpush3.msra.mxu1 %v944_v14  ;;  %6204 = vmatprep.mubr.msk.f32.mxu0 %vm1066_vm1, %v958_v37  ;;  %v1523_v14 = vld [vmem:[%s7213_s21 + $0x60] sm:$0xff]  ;;  %v3462_v37 = vld [vmem:[%s8794_s19 + $0xb8] sm:$0xff] }
  0x79   : > { %6256 = vmatmul.mubr.msk.f32.gmra.mxu1 %vm1260_vm0, %v7435_v12  ;;  %6266 = vmatprep.subr.mxu1 %v7432_v11  ;;  %v4906_v12 = vld [vmem:[%s7313_s27] sm:$0xff] }
  0x7a   : > { %6267 = vmatpush3.msra.mxu1 %v7432_v11  ;;  %6205 = vmatmul.mubr.msk.f32.gmra.mxu0 %vm1066_vm1, %v959_v38  ;;  %v1522_v11 = vld [vmem:[%s7213_s21 + $0x58] sm:$0xff]  ;;  %v975_v38 = vld [vmem:[%s8796_s13 + $0x28] sm:$0xff] }
  0x7b   : > { %3623 = vperm.xlu1 %6963, %v3469_v26   ;;  %6268 = vmatprep.subr.mxu1 %v7420_v9  ;;  %v4928_v26 = vld [vmem:[%s8799_s4 + $0x8] sm:$0xff] }
  0x7c   : > { %6269 = vmatpush3.msra.mxu1 %v7420_v9  ;;  %6207 = vmatprep.mubr.msk.f32.mxu0 %vm1066_vm1, %v960_v40  ;;  %v2142_v9 = vld [vmem:[%s7223_s29 + $0x20] sm:$0xff]  ;;  %v976_v40 = vld [vmem:[%s8796_s13 + $0x30] sm:$0xff] }
  0x7d   : > { %6270 = vmatprep.subr.mxu1 %v7418_v8  ;;  %6274 = vmatprep.mubr.msk.f32.mxu1 %vm1066_vm1, %v1511_v42  ;;  %v977_v42 = vld [vmem:[%s8796_s13 + $0x38] sm:$0xff] }
  0x7e   : > { %6271 = vmatpush3.msra.mxu1 %v7418_v8  ;;  %6208 = vmatmul.mubr.msk.f32.gmra.mxu0 %vm1066_vm1, %v961_v41  ;;  %v1521_v8 = vld [vmem:[%s7213_s21 + $0x50] sm:$0xff]  ;;  %v3458_v41 = vld [vmem:[%s8794_s19 + $0x98] sm:$0xff] }
  0x7f   : > { %3613 = vperm.xlu1 %6963, %v3467_v27   ;;  %6272 = vmatprep.subr.mxu1 %v7416_v7  ;;  %v2152_v27 = vld [vmem:[%s7223_s29 + $0x70] sm:$0xff] }
  0x80   : > { %6273 = vmatpush3.msra.mxu1 %v7416_v7  ;;  %6210 = vmatprep.mubr.msk.f32.mxu0 %vm1066_vm1, %v962_v45  ;;  %v1495_v7 = vld [vmem:[%s8795_s17] sm:$0xff]  ;;  %v3454_v45 = vld [vmem:[%s8794_s19 + $0x78] sm:$0xff] }
  0x81   : > { %6275 = vmatmul.mubr.msk.f32.vlgmr.msra.gmra.mxu1 %vm1066_vm1, %v1512_v43  ;;  %2161 = vperm.xlu0 %6962, %v2139_v2   ;;  %v3456_v43 = vld [vmem:[%s8794_s19 + $0x88] sm:$0xff] }
  0x82   : > { %6211 = vmatmul.mubr.msk.f32.gmra.mxu0 %vm1066_vm1, %v963_v46  ;;  %6277 = vmatprep.mubr.msk.f32.mxu1 %vm1066_vm1, %v1513_v47  ;;  %v979_v46 = vld [vmem:[%s8796_s13 + $0x48] sm:$0xff] }
  0x83   : > { %3603 = vperm.xlu1 %6963, %v3465_v28   ;;  %6213 = vmatprep.mubr.msk.f32.mxu0 %vm1066_vm1, %v964_v50  ;;  %v4929_v28 = vld [vmem:[%s8799_s4 + $0x10] sm:$0xff]  ;;  %v3452_v47 = vld [vmem:[%s8794_s19 + $0x68] sm:$0xff]  ;;  %v981_v50 = vld [vmem:[%s8796_s13 + $0x58] sm:$0xff]  ;;  %s8876_s4 = sld [smem:[#allocation24_spill]] }
  0x85   : > { %6278 = vmatmul.mubr.msk.f32.gmra.mxu1 %vm1066_vm1, %v1514_v48  ;;  %2176 = vperm.xlu0 %6962, %v2142_v9   ;;  %v980_v48 = vld [vmem:[%s8796_s13 + $0x50] sm:$0xff] }
  0x86   : > { %6214 = vmatmul.mubr.msk.f32.gmra.mxu0 %vm1066_vm1, %v965_v51  ;;  %6280 = vmatprep.mubr.msk.f32.mxu1 %vm1066_vm1, %v1515_v52  ;;  %v3448_v51 = vld [vmem:[%s8794_s19 + $0x48] sm:$0xff]  ;;  %v982_v52 = vld [vmem:[%s8796_s13 + $0x60] sm:$0xff] }
  0x87   : > { %3593 = vperm.xlu1 %6963, %v3463_v29   ;;  %6216 = vmatprep.mubr.msk.f32.mxu0 %vm1066_vm1, %v966_v55  ;;  %v3470_v29 = vld [vmem:[%s8794_s19 + $0xf8] sm:$0xff]  ;;  %v3444_v55 = vld [vmem:[%s8794_s19 + $0x28] sm:$0xff] }
  0x89   : > { %6281 = vmatmul.mubr.msk.f32.gmra.mxu1 %vm1066_vm1, %v1516_v53  ;;  %2186 = vperm.xlu0 %6962, %v2144_v15   ;;  %v3446_v53 = vld [vmem:[%s8794_s19 + $0x38] sm:$0xff]  ;;  %v1496_v15 = vld [vmem:[%s8795_s17 + $0x8] sm:$0xff] }
  0x8a   : > { %6217 = vmatmul.mubr.msk.f32.gmra.mxu0 %vm1066_vm1, %v967_v56  ;;  %6283 = vmatprep.mubr.msk.f32.mxu1 %vm1066_vm1, %v1517_v57  ;;  %v984_v56 = vld [vmem:[%s8796_s13 + $0x70] sm:$0xff]  ;;  %v3442_v57 = vld [vmem:[%s8794_s19 + $0x18] sm:$0xff] }
  0x8b   : > { %3583 = vperm.xlu1 %6963, %v3461_v30   ;;  %6219 = vmatprep.mubr.msk.f32.mxu0 %vm1066_vm1, %v968_v61  ;;  %v970_v30 = vld [vmem:[%s8796_s13] sm:$0xff] }
  0x8d   : > { %6284 = vmatmul.mubr.msk.f32.gmra.mxu1 %vm1066_vm1, %v1518_v59  ;;  %2196 = vperm.xlu0 %6962, %v2146_v19   ;;  %v1498_v19 = vld [vmem:[%s8795_s17 + $0x18] sm:$0xff] }
  0x8e   : > { %6220 = vmatmul.mubr.msk.f32.gmra.mxu0 %vm1066_vm1, %v969_v62  ;;  %6286 = vmatprep.mubr.msk.f32.mxu1 %vm1066_vm1, %v1519_v63 }
  0x8f   : > { %3573 = vperm.xlu1 %6963, %v3459_v31   ;;  %6314 = vmatprep.mubr.msk.f32.mxu0 %vm1066_vm1, %v1495_v7  ;;  %v3468_v31 = vld [vmem:[%s8794_s19 + $0xe8] sm:$0xff] }
  0x91   : > { %6287 = vmatmul.mubr.msk.f32.gmra.mxu1 %vm1066_vm1, %v1520_v4  ;;  %2206 = vperm.xlu0 %6962, %v2148_v22   ;;  %v1501_v22 = vld [vmem:[%s8795_s17 + $0x30] sm:$0xff] }
  0x92   : > { %6289 = vmatprep.mubr.msk.f32.mxu1 %vm1066_vm1, %v1521_v8 }
  0x93   : > { %3563 = vperm.xlu1 %6963, %v3457_v32   ;;  %v971_v32 = vld [vmem:[%s8796_s13 + $0x8] sm:$0xff] }
  0x95   : > { %6290 = vmatmul.mubr.msk.f32.gmra.mxu1 %vm1066_vm1, %v1522_v11  ;;  %2216 = vperm.xlu0 %6962, %v2150_v25   ;;  %v1505_v25 = vld [vmem:[%s8795_s17 + $0x50] sm:$0xff] }
  0x96   : > { %6292 = vmatprep.mubr.msk.f32.mxu1 %vm1066_vm1, %v1523_v14 }
  0x97   : > { %3553 = vperm.xlu1 %6963, %v3455_v33   ;;  %v3466_v33 = vld [vmem:[%s8794_s19 + $0xd8] sm:$0xff] }
  0x99   : > { %6293 = vmatmul.mubr.msk.f32.gmra.mxu1 %vm1066_vm1, %v1524_v16  ;;  %2226 = vperm.xlu0 %6962, %v2152_v27   ;;  %v1497_v16 = vld [vmem:[%s8795_s17 + $0x10] sm:$0xff]  ;;  %v1916_v27 = vld [vmem:[%s7218_s25 + $0x18] sm:$0xff] }
  0x9a   : > { %6295 = vmatprep.mubr.msk.f32.mxu1 %vm1066_vm1, %v1525_v18 }
  0x9b   : > { %3543 = vperm.xlu1 %6963, %v3453_v34   ;;  %v973_v34 = vld [vmem:[%s8796_s13 + $0x18] sm:$0xff] }
  0x9d   : > { %6296 = vmatmul.mubr.msk.f32.gmra.mxu1 %vm1066_vm1, %v1526_v20  ;;  %3628 = vperm.xlu0 %6962, %v3470_v29   ;;  %v1499_v20 = vld [vmem:[%s8795_s17 + $0x20] sm:$0xff] }
  0x9e   : > { %6354 = vmatprep.mubr.msk.f32.mxu1 %vm1066_vm1, %v1913_v24  ;;  %v1914_v24 = vld [vmem:[%s7218_s25 + $0x8] sm:$0xff]  ;;  %v1917_v29 = vld [vmem:[%s7218_s25 + $0x20] sm:$0xff] }
  0x9f   : > { %3533 = vperm.xlu1 %6963, %v3451_v36   ;;  %v974_v36 = vld [vmem:[%s8796_s13 + $0x20] sm:$0xff] }
  0xa1   : > { %3618 = vperm.xlu0 %6962, %v3468_v31   ;;  %v1918_v31 = vld [vmem:[%s7218_s25 + $0x28] sm:$0xff] }
  0xa3   : > { %3523 = vperm.xlu1 %6963, %v3449_v39   ;;  %v3460_v39 = vld [vmem:[%s8794_s19 + $0xa8] sm:$0xff] }
  0xa5   : > { %3608 = vperm.xlu0 %6962, %v3466_v33   ;;  %v1919_v33 = vld [vmem:[%s7218_s25 + $0x30] sm:$0xff] }
  0xa7   : > { %3513 = vperm.xlu1 %6963, %v3447_v44   ;;  %v978_v44 = vld [vmem:[%s8796_s13 + $0x40] sm:$0xff] }
  0xa9   : > { %3598 = vperm.xlu0 %6962, %v3464_v35   ;;  %v1921_v35 = vld [vmem:[%s7218_s25 + $0x40] sm:$0xff] }
  0xab   : > { %3503 = vperm.xlu1 %6963, %v3445_v49   ;;  %v3450_v49 = vld [vmem:[%s8794_s19 + $0x58] sm:$0xff] }
  0xad   : > { %3588 = vperm.xlu0 %6962, %v3462_v37   ;;  %v1924_v37 = vld [vmem:[%s7218_s25 + $0x58] sm:$0xff] }
  0xaf   : > { %3493 = vperm.xlu1 %6963, %v3443_v54   ;;  %v983_v54 = vld [vmem:[%s8796_s13 + $0x68] sm:$0xff] }
  0xb1   : > { %3578 = vperm.xlu0 %6962, %v3460_v39   ;;  %v1927_v39 = vld [vmem:[%s7218_s25 + $0x70] sm:$0xff] }
  0xb3   : > { %3483 = vperm.xlu1 %6963, %v3441_v60  }
  0xb5   : > { %3568 = vperm.xlu0 %6962, %v3458_v41  }
  0xb7   : > { %3473 = vperm.xlu1 %6963, %v3439_v6  }
  0xb9   : > { %3558 = vperm.xlu0 %6962, %v3456_v43  }
  0xbb   : > { %4911 = vperm.xlu1 %6963, %v4906_v12  }
  0xbd   : > { %3548 = vperm.xlu0 %6962, %v3454_v45  }
  0xbf   : > { %4916 = vperm.xlu1 %6963, %v4907_v17  }
  0xc1   : > { %3538 = vperm.xlu0 %6962, %v3452_v47  }
  0xc3   : > { %4921 = vperm.xlu1 %6963, %v4908_v21   ;;  %v1500_v21 = vld [vmem:[%s8795_s17 + $0x28] sm:$0xff] }
  0xc5   : > { %3528 = vperm.xlu0 %6962, %v3450_v49  }
  0xc7   : > { %4932 = vperm.xlu1 %6963, %v4927_v23   ;;  %v1503_v23 = vld [vmem:[%s8795_s17 + $0x40] sm:$0xff] }
  0xc9   : > { %3518 = vperm.xlu0 %6962, %v3448_v51  }
  0xcb   : > { %4937 = vperm.xlu1 %6963, %v4928_v26   ;;  %v1915_v26 = vld [vmem:[%s7218_s25 + $0x10] sm:$0xff] }
  0xcd   : > { %3508 = vperm.xlu0 %6962, %v3446_v53  }
  0xcf   : > { %4942 = vperm.xlu1 %6963, %v4929_v28   ;;  %v1507_v28 = vld [vmem:[%s8795_s17 + $0x60] sm:$0xff] }
  0xd1   : > { %3498 = vperm.xlu0 %6962, %v3444_v55  }
  0xd3   : > { %988 = vperm.xlu1 %6963, %v970_v30   ;;  %v1508_v30 = vld [vmem:[%s8795_s17 + $0x68] sm:$0xff] }
  0xd5   : > { %3488 = vperm.xlu0 %6962, %v3442_v57  }
  0xd7   : > { %993 = vperm.xlu1 %6963, %v971_v32   ;;  %v1509_v32 = vld [vmem:[%s8795_s17 + $0x70] sm:$0xff] }
  0xd9   : > { %3478 = vperm.xlu0 %6962, %v3440_v58  }
  0xdb   : > { %1003 = vperm.xlu1 %6963, %v973_v34   ;;  %v1920_v34 = vld [vmem:[%s7218_s25 + $0x38] sm:$0xff] }
  0xdf   : > { %1008 = vperm.xlu1 %6963, %v974_v36   ;;  %v1923_v36 = vld [vmem:[%s7218_s25 + $0x50] sm:$0xff] }
  0xe3   : > { %1013 = vperm.xlu1 %6963, %v975_v38   ;;  %v1925_v38 = vld [vmem:[%s7218_s25 + $0x60] sm:$0xff] }
  0xe7   : > { %1018 = vperm.xlu1 %6963, %v976_v40   ;;  %v1928_v40 = vld [vmem:[%s7218_s25 + $0x78] sm:$0xff] }
  0xeb   : > { %1023 = vperm.xlu1 %6963, %v977_v42  }
  0xef   : > { %1028 = vperm.xlu1 %6963, %v978_v44  }
  0xf3   : > { %1033 = vperm.xlu1 %6963, %v979_v46  }
  0xf7   : > { %1038 = vperm.xlu1 %6963, %v980_v48  }
  0xfb   : > { %1043 = vperm.xlu1 %6963, %v981_v50  }
  0xff   : > { %1048 = vperm.xlu1 %6963, %v982_v52  }
 0x103   : > { %1053 = vperm.xlu1 %6963, %v983_v54  }
 0x107   : > { %1058 = vperm.xlu1 %6963, %v984_v56  }
 0x11d   : > { %v6230_v59 = vpop.f32.mrf.mxu1 }
 0x11f   : > { %v1351_v60 = vpop.f32.mrf.mxu1 }
 0x121   : > { %v6233_v61 = vpop.f32.mrf.mxu1 }
 0x123   : > { %v1361_v62 = vpop.f32.mrf.mxu1 }
 0x125   : > { %v6236_v63 = vpop.f32.mrf.mxu1 }
 0x127   : > { %v1371_v2 = vpop.f32.mrf.mxu1 }
 0x129   : > { %v6239_v4 = vpop.f32.mrf.mxu1 }
 0x12a   : > { %6298 = vmatprep.subr.mxu0 %v6239_v4 }
 0x12b   : > { %v1381_v6 = vpop.f32.mrf.mxu1  ;;  %6299 = vmatpush3.msra.mxu0 %v6239_v4 }
 0x12c   : > { %6300 = vmatprep.subr.mxu0 %v1381_v6 }
 0x12d   : > { %v6248_v7 = vpop.f32.mrf.mxu1  ;;  %6301 = vmatpush3.msra.mxu0 %v1381_v6 }
 0x12e   : > { %6302 = vmatprep.subr.mxu0 %v6236_v63 }
 0x12f   : > { %v1456_v8 = vpop.f32.mrf.mxu1  ;;  %6303 = vmatpush3.msra.mxu0 %v6236_v63 }
 0x130   : > { %6304 = vmatprep.subr.mxu0 %v1371_v2 }
 0x131   : > { %v6251_v9 = vpop.f32.mrf.mxu1  ;;  %6305 = vmatpush3.msra.mxu0 %v1371_v2  ;;  %v7690_v41 = vpop.f32.mrf.mxu0 }
 0x132   : > { %6306 = vmatprep.subr.mxu0 %v6233_v61  ;;  %8804 = vst [vmem:[#allocation29_spill] sm:$0xff] %v7690_v41 }
 0x133   : > { %v1466_v11 = vpop.f32.mrf.mxu1  ;;  %6307 = vmatpush3.msra.mxu0 %v6233_v61  ;;  %v7692_v42 = vpop.f32.mrf.mxu0 }
 0x134   : > { %6308 = vmatprep.subr.mxu0 %v1361_v62  ;;  %8805 = vst [vmem:[#allocation30_spill] sm:$0xff] %v7692_v42 }
 0x135   : > { %v6254_v12 = vpop.f32.mrf.mxu1  ;;  %6309 = vmatpush3.msra.mxu0 %v1361_v62  ;;  %v7694_v43 = vpop.f32.mrf.mxu0 }
 0x136   : > { %6310 = vmatprep.subr.mxu0 %v6230_v59  ;;  %8806 = vst [vmem:[#allocation31_spill] sm:$0xff] %v7694_v43 }
 0x137   : > { %v1476_v14 = vpop.f32.mrf.mxu1  ;;  %6311 = vmatpush3.msra.mxu0 %v6230_v59  ;;  %v7696_v44 = vpop.f32.mrf.mxu0 }
 0x138   : > { %6312 = vmatprep.subr.mxu0 %v1351_v60  ;;  %8807 = vst [vmem:[#allocation32_spill] sm:$0xff] %v7696_v44 }
 0x139   : > { %v6257_v17 = vpop.f32.mrf.mxu1  ;;  %6313 = vmatpush3.msra.mxu0 %v1351_v60 }
 0x13a   : > { %6315 = vmatmul.mubr.msk.f32.vlgmr.msra.gmra.mxu0 %vm1066_vm1, %v1496_v15  ;;  %6338 = vmatprep.subr.mxu1 %v6257_v17  ;;  %v7698_v45 = vpop.f32.mrf.mxu0 }
 0x13b   : > { %v1486_v18 = vpop.f32.mrf.mxu1  ;;  %6339 = vmatpush3.msra.mxu1 %v6257_v17  ;;  %6317 = vmatprep.mubr.msk.f32.mxu0 %vm1066_vm1, %v1497_v16  ;;  %8808 = vst [vmem:[#allocation33_spill] sm:$0xff] %v7698_v45  ;;  %v2157_v16 = vpop.permute.xlu0 %2156 }
 0x13c   : > { %6340 = vmatprep.subr.mxu1 %v1486_v18  ;;  %6378 = vmatprep.subr.mxu0 %v7394_v0  ;;  %v7700_v47 = vpop.f32.mrf.mxu0 }
 0x13d   : > { %6341 = vmatpush3.msra.mxu1 %v1486_v18  ;;  %6379 = vmatpush3.msra.mxu0 %v7394_v0  ;;  %v1502_v0 = vld [vmem:[%s8795_s17 + $0x38] sm:$0xff]  ;;  %8809 = vst [vmem:[#allocation34_spill] sm:$0xff] %v7700_v47 }
 0x13e   : > { %6318 = vmatmul.mubr.msk.f32.gmra.mxu0 %vm1066_vm1, %v1498_v19  ;;  %6342 = vmatprep.subr.mxu1 %v6254_v12  ;;  %v7702_v49 = vpop.f32.mrf.mxu0 }
 0x13f   : > { %6343 = vmatpush3.msra.mxu1 %v6254_v12  ;;  %6320 = vmatprep.mubr.msk.f32.mxu0 %vm1066_vm1, %v1499_v20  ;;  %8810 = vst [vmem:[#allocation35_spill] sm:$0xff] %v7702_v49 }
 0x140   : > { %6344 = vmatprep.subr.mxu1 %v1476_v14  ;;  %6380 = vmatprep.subr.mxu0 %v7397_v1  ;;  %v7704_v51 = vpop.f32.mrf.mxu0 }
 0x141   : > { %6345 = vmatpush3.msra.mxu1 %v1476_v14  ;;  %6381 = vmatpush3.msra.mxu0 %v7397_v1  ;;  %v1504_v1 = vld [vmem:[%s8795_s17 + $0x48] sm:$0xff]  ;;  %v6276_v46 = vpop.f32.mrf.mxu1  ;;  %8811 = vst [vmem:[#allocation36_spill] sm:$0xff] %v7704_v51  ;;  %v2167_v14 = vpop.permute.xlu1 %2166 }
 0x142   : > { %6321 = vmatmul.mubr.msk.f32.gmra.mxu0 %vm1066_vm1, %v1500_v21  ;;  %6346 = vmatprep.subr.mxu1 %v6251_v9  ;;  %v7706_v53 = vpop.f32.mrf.mxu0 }
 0x143   : > { %6347 = vmatpush3.msra.mxu1 %v6251_v9  ;;  %6323 = vmatprep.mubr.msk.f32.mxu0 %vm1066_vm1, %v1501_v22  ;;  %v1641_v48 = vpop.f32.mrf.mxu1  ;;  %8812 = vst [vmem:[#allocation37_spill] sm:$0xff] %v7706_v53 }
 0x144   : > { %6348 = vmatprep.subr.mxu1 %v1466_v11  ;;  %6382 = vmatprep.subr.mxu0 %v7403_v3  ;;  %v7708_v55 = vpop.f32.mrf.mxu0 }
 0x145   : > { %6349 = vmatpush3.msra.mxu1 %v1466_v11  ;;  %6383 = vmatpush3.msra.mxu0 %v7403_v3  ;;  %v1506_v3 = vld [vmem:[%s8795_s17 + $0x58] sm:$0xff]  ;;  %v6279_v50 = vpop.f32.mrf.mxu1  ;;  %8813 = vst [vmem:[#allocation38_spill] sm:$0xff] %v7708_v55  ;;  %v2172_v20 = vpop.permute.xlu1 %2171 }
 0x146   : > { %6324 = vmatmul.mubr.msk.f32.gmra.mxu0 %vm1066_vm1, %v1502_v0  ;;  %6350 = vmatprep.subr.mxu1 %v6248_v7  ;;  %v7710_v57 = vpop.f32.mrf.mxu0  ;;  %v2162_v0 = vpop.permute.xlu0 %2161 }
 0x147   : > { %6351 = vmatpush3.msra.mxu1 %v6248_v7  ;;  %6326 = vmatprep.mubr.msk.f32.mxu0 %vm1066_vm1, %v1503_v23  ;;  %v1651_v52 = vpop.f32.mrf.mxu1  ;;  %8814 = vst [vmem:[#allocation39_spill] sm:$0xff] %v7710_v57 }
 0x148   : > { %6352 = vmatprep.subr.mxu1 %v1456_v8  ;;  %v7712_v59 = vpop.f32.mrf.mxu0 }
 0x149   : > { %6353 = vmatpush3.msra.mxu1 %v1456_v8  ;;  %v6282_v54 = vpop.f32.mrf.mxu1  ;;  %8815 = vst [vmem:[#allocation40_spill] sm:$0xff] %v7712_v59 }
 0x14a   : > { %6327 = vmatmul.mubr.msk.f32.gmra.mxu0 %vm1066_vm1, %v1504_v1  ;;  %6355 = vmatmul.mubr.msk.f32.vlgmr.msra.gmra.mxu1 %vm1066_vm1, %v1914_v24  ;;  %v7716_v61 = vpop.f32.mrf.mxu0 }
 0x14b   : > { %6329 = vmatprep.mubr.msk.f32.mxu0 %vm1066_vm1, %v1505_v25  ;;  %6357 = vmatprep.mubr.msk.f32.mxu1 %vm1066_vm1, %v1915_v26  ;;  %v1661_v56 = vpop.f32.mrf.mxu1  ;;  %8816 = vst [vmem:[#allocation41_spill] sm:$0xff] %v7716_v61  ;;  %v2182_v25 = vpop.permute.xlu1 %2181 }
 0x14c   : > { %6408 = vmatprep.subr.mxu1 %v7410_v5  ;;  %v7720_v63 = vpop.f32.mrf.mxu0 }
 0x14d   : > { %6409 = vmatpush3.msra.mxu1 %v7410_v5  ;;  %v1510_v5 = vld [vmem:[%s8795_s17 + $0x78] sm:$0xff]  ;;  %v6285_v58 = vpop.f32.mrf.mxu1  ;;  %8817 = vst [vmem:[#allocation42_spill] sm:$0xff] %v7720_v63 }
 0x14e   : > { %6330 = vmatmul.mubr.msk.f32.gmra.mxu0 %vm1066_vm1, %v1506_v3  ;;  %6358 = vmatmul.mubr.msk.f32.gmra.mxu1 %vm1066_vm1, %v1916_v27  ;;  %v7724_v4 = vpop.f32.mrf.mxu0 }
 0x14f   : > { %6332 = vmatprep.mubr.msk.f32.mxu0 %vm1066_vm1, %v1507_v28  ;;  %6360 = vmatprep.mubr.msk.f32.mxu1 %vm1066_vm1, %v1917_v29  ;;  %v7714_v60 = vpop.f32.mrf.mxu1  ;;  %8818 = vst [vmem:[#allocation43_spill] sm:$0xff] %v7724_v4  ;;  %v2177_v28 = vpop.permute.xlu0 %2176 }
 0x150   : > { %6410 = vmatprep.subr.mxu1 %v7426_v10  ;;  %v7728_v7 = vpop.f32.mrf.mxu0 }
 0x151   : > { %6411 = vmatpush3.msra.mxu1 %v7426_v10  ;;  %v1922_v10 = vld [vmem:[%s7218_s25 + $0x48] sm:$0xff]  ;;  %v7718_v62 = vpop.f32.mrf.mxu1  ;;  %8819 = vst [vmem:[#allocation44_spill] sm:$0xff] %v7728_v7 }
 0x152   : > { %6333 = vmatmul.mubr.msk.f32.gmra.mxu0 %vm1066_vm1, %v1508_v30  ;;  %6361 = vmatmul.mubr.msk.f32.gmra.mxu1 %vm1066_vm1, %v1918_v31 }
 0x153   : > { %6335 = vmatprep.mubr.msk.f32.mxu0 %vm1066_vm1, %v1509_v32  ;;  %6363 = vmatprep.mubr.msk.f32.mxu1 %vm1066_vm1, %v1919_v33  ;;  %v7722_v2 = vpop.f32.mrf.mxu1  ;;  %v2187_v4 = vpop.permute.xlu0 %2186 }
 0x154   : > { %6412 = vmatprep.subr.mxu1 %v7438_v13 }
 0x155   : > { %6413 = vmatpush3.msra.mxu1 %v7438_v13  ;;  %v1926_v13 = vld [vmem:[%s7218_s25 + $0x68] sm:$0xff]  ;;  %v7726_v6 = vpop.f32.mrf.mxu1 }
 0x156   : > { %6336 = vmatmul.mubr.msk.f32.gmra.mxu0 %vm1066_vm1, %v1510_v5  ;;  %6364 = vmatmul.mubr.msk.f32.gmra.mxu1 %vm1066_vm1, %v1920_v34 }
 0x157   : > { %6366 = vmatprep.mubr.msk.f32.mxu1 %vm1066_vm1, %v1921_v35  ;;  %v7730_v8 = vpop.f32.mrf.mxu1 }
 0x159   : > { %v7732_v12 = vpop.f32.mrf.mxu1 }
 0x15a   : > { %6367 = vmatmul.mubr.msk.f32.gmra.mxu1 %vm1066_vm1, %v1922_v10  ;;  %v2192_v10 = vpop.permute.xlu1 %2191 }
 0x15b   : > { %6369 = vmatprep.mubr.msk.f32.mxu1 %vm1066_vm1, %v1923_v36  ;;  %v7734_v18 = vpop.f32.mrf.mxu1 }
 0x15d   : > { %v7736_v21 = vpop.f32.mrf.mxu1 }
 0x15e   : > { %6370 = vmatmul.mubr.msk.f32.gmra.mxu1 %vm1066_vm1, %v1924_v37 }
 0x15f   : > { %6372 = vmatprep.mubr.msk.f32.mxu1 %vm1066_vm1, %v1925_v38  ;;  %v7738_v1 = vpop.f32.mrf.mxu1 }
 0x162   : > { %6373 = vmatmul.mubr.msk.f32.gmra.mxu1 %vm1066_vm1, %v1926_v13 }
 0x163   : > { %6375 = vmatprep.mubr.msk.f32.mxu1 %vm1066_vm1, %v1927_v39 }
 0x166   : > { %6376 = vmatmul.mubr.msk.f32.gmra.mxu1 %vm1066_vm1, %v1928_v40 }
 0x1fa   : > { %v6316_v9 = vpop.f32.mrf.mxu0 }
 0x1fb   : > { %v1840_v26 = vadd.f32 %v6316_v9, %v6276_v46 }
 0x1fc   : > { %v1834_v11 = vpop.f32.mrf.mxu0 }
 0x1fd   : > { %v1835_v29 = vadd.f32 %v1834_v11, %v1641_v48 }
 0x1fe   : > { %v6319_v15 = vpop.f32.mrf.mxu0 }
 0x1ff   : > { %v1850_v34 = vadd.f32 %v6319_v15, %v6279_v50 }
 0x200   : > { %v1844_v17 = vpop.f32.mrf.mxu0 }
 0x201   : > { %v1845_v36 = vadd.f32 %v1844_v17, %v1651_v52 }
 0x202   : > { %v6322_v19 = vpop.f32.mrf.mxu0 }
 0x203   : > { %v1860_v46 = vadd.f32 %v6322_v19, %v6282_v54  ;;  %v2202_v54 = vpop.permute.xlu1 %2201 }
 0x204   : > { %v1854_v22 = vpop.f32.mrf.mxu0 }
 0x206   : > { %v6325_v23 = vpop.f32.mrf.mxu0 }
 0x207   : > { %v1870_v15 = vadd.f32 %v6325_v23, %v6285_v58 }
 0x208   : > { %v1864_v24 = vpop.f32.mrf.mxu0 }
 0x20a   : > { %v6328_v3 = vpop.f32.mrf.mxu0  ;;  %v6356_v27 = vpop.f32.mrf.mxu1 }
 0x20b   : > { %v2123_v30 = vadd.f32 %v6356_v27, %v1840_v26  ;;  %v1855_v26 = vadd.f32 %v1854_v22, %v1661_v56 }
 0x20c   : > { %v1874_v31 = vpop.f32.mrf.mxu0  ;;  %v2043_v32 = vpop.f32.mrf.mxu1 }
 0x20d   : > { %v2235_v33 = vadd.f32 %v2162_v0, %v2123_v30  ;;  %v2122_v5 = vadd.f32 %v2043_v32, %v1835_v29  ;;  %v1880_v30 = vadd.f32 %v6328_v3, %v7718_v62  ;;  %v2212_v62 = vpop.permute.xlu1 %2211 }
 0x20e   : > { %v6359_v35 = vpop.f32.mrf.mxu1  ;;  %v6331_v13 = vpop.f32.mrf.mxu0 }
 0x20f   : > { %v2234_v37 = vadd.f32 %v2157_v16, %v2122_v5  ;;  %v2267_v38 = vmul.f32 0.01, %v2235_v33  ;;  %v2125_v39 = vadd.f32 %v6359_v35, %v1850_v34  ;;  %vm2251_vm2 = vcmp.ge.f32.partialorder %v2235_v33, 0.0 }
 0x210   : > { %v2053_v40 = vpop.f32.mrf.mxu1  ;;  %v1884_v17 = vpop.f32.mrf.mxu0 }
 0x211   : > { %v2266_v9 = vmul.f32 0.01, %v2234_v37  ;;  %v2124_v7 = vadd.f32 %v2053_v40, %v1845_v36  ;;  %v2237_v48 = vadd.f32 %v2172_v20, %v2125_v39  ;;  %vm2250_vm3 = vcmp.ge.f32.partialorder %v2234_v37, 0.0 }
 0x212   : > { %v6362_v11 = vpop.f32.mrf.mxu1  ;;  %v7742_v52 = vsel %vm2251_vm2, %v2235_v33, %v2267_v38  ;;  %v6334_v32 = vpop.f32.mrf.mxu0  ;;  %v1890_v38 = vadd.f32 %v6331_v13, %v7726_v6  ;;  %v1885_v13 = vadd.f32 %v1884_v17, %v7730_v8 }
 0x213   : > { %v2236_v0 = vadd.f32 %v2167_v14, %v2124_v7  ;;  %v2127_v27 = vadd.f32 %v6362_v11, %v1860_v46  ;;  %v7740_v50 = vsel %vm2250_vm3, %v2234_v37, %v2266_v9  ;;  %v2269_v16 = vmul.f32 0.01, %v2237_v48  ;;  %v2197_v7 = vpop.permute.xlu0 %2196 }
 0x214   : > { %v2063_v29 = vpop.f32.mrf.mxu1  ;;  %6384 = vmatprep.mubr.msk.f32.mxu0 %vm1260_vm0, %v7740_v50  ;;  %6414 = vmatprep.mubr.msk.f32.mxu1 %vm1260_vm0, %v7740_v50  ;;  %vm2253_vm4 = vcmp.ge.f32.partialorder %v2237_v48, 0.0  ;;  %v1865_v14 = vadd.f32 %v1864_v24, %v7714_v60  ;;  %v1875_v24 = vadd.f32 %v1874_v31, %v7722_v2  ;;  %v1894_v39 = vpop.f32.mrf.mxu0 }
 0x215   : > { %v2268_v19 = vmul.f32 0.01, %v2236_v0  ;;  %v2239_v20 = vadd.f32 %v2182_v25, %v2127_v27  ;;  %v2126_v56 = vadd.f32 %v2063_v29, %v1855_v26  ;;  %6385 = vmatmul.mubr.msk.f32.vlgmr.msra.gmra.mxu0 %vm1260_vm0, %v7742_v52  ;;  %6415 = vmatmul.mubr.msk.f32.vlgmr.msra.gmra.mxu1 %vm1260_vm0, %v7742_v52  ;;  %vm2252_vm5 = vcmp.ge.f32.partialorder %v2236_v0, 0.0 }
 0x216   : > { %v6365_v58 = vpop.f32.mrf.mxu1  ;;  %v7756_v34 = vsel %vm2253_vm4, %v2237_v48, %v2269_v16  ;;  %v1900_v27 = vadd.f32 %v6334_v32, %v7732_v12 }
 0x217   : > { %v2238_v22 = vadd.f32 %v2177_v28, %v2126_v56  ;;  %v2129_v23 = vadd.f32 %v6365_v58, %v1870_v15  ;;  %v2271_v33 = vmul.f32 0.01, %v2239_v20  ;;  %v7754_v5 = vsel %vm2252_vm5, %v2236_v0, %v2268_v19  ;;  %v2207_v2 = vpop.permute.xlu0 %2206  ;;  %v6337_v15 = vpop.f32.mrf.mxu0 }
 0x218   : > { %v2073_v25 = vpop.f32.mrf.mxu1  ;;  %6387 = vmatprep.mubr.msk.f32.mxu0 %vm1260_vm0, %v7754_v5  ;;  %6417 = vmatprep.mubr.msk.f32.mxu1 %vm1260_vm0, %v7754_v5  ;;  %vm2255_vm6 = vcmp.ge.f32.partialorder %v2239_v20, 0.0  ;;  %v1895_v58 = vadd.f32 %v1894_v39, %v7734_v18 }
 0x219   : > { %v2270_v35 = vmul.f32 0.01, %v2238_v22  ;;  %v2241_v36 = vadd.f32 %v2192_v10, %v2129_v23  ;;  %v2128_v37 = vadd.f32 %v2073_v25, %v1865_v14  ;;  %6388 = vmatmul.mubr.msk.f32.gmra.mxu0 %vm1260_vm0, %v7756_v34  ;;  %6418 = vmatmul.mubr.msk.f32.gmra.mxu1 %vm1260_vm0, %v7756_v34  ;;  %vm2254_vm7 = vcmp.ge.f32.partialorder %v2238_v22, 0.0 }
 0x21a   : > { %v6368_v60 = vpop.f32.mrf.mxu1  ;;  %v7775_v9 = vsel %vm2255_vm6, %v2239_v20, %v2271_v33  ;;  %v2222_v20 = vpop.permute.xlu1 %2221  ;;  %v1910_v23 = vadd.f32 %v6337_v15, %v7736_v21  ;;  %v2675_v15 = vld [vmem:[%s8798_s8 + $0x38] sm:$0xff] }
 0x21b   : > { %v2240_v3 = vadd.f32 %v2187_v4, %v2128_v37  ;;  %v2131_v28 = vadd.f32 %v6368_v60, %v1880_v30  ;;  %v7767_v10 = vsel %vm2254_vm7, %v2238_v22, %v2270_v35  ;;  %v2273_v40 = vmul.f32 0.01, %v2241_v36  ;;  %v2217_v56 = vpop.permute.xlu0 %2216  ;;  %v1904_v30 = vpop.f32.mrf.mxu0 }
 0x21c   : > { %v2083_v46 = vpop.f32.mrf.mxu1  ;;  %6390 = vmatprep.mubr.msk.f32.mxu0 %vm1260_vm0, %v7767_v10  ;;  %6420 = vmatprep.mubr.msk.f32.mxu1 %vm1260_vm0, %v7767_v10  ;;  %vm2257_vm8 = vcmp.ge.f32.partialorder %v2241_v36, 0.0  ;;  %v1905_v37 = vadd.f32 %v1904_v30, %v7738_v1  ;;  %v2691_v30 = vld [vmem:[%s8798_s8 + $0xb8] sm:$0xff] }
 0x21d   : > { %v2272_v4 = vmul.f32 0.01, %v2240_v3  ;;  %v2243_v31 = vadd.f32 %v2202_v54, %v2131_v28  ;;  %v2130_v48 = vadd.f32 %v2083_v46, %v1875_v24  ;;  %vm2256_vm9 = vcmp.ge.f32.partialorder %v2240_v3, 0.0  ;;  %6391 = vmatmul.mubr.msk.f32.gmra.mxu0 %vm1260_vm0, %v7775_v9  ;;  %6421 = vmatmul.mubr.msk.f32.gmra.mxu1 %vm1260_vm0, %v7775_v9 }
 0x21e   : > { %v6371_v6 = vpop.f32.mrf.mxu1  ;;  %v7790_v54 = vsel %vm2257_vm8, %v2241_v36, %v2273_v40 }
 0x21f   : > { %v2242_v11 = vadd.f32 %v2197_v7, %v2130_v48  ;;  %v2133_v26 = vadd.f32 %v6371_v6, %v1890_v38  ;;  %v7782_v0 = vsel %vm2256_vm9, %v2240_v3, %v2272_v4  ;;  %v2275_v16 = vmul.f32 0.01, %v2243_v31  ;;  %v2232_v3 = vpop.permute.xlu1 %2231  ;;  %v2227_v4 = vpop.permute.xlu0 %2226 }
 0x220   : > { %v2093_v29 = vpop.f32.mrf.mxu1  ;;  %6393 = vmatprep.mubr.msk.f32.mxu0 %vm1260_vm0, %v7782_v0  ;;  %6423 = vmatprep.mubr.msk.f32.mxu1 %vm1260_vm0, %v7782_v0  ;;  %vm2259_vm10 = vcmp.ge.f32.partialorder %v2243_v31, 0.0 }
 0x221   : > { %v2274_v8 = vmul.f32 0.01, %v2242_v11  ;;  %v2245_v17 = vadd.f32 %v2212_v62, %v2133_v26  ;;  %v2132_v19 = vadd.f32 %v2093_v29, %v1885_v13  ;;  %vm2258_vm11 = vcmp.ge.f32.partialorder %v2242_v11, 0.0  ;;  %6394 = vmatmul.mubr.msk.f32.gmra.mxu0 %vm1260_vm0, %v7790_v54  ;;  %6424 = vmatmul.mubr.msk.f32.gmra.mxu1 %vm1260_vm0, %v7790_v54  ;;  %v2678_v29 = vld [vmem:[%s8798_s8 + $0x50] sm:$0xff] }
 0x222   : > { %v6374_v12 = vpop.f32.mrf.mxu1  ;;  %v2291_v25 = vsel %vm2259_vm10, %v2243_v31, %v2275_v16  ;;  %v2677_v16 = vld [vmem:[%s8798_s8 + $0x48] sm:$0xff] }
 0x223   : > { %v2244_v7 = vadd.f32 %v2207_v2, %v2132_v19  ;;  %v2135_v14 = vadd.f32 %v6374_v12, %v1900_v27  ;;  %v7797_v22 = vsel %vm2258_vm11, %v2242_v11, %v2274_v8  ;;  %v2277_v32 = vmul.f32 0.01, %v2245_v17  ;;  %v2668_v27 = vld [vmem:[%s8798_s8] sm:$0xff]  ;;  %v2682_v19 = vld [vmem:[%s8798_s8 + $0x70] sm:$0xff] }
 0x224   : > { %v2103_v33 = vpop.f32.mrf.mxu1  ;;  %6396 = vmatprep.mubr.msk.f32.mxu0 %vm1260_vm0, %v7797_v22  ;;  %6426 = vmatprep.mubr.msk.f32.mxu1 %vm1260_vm0, %v7797_v22  ;;  %vm2261_vm12 = vcmp.ge.f32.partialorder %v2245_v17, 0.0  ;;  %v2680_v8 = vld [vmem:[%s8798_s8 + $0x60] sm:$0xff] }
 0x225   : > { %v2276_v35 = vmul.f32 0.01, %v2244_v7  ;;  %v2247_v18 = vadd.f32 %v2222_v20, %v2135_v14  ;;  %v2134_v36 = vadd.f32 %v2103_v33, %v1895_v58  ;;  %vm2260_vm13 = vcmp.ge.f32.partialorder %v2244_v7, 0.0  ;;  %6397 = vmatmul.mubr.msk.f32.gmra.mxu0 %vm1260_vm0, %v2291_v25  ;;  %6427 = vmatmul.mubr.msk.f32.gmra.mxu1 %vm1260_vm0, %v2291_v25  ;;  %v2683_v20 = vld [vmem:[%s8798_s8 + $0x78] sm:$0xff]  ;;  %v2684_v12 = vld [vmem:[%s8798_s8 + $0x80] sm:$0xff]  ;;  %v2686_v58 = vld [vmem:[%s8798_s8 + $0x90] sm:$0xff] }
 0x226   : > { %v6377_v21 = vpop.f32.mrf.mxu1  ;;  %v2293_v39 = vsel %vm2261_vm12, %v2245_v17, %v2277_v32  ;;  %v2681_v17 = vld [vmem:[%s8798_s8 + $0x68] sm:$0xff]  ;;  %v2688_v14 = vld [vmem:[%s8798_s8 + $0xa0] sm:$0xff] }
 0x227   : > { %v2246_v60 = vadd.f32 %v2217_v56, %v2134_v36  ;;  %v2137_v62 = vadd.f32 %v6377_v21, %v1910_v23  ;;  %v2292_v24 = vsel %vm2260_vm13, %v2244_v7, %v2276_v35  ;;  %v2279_v28 = vmul.f32 0.01, %v2247_v18  ;;  %v2685_v56 = vld [vmem:[%s8798_s8 + $0x88] sm:$0xff]  ;;  %v2687_v7 = vld [vmem:[%s8798_s8 + $0x98] sm:$0xff]  ;;  %v2690_v23 = vld [vmem:[%s8798_s8 + $0xb0] sm:$0xff] }
 0x228   : > { %v2113_v38 = vpop.f32.mrf.mxu1  ;;  %6399 = vmatprep.mubr.msk.f32.mxu0 %vm1260_vm0, %v2292_v24  ;;  %6429 = vmatprep.mubr.msk.f32.mxu1 %vm1260_vm0, %v2292_v24  ;;  %vm2263_vm15 = vcmp.ge.f32.partialorder %v2247_v18, 0.0  ;;  %v2692_v32 = vld [vmem:[%s8798_s8 + $0xc0] sm:$0xff]  ;;  %v2693_v33 = vld [vmem:[%s8798_s8 + $0xc8] sm:$0xff]  ;;  %v2695_v35 = vld [vmem:[%s8798_s8 + $0xd8] sm:$0xff] }
 0x229   : > { %v2278_v40 = vmul.f32 0.01, %v2246_v60  ;;  %v2249_v46 = vadd.f32 %v2232_v3, %v2137_v62  ;;  %v2136_v2 = vadd.f32 %v2113_v38, %v1905_v37  ;;  %vm2262_vm14 = vcmp.ge.f32.partialorder %v2246_v60, 0.0  ;;  %6400 = vmatmul.mubr.msk.f32.gmra.mxu0 %vm1260_vm0, %v2293_v39  ;;  %6430 = vmatmul.mubr.msk.f32.gmra.mxu1 %vm1260_vm0, %v2293_v39  ;;  %v2697_v36 = vld [vmem:[%s8798_s8 + $0xe8] sm:$0xff]  ;;  %v2698_v21 = vld [vmem:[%s8798_s8 + $0xf0] sm:$0xff]  ;;  %v2699_v37 = vld [vmem:[%s8798_s8 + $0xf8] sm:$0xff] }
 0x22a   : > { %v2295_v13 = vsel %vm2263_vm15, %v2247_v18, %v2279_v28  ;;  %v2696_v18 = vld [vmem:[%s8798_s8 + $0xe0] sm:$0xff] }
 0x22b   : > { %v2281_v1 = vmul.f32 0.01, %v2249_v46  ;;  %v2248_v31 = vadd.f32 %v2227_v4, %v2136_v2  ;;  %v2294_v48 = vsel %vm2262_vm14, %v2246_v60, %v2278_v40  ;;  %vm2265_vm1 = vcmp.ge.f32.partialorder %v2249_v46, 0.0  ;;  %v2636_v60 = vld [vmem:[%s8800_s3] sm:$0xff] }
 0x22c   : > { %6402 = vmatprep.mubr.msk.f32.mxu0 %vm1260_vm0, %v2294_v48  ;;  %6432 = vmatprep.mubr.msk.f32.mxu1 %vm1260_vm0, %v2294_v48  ;;  %v3150_v62 = vld [vmem:[%s8820_s1] sm:$0xff] }
 0x22d   : > { %v2280_v6 = vmul.f32 0.01, %v2248_v31  ;;  %v2297_v11 = vsel %vm2265_vm1, %v2249_v46, %v2281_v1  ;;  %vm2264_vm2 = vcmp.ge.f32.partialorder %v2248_v31, 0.0  ;;  %6403 = vmatmul.mubr.msk.f32.gmra.mxu0 %vm1260_vm0, %v2295_v13  ;;  %6433 = vmatmul.mubr.msk.f32.gmra.mxu1 %vm1260_vm0, %v2295_v13 }
 0x22e   : > { %6438 = vmatprep.subr.mxu0 %v2297_v11 }
 0x22f   : > { %v2296_v26 = vsel %vm2264_vm2, %v2248_v31, %v2280_v6  ;;  %6439 = vmatpush3.msra.mxu0 %v2297_v11 }
 0x230   : > { %6405 = vmatprep.mubr.msk.f32.mxu0 %vm1260_vm0, %v2296_v26  ;;  %6435 = vmatprep.mubr.msk.f32.mxu1 %vm1260_vm0, %v2296_v26 }
 0x231   : > { %6440 = vmatprep.subr.mxu0 %v2296_v26  ;;  %6406 = vmatmul.mubr.msk.f32.gmra.mxu0 %vm1260_vm0, %v2297_v11 }
 0x232   : > { %6436 = vmatmul.mubr.msk.f32.gmra.mxu1 %vm1260_vm0, %v2297_v11  ;;  %6441 = vmatpush3.msra.mxu0 %v2296_v26 }
 0x233   : > { %6470 = vmatprep.mubr.f32.mxu0 %v2668_v27  ;;  %6442 = vmatprep.subr.mxu0 %v2295_v13 }
 0x234   : > { %6443 = vmatpush3.msra.mxu0 %v2295_v13  ;;  %6550 = vmatprep.mubr.f32.mxu1 %v2636_v60  ;;  %v2645_v60 = vld [vmem:[%s8800_s3 + $0x48] sm:$0xff] }
 0x235   : > { %6444 = vmatprep.subr.mxu0 %v2294_v48 }
 0x236   : > { %6445 = vmatpush3.msra.mxu0 %v2294_v48 }
 0x237   : > { %6446 = vmatprep.subr.mxu0 %v2293_v39 }
 0x238   : > { %6447 = vmatpush3.msra.mxu0 %v2293_v39 }
 0x239   : > { %6448 = vmatprep.subr.mxu0 %v2292_v24 }
 0x23a   : > { %6449 = vmatpush3.msra.mxu0 %v2292_v24 }
 0x23b   : > { %6450 = vmatprep.subr.mxu0 %v2291_v25 }
 0x23c   : > { %6451 = vmatpush3.msra.mxu0 %v2291_v25  ;;  %v2694_v25 = vld [vmem:[%s8798_s8 + $0xd0] sm:$0xff] }
 0x23d   : > { %6452 = vmatprep.subr.mxu0 %v7797_v22 }
 0x23e   : > { %6453 = vmatpush3.msra.mxu0 %v7797_v22  ;;  %v2689_v22 = vld [vmem:[%s8798_s8 + $0xa8] sm:$0xff] }
 0x23f   : > { %6454 = vmatprep.subr.mxu0 %v7790_v54 }
 0x240   : > { %6455 = vmatpush3.msra.mxu0 %v7790_v54  ;;  %v2679_v54 = vld [vmem:[%s8798_s8 + $0x58] sm:$0xff] }
 0x241   : > { %6456 = vmatprep.subr.mxu0 %v7782_v0 }
 0x242   : > { %6457 = vmatpush3.msra.mxu0 %v7782_v0  ;;  %v2673_v0 = vld [vmem:[%s8798_s8 + $0x28] sm:$0xff] }
 0x243   : > { %6458 = vmatprep.subr.mxu0 %v7775_v9 }
 0x244   : > { %6459 = vmatpush3.msra.mxu0 %v7775_v9  ;;  %v2669_v9 = vld [vmem:[%s8798_s8 + $0x8] sm:$0xff] }
 0x245   : > { %6460 = vmatprep.subr.mxu0 %v7767_v10 }
 0x246   : > { %6461 = vmatpush3.msra.mxu0 %v7767_v10  ;;  %v2670_v10 = vld [vmem:[%s8798_s8 + $0x10] sm:$0xff] }
 0x247   : > { %6462 = vmatprep.subr.mxu0 %v7756_v34 }
 0x248   : > { %6463 = vmatpush3.msra.mxu0 %v7756_v34  ;;  %v2671_v34 = vld [vmem:[%s8798_s8 + $0x18] sm:$0xff] }
 0x249   : > { %6464 = vmatprep.subr.mxu0 %v7754_v5 }
 0x24a   : > { %6465 = vmatpush3.msra.mxu0 %v7754_v5  ;;  %v2672_v5 = vld [vmem:[%s8798_s8 + $0x20] sm:$0xff] }
 0x24b   : > { %6466 = vmatprep.subr.mxu0 %v7742_v52 }
 0x24c   : > { %6467 = vmatpush3.msra.mxu0 %v7742_v52  ;;  %v2674_v52 = vld [vmem:[%s8798_s8 + $0x30] sm:$0xff] }
 0x24d   : > { %6468 = vmatprep.subr.mxu0 %v7740_v50 }
 0x24e   : > { %6469 = vmatpush3.msra.mxu0 %v7740_v50  ;;  %v2676_v50 = vld [vmem:[%s8798_s8 + $0x40] sm:$0xff] }
 0x24f   : > { %6471 = vmatmul.mubr.f32.vlgmr.msra.gmra.mxu0 %v2669_v9 }
 0x250   : > { %6473 = vmatprep.mubr.f32.mxu0 %v2670_v10 }
 0x253   : > { %6474 = vmatmul.mubr.f32.gmra.mxu0 %v2671_v34 }
 0x254   : > { %6476 = vmatprep.mubr.f32.mxu0 %v2672_v5 }
 0x257   : > { %6477 = vmatmul.mubr.f32.gmra.mxu0 %v2673_v0 }
 0x258   : > { %6479 = vmatprep.mubr.f32.mxu0 %v2674_v52 }
 0x25b   : > { %6480 = vmatmul.mubr.f32.gmra.mxu0 %v2675_v15 }
 0x25c   : > { %6482 = vmatprep.mubr.f32.mxu0 %v2676_v50 }
 0x25f   : > { %6483 = vmatmul.mubr.f32.gmra.mxu0 %v2677_v16 }
 0x260   : > { %6485 = vmatprep.mubr.f32.mxu0 %v2678_v29 }
 0x263   : > { %6486 = vmatmul.mubr.f32.gmra.mxu0 %v2679_v54 }
 0x264   : > { %6488 = vmatprep.mubr.f32.mxu0 %v2680_v8 }
 0x267   : > { %6489 = vmatmul.mubr.f32.gmra.mxu0 %v2681_v17 }
 0x268   : > { %6491 = vmatprep.mubr.f32.mxu0 %v2682_v19 }
 0x26b   : > { %6492 = vmatmul.mubr.f32.gmra.mxu0 %v2683_v20 }
 0x26c   : > { %6494 = vmatprep.mubr.f32.mxu0 %v2684_v12  ;;  %v2637_v12 = vld [vmem:[%s8800_s3 + $0x8] sm:$0xff] }
 0x26f   : > { %6495 = vmatmul.mubr.f32.gmra.mxu0 %v2685_v56  ;;  %v3151_v56 = vld [vmem:[%s8820_s1 + $0x8] sm:$0xff] }
 0x270   : > { %6497 = vmatprep.mubr.f32.mxu0 %v2686_v58  ;;  %v2638_v58 = vld [vmem:[%s8800_s3 + $0x10] sm:$0xff] }
 0x273   : > { %6498 = vmatmul.mubr.f32.gmra.mxu0 %v2687_v7  ;;  %v3152_v7 = vld [vmem:[%s8820_s1 + $0x10] sm:$0xff] }
 0x274   : > { %6500 = vmatprep.mubr.f32.mxu0 %v2688_v14  ;;  %v2639_v14 = vld [vmem:[%s8800_s3 + $0x18] sm:$0xff] }
 0x277   : > { %6501 = vmatmul.mubr.f32.gmra.mxu0 %v2689_v22  ;;  %v3153_v22 = vld [vmem:[%s8820_s1 + $0x18] sm:$0xff] }
 0x278   : > { %6503 = vmatprep.mubr.f32.mxu0 %v2690_v23  ;;  %v2640_v23 = vld [vmem:[%s8800_s3 + $0x20] sm:$0xff] }
 0x27b   : > { %6504 = vmatmul.mubr.f32.gmra.mxu0 %v2691_v30  ;;  %v3154_v30 = vld [vmem:[%s8820_s1 + $0x20] sm:$0xff] }
 0x27c   : > { %6506 = vmatprep.mubr.f32.mxu0 %v2692_v32  ;;  %v2641_v32 = vld [vmem:[%s8800_s3 + $0x28] sm:$0xff] }
 0x27f   : > { %6507 = vmatmul.mubr.f32.gmra.mxu0 %v2693_v33  ;;  %v3155_v33 = vld [vmem:[%s8820_s1 + $0x28] sm:$0xff] }
 0x280   : > { %6509 = vmatprep.mubr.f32.mxu0 %v2694_v25  ;;  %v2642_v25 = vld [vmem:[%s8800_s3 + $0x30] sm:$0xff] }
 0x283   : > { %6510 = vmatmul.mubr.f32.gmra.mxu0 %v2695_v35  ;;  %v3156_v35 = vld [vmem:[%s8820_s1 + $0x30] sm:$0xff] }
 0x284   : > { %6512 = vmatprep.mubr.f32.mxu0 %v2696_v18  ;;  %v2643_v18 = vld [vmem:[%s8800_s3 + $0x38] sm:$0xff] }
 0x287   : > { %6513 = vmatmul.mubr.f32.gmra.mxu0 %v2697_v36  ;;  %v3157_v36 = vld [vmem:[%s8820_s1 + $0x38] sm:$0xff] }
 0x288   : > { %6515 = vmatprep.mubr.f32.mxu0 %v2698_v21  ;;  %v2644_v21 = vld [vmem:[%s8800_s3 + $0x40] sm:$0xff] }
 0x28b   : > { %6516 = vmatmul.mubr.f32.gmra.mxu0 %v2699_v37  ;;  %v3158_v37 = vld [vmem:[%s8820_s1 + $0x40] sm:$0xff] }
 0x28c   : > { %6630 = vmatprep.mubr.f32.mxu0 %v3150_v62  ;;  %v3159_v62 = vld [vmem:[%s8820_s1 + $0x48] sm:$0xff] }
 0x2d5   : > { %v7873_v24 = vpop.f32.mrf.mxu0  ;;  %v7875_v3 = vpop.f32.mrf.mxu1 }
 0x2d7   : > { %v7877_v28 = vpop.f32.mrf.mxu0  ;;  %v7879_v38 = vpop.f32.mrf.mxu1 }
 0x2d9   : > { %v7881_v39 = vpop.f32.mrf.mxu0  ;;  %v7883_v40 = vpop.f32.mrf.mxu1 }
 0x2db   : > { %v7885_v46 = vpop.f32.mrf.mxu0  ;;  %v7887_v2 = vpop.f32.mrf.mxu1 }
 0x2dd   : > { %v7889_v4 = vpop.f32.mrf.mxu0  ;;  %v7891_v1 = vpop.f32.mrf.mxu1 }
 0x2df   : > { %v7893_v31 = vpop.f32.mrf.mxu0  ;;  %v7895_v48 = vpop.f32.mrf.mxu1 }
 0x2e1   : > { %v6395_v6 = vpop.f32.mrf.mxu0  ;;  %v6425_v13 = vpop.f32.mrf.mxu1 }
 0x2e3   : > { %v2442_v11 = vpop.f32.mrf.mxu0  ;;  %v2587_v26 = vpop.f32.mrf.mxu1 }
 0x2e5   : > { %v6398_v27 = vpop.f32.mrf.mxu0  ;;  %v6428_v9 = vpop.f32.mrf.mxu1 }
 0x2e7   : > { %v2452_v10 = vpop.f32.mrf.mxu0  ;;  %v2597_v34 = vpop.f32.mrf.mxu1 }
 0x2e9   : > { %v6401_v5 = vpop.f32.mrf.mxu0  ;;  %v6431_v0 = vpop.f32.mrf.mxu1 }
 0x2eb   : > { %v2462_v52 = vpop.f32.mrf.mxu0  ;;  %v2607_v15 = vpop.f32.mrf.mxu1 }
 0x2ed   : > { %v6404_v50 = vpop.f32.mrf.mxu0  ;;  %v6434_v16 = vpop.f32.mrf.mxu1 }
 0x2ef   : > { %v2472_v29 = vpop.f32.mrf.mxu0  ;;  %v2617_v54 = vpop.f32.mrf.mxu1 }
 0x2f1   : > { %v6407_v8 = vpop.f32.mrf.mxu0 }
 0x2f2   : > { %v6437_v17 = vpop.f32.mrf.mxu1  ;;  %6518 = vmatprep.subr.mxu1 %v6407_v8 }
 0x2f3   : > { %6598 = vmatprep.subr.mxu0 %v6437_v17  ;;  %v2482_v19 = vpop.f32.mrf.mxu0  ;;  %6519 = vmatpush3.msra.mxu1 %v6407_v8  ;;  %v2660_v8 = vld [vmem:[%s8800_s3 + $0xc0] sm:$0xff] }
 0x2f4   : > { %v2627_v20 = vpop.f32.mrf.mxu1  ;;  %6599 = vmatpush3.msra.mxu0 %v6437_v17  ;;  %6520 = vmatprep.subr.mxu1 %v2482_v19  ;;  %v3174_v17 = vld [vmem:[%s8820_s1 + $0xc0] sm:$0xff] }
 0x2f5   : > { %6600 = vmatprep.subr.mxu0 %v2627_v20  ;;  %6521 = vmatpush3.msra.mxu1 %v2482_v19  ;;  %v2661_v19 = vld [vmem:[%s8800_s3 + $0xc8] sm:$0xff] }
 0x2f6   : > { %6601 = vmatpush3.msra.mxu0 %v2627_v20  ;;  %6522 = vmatprep.subr.mxu1 %v6404_v50  ;;  %v3175_v20 = vld [vmem:[%s8820_s1 + $0xc8] sm:$0xff] }
 0x2f7   : > { %6602 = vmatprep.subr.mxu0 %v6434_v16  ;;  %6523 = vmatpush3.msra.mxu1 %v6404_v50  ;;  %v2658_v50 = vld [vmem:[%s8800_s3 + $0xb0] sm:$0xff] }
 0x2f8   : > { %6603 = vmatpush3.msra.mxu0 %v6434_v16  ;;  %6524 = vmatprep.subr.mxu1 %v2472_v29  ;;  %v3172_v16 = vld [vmem:[%s8820_s1 + $0xb0] sm:$0xff] }
 0x2f9   : > { %6604 = vmatprep.subr.mxu0 %v2617_v54  ;;  %6525 = vmatpush3.msra.mxu1 %v2472_v29  ;;  %v2659_v29 = vld [vmem:[%s8800_s3 + $0xb8] sm:$0xff] }
 0x2fa   : > { %6605 = vmatpush3.msra.mxu0 %v2617_v54  ;;  %6526 = vmatprep.subr.mxu1 %v6401_v5  ;;  %v3173_v54 = vld [vmem:[%s8820_s1 + $0xb8] sm:$0xff] }
 0x2fb   : > { %6606 = vmatprep.subr.mxu0 %v6431_v0  ;;  %6527 = vmatpush3.msra.mxu1 %v6401_v5  ;;  %v2656_v5 = vld [vmem:[%s8800_s3 + $0xa0] sm:$0xff] }
 0x2fc   : > { %6607 = vmatpush3.msra.mxu0 %v6431_v0  ;;  %6528 = vmatprep.subr.mxu1 %v2462_v52  ;;  %v3170_v0 = vld [vmem:[%s8820_s1 + $0xa0] sm:$0xff] }
 0x2fd   : > { %6608 = vmatprep.subr.mxu0 %v2607_v15  ;;  %6529 = vmatpush3.msra.mxu1 %v2462_v52  ;;  %v2657_v52 = vld [vmem:[%s8800_s3 + $0xa8] sm:$0xff] }
 0x2fe   : > { %6609 = vmatpush3.msra.mxu0 %v2607_v15  ;;  %6530 = vmatprep.subr.mxu1 %v6398_v27  ;;  %v3171_v15 = vld [vmem:[%s8820_s1 + $0xa8] sm:$0xff] }
 0x2ff   : > { %6610 = vmatprep.subr.mxu0 %v6428_v9  ;;  %6531 = vmatpush3.msra.mxu1 %v6398_v27  ;;  %v2654_v27 = vld [vmem:[%s8800_s3 + $0x90] sm:$0xff] }
 0x300   : > { %6611 = vmatpush3.msra.mxu0 %v6428_v9  ;;  %6532 = vmatprep.subr.mxu1 %v2452_v10  ;;  %v3168_v9 = vld [vmem:[%s8820_s1 + $0x90] sm:$0xff] }
 0x301   : > { %6612 = vmatprep.subr.mxu0 %v2597_v34  ;;  %6533 = vmatpush3.msra.mxu1 %v2452_v10  ;;  %v2655_v10 = vld [vmem:[%s8800_s3 + $0x98] sm:$0xff] }
 0x302   : > { %6613 = vmatpush3.msra.mxu0 %v2597_v34  ;;  %6534 = vmatprep.subr.mxu1 %v6395_v6  ;;  %v3169_v34 = vld [vmem:[%s8820_s1 + $0x98] sm:$0xff] }
 0x303   : > { %6614 = vmatprep.subr.mxu0 %v6425_v13  ;;  %6535 = vmatpush3.msra.mxu1 %v6395_v6  ;;  %v2652_v6 = vld [vmem:[%s8800_s3 + $0x80] sm:$0xff] }
 0x304   : > { %6615 = vmatpush3.msra.mxu0 %v6425_v13  ;;  %6536 = vmatprep.subr.mxu1 %v2442_v11  ;;  %v3166_v13 = vld [vmem:[%s8820_s1 + $0x80] sm:$0xff] }
 0x305   : > { %6616 = vmatprep.subr.mxu0 %v2587_v26  ;;  %6537 = vmatpush3.msra.mxu1 %v2442_v11  ;;  %v2653_v11 = vld [vmem:[%s8800_s3 + $0x88] sm:$0xff] }
 0x306   : > { %6617 = vmatpush3.msra.mxu0 %v2587_v26  ;;  %6538 = vmatprep.subr.mxu1 %v7889_v4  ;;  %v3167_v26 = vld [vmem:[%s8820_s1 + $0x88] sm:$0xff] }
 0x307   : > { %6618 = vmatprep.subr.mxu0 %v7891_v1  ;;  %6539 = vmatpush3.msra.mxu1 %v7889_v4  ;;  %v2650_v4 = vld [vmem:[%s8800_s3 + $0x70] sm:$0xff] }
 0x308   : > { %6619 = vmatpush3.msra.mxu0 %v7891_v1  ;;  %6540 = vmatprep.subr.mxu1 %v7893_v31  ;;  %v3164_v1 = vld [vmem:[%s8820_s1 + $0x70] sm:$0xff] }
 0x309   : > { %6620 = vmatprep.subr.mxu0 %v7895_v48  ;;  %6541 = vmatpush3.msra.mxu1 %v7893_v31  ;;  %v2651_v31 = vld [vmem:[%s8800_s3 + $0x78] sm:$0xff] }
 0x30a   : > { %6621 = vmatpush3.msra.mxu0 %v7895_v48  ;;  %6542 = vmatprep.subr.mxu1 %v7881_v39  ;;  %v3165_v48 = vld [vmem:[%s8820_s1 + $0x78] sm:$0xff] }
 0x30b   : > { %6622 = vmatprep.subr.mxu0 %v7883_v40  ;;  %6543 = vmatpush3.msra.mxu1 %v7881_v39  ;;  %v2648_v39 = vld [vmem:[%s8800_s3 + $0x60] sm:$0xff] }
 0x30c   : > { %6623 = vmatpush3.msra.mxu0 %v7883_v40  ;;  %6544 = vmatprep.subr.mxu1 %v7885_v46  ;;  %v3162_v40 = vld [vmem:[%s8820_s1 + $0x60] sm:$0xff] }
 0x30d   : > { %6624 = vmatprep.subr.mxu0 %v7887_v2  ;;  %6545 = vmatpush3.msra.mxu1 %v7885_v46  ;;  %v2649_v46 = vld [vmem:[%s8800_s3 + $0x68] sm:$0xff] }
 0x30e   : > { %6625 = vmatpush3.msra.mxu0 %v7887_v2  ;;  %6546 = vmatprep.subr.mxu1 %v7873_v24  ;;  %v3163_v2 = vld [vmem:[%s8820_s1 + $0x68] sm:$0xff] }
 0x30f   : > { %6626 = vmatprep.subr.mxu0 %v7875_v3  ;;  %6547 = vmatpush3.msra.mxu1 %v7873_v24  ;;  %v2646_v24 = vld [vmem:[%s8800_s3 + $0x50] sm:$0xff] }
 0x310   : > { %6627 = vmatpush3.msra.mxu0 %v7875_v3  ;;  %6548 = vmatprep.subr.mxu1 %v7877_v28  ;;  %v3160_v3 = vld [vmem:[%s8820_s1 + $0x50] sm:$0xff] }
 0x311   : > { %6628 = vmatprep.subr.mxu0 %v7879_v38  ;;  %6549 = vmatpush3.msra.mxu1 %v7877_v28  ;;  %v2647_v28 = vld [vmem:[%s8800_s3 + $0x58] sm:$0xff] }
 0x312   : > { %6629 = vmatpush3.msra.mxu0 %v7879_v38  ;;  %6551 = vmatmul.mubr.f32.vlgmr.msra.gmra.mxu1 %v2637_v12  ;;  %v3161_v38 = vld [vmem:[%s8820_s1 + $0x58] sm:$0xff]  ;;  %v2662_v12 = vld [vmem:[%s8800_s3 + $0xd0] sm:$0xff] }
 0x313   : > { %6631 = vmatmul.mubr.f32.vlgmr.msra.gmra.mxu0 %v3151_v56  ;;  %6553 = vmatprep.mubr.f32.mxu1 %v2638_v58  ;;  %v3176_v56 = vld [vmem:[%s8820_s1 + $0xd0] sm:$0xff]  ;;  %v2663_v58 = vld [vmem:[%s8800_s3 + $0xd8] sm:$0xff] }
 0x314   : > { %6633 = vmatprep.mubr.f32.mxu0 %v3152_v7  ;;  %v3177_v7 = vld [vmem:[%s8820_s1 + $0xd8] sm:$0xff] }
 0x316   : > { %6554 = vmatmul.mubr.f32.gmra.mxu1 %v2639_v14  ;;  %v2664_v14 = vld [vmem:[%s8800_s3 + $0xe0] sm:$0xff] }
 0x317   : > { %6634 = vmatmul.mubr.f32.gmra.mxu0 %v3153_v22  ;;  %6556 = vmatprep.mubr.f32.mxu1 %v2640_v23  ;;  %v3178_v22 = vld [vmem:[%s8820_s1 + $0xe0] sm:$0xff]  ;;  %v2665_v23 = vld [vmem:[%s8800_s3 + $0xe8] sm:$0xff] }
 0x318   : > { %6636 = vmatprep.mubr.f32.mxu0 %v3154_v30  ;;  %v3179_v30 = vld [vmem:[%s8820_s1 + $0xe8] sm:$0xff] }
 0x31a   : > { %6557 = vmatmul.mubr.f32.gmra.mxu1 %v2641_v32  ;;  %v2666_v32 = vld [vmem:[%s8800_s3 + $0xf0] sm:$0xff] }
 0x31b   : > { %6637 = vmatmul.mubr.f32.gmra.mxu0 %v3155_v33  ;;  %6559 = vmatprep.mubr.f32.mxu1 %v2642_v25  ;;  %v3180_v33 = vld [vmem:[%s8820_s1 + $0xf0] sm:$0xff]  ;;  %v2667_v25 = vld [vmem:[%s8800_s3 + $0xf8] sm:$0xff]  ;;  %s8872_s3 = sld [smem:[#allocation21_spill]] }
 0x31c   : > { %6639 = vmatprep.mubr.f32.mxu0 %v3156_v35  ;;  %v3181_v35 = vld [vmem:[%s8820_s1 + $0xf8] sm:$0xff]  ;;  %s8871_s1 = sld [smem:[#allocation17_spill]] }
 0x31e   : > { %6560 = vmatmul.mubr.f32.gmra.mxu1 %v2643_v18  ;;  %v6472_v18 = vpop.f32.mrf.mxu0 }
 0x31f   : > { %6640 = vmatmul.mubr.f32.gmra.mxu0 %v3157_v36  ;;  %6562 = vmatprep.mubr.f32.mxu1 %v2644_v21 }
 0x320   : > { %6642 = vmatprep.mubr.f32.mxu0 %v3158_v37  ;;  %v2766_v36 = vpop.f32.mrf.mxu0 }
 0x322   : > { %6563 = vmatmul.mubr.f32.gmra.mxu1 %v2645_v60  ;;  %v6475_v21 = vpop.f32.mrf.mxu0 }
 0x323   : > { %6643 = vmatmul.mubr.f32.gmra.mxu0 %v3159_v62  ;;  %6565 = vmatprep.mubr.f32.mxu1 %v2646_v24 }
 0x324   : > { %6645 = vmatprep.mubr.f32.mxu0 %v3160_v3  ;;  %v2776_v37 = vpop.f32.mrf.mxu0 }
 0x326   : > { %6566 = vmatmul.mubr.f32.gmra.mxu1 %v2647_v28  ;;  %v6478_v60 = vpop.f32.mrf.mxu0 }
 0x327   : > { %6646 = vmatmul.mubr.f32.gmra.mxu0 %v3161_v38  ;;  %6568 = vmatprep.mubr.f32.mxu1 %v2648_v39 }
 0x328   : > { %6648 = vmatprep.mubr.f32.mxu0 %v3162_v40  ;;  %v2786_v62 = vpop.f32.mrf.mxu0 }
 0x32a   : > { %6569 = vmatmul.mubr.f32.gmra.mxu1 %v2649_v46  ;;  %v6481_v24 = vpop.f32.mrf.mxu0 }
 0x32b   : > { %6649 = vmatmul.mubr.f32.gmra.mxu0 %v3163_v2  ;;  %6571 = vmatprep.mubr.f32.mxu1 %v2650_v4 }
 0x32c   : > { %6651 = vmatprep.mubr.f32.mxu0 %v3164_v1  ;;  %v2796_v3 = vpop.f32.mrf.mxu0 }
 0x32e   : > { %6572 = vmatmul.mubr.f32.gmra.mxu1 %v2651_v31  ;;  %v6484_v28 = vpop.f32.mrf.mxu0 }
 0x32f   : > { %6652 = vmatmul.mubr.f32.gmra.mxu0 %v3165_v48  ;;  %6574 = vmatprep.mubr.f32.mxu1 %v2652_v6 }
 0x330   : > { %6654 = vmatprep.mubr.f32.mxu0 %v3166_v13  ;;  %v7983_v38 = vpop.f32.mrf.mxu0 }
 0x332   : > { %6575 = vmatmul.mubr.f32.gmra.mxu1 %v2653_v11  ;;  %v7985_v39 = vpop.f32.mrf.mxu0 }
 0x333   : > { %6655 = vmatmul.mubr.f32.gmra.mxu0 %v3167_v26  ;;  %6577 = vmatprep.mubr.f32.mxu1 %v2654_v27 }
 0x334   : > { %6657 = vmatprep.mubr.f32.mxu0 %v3168_v9  ;;  %v7987_v40 = vpop.f32.mrf.mxu0 }
 0x336   : > { %6578 = vmatmul.mubr.f32.gmra.mxu1 %v2655_v10  ;;  %v7989_v46 = vpop.f32.mrf.mxu0  ;;  %v8757_v10 = vmov 0.0  }
 0x337   : > { %6658 = vmatmul.mubr.f32.gmra.mxu0 %v3169_v34  ;;  %6580 = vmatprep.mubr.f32.mxu1 %v2656_v5 }
 0x338   : > { %6660 = vmatprep.mubr.f32.mxu0 %v3170_v0  ;;  %v7991_v2 = vpop.f32.mrf.mxu0  ;;  %6745 = vmatprep.subr.mxu0 %v8757_v10  ;;  %v3823_v10 = vld [vmem:[%s8823_s11] sm:$0xff] }
 0x33a   : > { %6581 = vmatmul.mubr.f32.gmra.mxu1 %v2657_v52  ;;  %v7993_v4 = vpop.f32.mrf.mxu0 }
 0x33b   : > { %6661 = vmatmul.mubr.f32.gmra.mxu0 %v3171_v15  ;;  %6583 = vmatprep.mubr.f32.mxu1 %v2658_v50  ;;  %8821 = vst [vmem:[#allocation45_spill] sm:$0xff] %v7993_v4 }
 0x33c   : > { %6663 = vmatprep.mubr.f32.mxu0 %v3172_v16  ;;  %v7995_v1 = vpop.f32.mrf.mxu0 }
 0x33d   : > { %8822 = vst [vmem:[#allocation46_spill] sm:$0xff] %v7995_v1 }
 0x33e   : > { %6584 = vmatmul.mubr.f32.gmra.mxu1 %v2659_v29  ;;  %v7997_v31 = vpop.f32.mrf.mxu0 }
 0x33f   : > { %6664 = vmatmul.mubr.f32.gmra.mxu0 %v3173_v54  ;;  %6586 = vmatprep.mubr.f32.mxu1 %v2660_v8 }
 0x340   : > { %6666 = vmatprep.mubr.f32.mxu0 %v3174_v17  ;;  %v7999_v48 = vpop.f32.mrf.mxu0 }
 0x342   : > { %6587 = vmatmul.mubr.f32.gmra.mxu1 %v2661_v19  ;;  %v8001_v6 = vpop.f32.mrf.mxu0 }
 0x343   : > { %6667 = vmatmul.mubr.f32.gmra.mxu0 %v3175_v20  ;;  %6589 = vmatprep.mubr.f32.mxu1 %v2662_v12 }
 0x344   : > { %6669 = vmatprep.mubr.f32.mxu0 %v3176_v56  ;;  %v8003_v13 = vpop.f32.mrf.mxu0 }
 0x346   : > { %6590 = vmatmul.mubr.f32.gmra.mxu1 %v2663_v58  ;;  %v8005_v11 = vpop.f32.mrf.mxu0 }
 0x347   : > { %6670 = vmatmul.mubr.f32.gmra.mxu0 %v3177_v7  ;;  %6592 = vmatprep.mubr.f32.mxu1 %v2664_v14 }
 0x348   : > { %6672 = vmatprep.mubr.f32.mxu0 %v3178_v22  ;;  %v8007_v26 = vpop.f32.mrf.mxu0 }
 0x34a   : > { %6593 = vmatmul.mubr.f32.gmra.mxu1 %v2665_v23  ;;  %v8009_v27 = vpop.f32.mrf.mxu0 }
 0x34b   : > { %6673 = vmatmul.mubr.f32.gmra.mxu0 %v3179_v30  ;;  %6595 = vmatprep.mubr.f32.mxu1 %v2666_v32 }
 0x34c   : > { %6675 = vmatprep.mubr.f32.mxu0 %v3180_v33  ;;  %v8011_v9 = vpop.f32.mrf.mxu0 }
 0x34e   : > { %6596 = vmatmul.mubr.f32.gmra.mxu1 %v2667_v25  ;;  %v8014_v34 = vpop.f32.mrf.mxu0 }
 0x34f   : > { %6676 = vmatmul.mubr.f32.gmra.mxu0 %v3181_v35  ;;  %6710 = vmatprep.mubr.f32.mxu1 %v3823_v10 }
 0x350   : > { %v8016_v5 = vpop.f32.mrf.mxu0 }
 0x352   : > { %v8018_v0 = vpop.f32.mrf.mxu0 }
 0x354   : > { %v8020_v52 = vpop.f32.mrf.mxu0 }
 0x356   : > { %v8022_v15 = vpop.f32.mrf.mxu0 }
 0x358   : > { %v8024_v50 = vpop.f32.mrf.mxu0 }
 0x35a   : > { %v8026_v16 = vpop.f32.mrf.mxu0 }
 0x35c   : > { %v8028_v29 = vpop.f32.mrf.mxu0 }
 0x3d2   : > { %v6552_v54 = vpop.f32.mrf.mxu1 }
 0x3d3   : > { %v6632_v8 = vpop.f32.mrf.mxu0  ;;  %v2997_v17 = vadd.f32 %v6552_v54, %v6472_v18 }
 0x3d4   : > { %v2991_v19 = vpop.f32.mrf.mxu1 }
 0x3d5   : > { %v3248_v20 = vpop.f32.mrf.mxu0  ;;  %v8030_v12 = vadd.f32 %v6632_v8, %v2997_v17  ;;  %v2992_v56 = vadd.f32 %v2991_v19, %v2766_v36 }
 0x3d6   : > { %v6555_v58 = vpop.f32.mrf.mxu1 }
 0x3d7   : > { %8824 = vst [vmem:[#allocation47_spill] sm:$0xff] %v8030_v12  ;;  %v6635_v7 = vpop.f32.mrf.mxu0  ;;  %v8032_v14 = vadd.f32 %v3248_v20, %v2992_v56  ;;  %v3007_v22 = vadd.f32 %v6555_v58, %v6475_v21 }
 0x3d8   : > { %v3001_v23 = vpop.f32.mrf.mxu1 }
 0x3d9   : > { %8825 = vst [vmem:[#allocation48_spill] sm:$0xff] %v8032_v14  ;;  %v3258_v30 = vpop.f32.mrf.mxu0  ;;  %v8034_v32 = vadd.f32 %v6635_v7, %v3007_v22  ;;  %v3002_v33 = vadd.f32 %v3001_v23, %v2776_v37 }
 0x3da   : > { %v6558_v25 = vpop.f32.mrf.mxu1 }
 0x3db   : > { %8826 = vst [vmem:[#allocation49_spill] sm:$0xff] %v8034_v32  ;;  %v6638_v35 = vpop.f32.mrf.mxu0  ;;  %v8037_v18 = vadd.f32 %v3258_v30, %v3002_v33  ;;  %v3017_v54 = vadd.f32 %v6558_v25, %v6478_v60 }
 0x3dc   : > { %v3011_v8 = vpop.f32.mrf.mxu1 }
 0x3dd   : > { %8827 = vst [vmem:[#allocation50_spill] sm:$0xff] %v8037_v18  ;;  %v3268_v17 = vpop.f32.mrf.mxu0  ;;  %v3012_v36 = vadd.f32 %v3011_v8, %v2786_v62  ;;  %v8039_v19 = vadd.f32 %v6638_v35, %v3017_v54 }
 0x3de   : > { %v6561_v20 = vpop.f32.mrf.mxu1 }
 0x3df   : > { %8828 = vst [vmem:[#allocation51_spill] sm:$0xff] %v8039_v19  ;;  %v6641_v56 = vpop.f32.mrf.mxu0  ;;  %v8041_v21 = vadd.f32 %v3268_v17, %v3012_v36  ;;  %v3027_v58 = vadd.f32 %v6561_v20, %v6481_v24 }
 0x3e0   : > { %v3021_v7 = vpop.f32.mrf.mxu1 }
 0x3e1   : > { %8829 = vst [vmem:[#allocation52_spill] sm:$0xff] %v8041_v21  ;;  %v3278_v22 = vpop.f32.mrf.mxu0  ;;  %v8043_v37 = vadd.f32 %v6641_v56, %v3027_v58  ;;  %v3022_v23 = vadd.f32 %v3021_v7, %v2796_v3 }
 0x3e2   : > { %v6564_v61 = vpop.f32.mrf.mxu1 }
 0x3e3   : > { %8830 = vst [vmem:[#allocation53_spill] sm:$0xff] %v8043_v37  ;;  %v6644_v10 = vpop.f32.mrf.mxu0  ;;  %v8045_v30 = vadd.f32 %v3278_v22, %v3022_v23  ;;  %v3037_v60 = vadd.f32 %v6564_v61, %v6484_v28 }
 0x3e4   : > { %v3031_v33 = vpop.f32.mrf.mxu1 }
 0x3e5   : > { %8831 = vst [vmem:[#allocation54_spill] sm:$0xff] %v8045_v30  ;;  %v3288_v25 = vpop.f32.mrf.mxu0  ;;  %v8047_v62 = vadd.f32 %v6644_v10, %v3037_v60  ;;  %v3032_v35 = vadd.f32 %v3031_v33, %v7983_v38 }
 0x3e6   : > { %v6567_v54 = vpop.f32.mrf.mxu1 }
 0x3e7   : > { %8832 = vst [vmem:[#allocation55_spill] sm:$0xff] %v8047_v62  ;;  %v6647_v8 = vpop.f32.mrf.mxu0  ;;  %v3047_v24 = vadd.f32 %v6567_v54, %v7985_v39  ;;  %v8051_v17 = vadd.f32 %v3288_v25, %v3032_v35  ;;  %v8072_v35 = vpop.permute.xlu0 %3628 }
 0x3e8   : > { %v3041_v36 = vpop.f32.mrf.mxu1 }
 0x3e9   : > { %8833 = vst [vmem:[#allocation56_spill] sm:$0xff] %v8051_v17  ;;  %v3298_v20 = vpop.f32.mrf.mxu0  ;;  %v8053_v3 = vadd.f32 %v6647_v8, %v3047_v24  ;;  %v3042_v56 = vadd.f32 %v3041_v36, %v7987_v40  ;;  %v8078_v8 = vpop.permute.xlu1 %3623 }
 0x3ea   : > { %v6570_v58 = vpop.f32.mrf.mxu1 }
 0x3eb   : > { %8834 = vst [vmem:[#allocation57_spill] sm:$0xff] %v8053_v3  ;;  %v6650_v61 = vpop.f32.mrf.mxu0  ;;  %v8056_v28 = vadd.f32 %v3298_v20, %v3042_v56  ;;  %v3057_v7 = vadd.f32 %v6570_v58, %v7989_v46  ;;  %v3619_v56 = vpop.permute.xlu0 %3618 }
 0x3ec   : > { %v3051_v22 = vpop.f32.mrf.mxu1 }
 0x3ed   : > { %8835 = vst [vmem:[#allocation58_spill] sm:$0xff] %v8056_v28  ;;  %v3308_v38 = vpop.f32.mrf.mxu0  ;;  %v8059_v23 = vadd.f32 %v6650_v61, %v3057_v7  ;;  %v3052_v39 = vadd.f32 %v3051_v22, %v7991_v2  ;;  %v3614_v7 = vpop.permute.xlu1 %3613 }
 0x3ee   : > { %v8062_v10 = vpop.f32.mrf.mxu1 }
 0x3ef   : > { %8836 = vst [vmem:[#allocation59_spill] sm:$0xff] %v8059_v23  ;;  %8837 = vst [vmem:[#allocation60_spill] sm:$0xff] %v8062_v10  ;;  %v8064_v60 = vpop.f32.mrf.mxu0  ;;  %v8066_v33 = vadd.f32 %v3308_v38, %v3052_v39  ;;  %v3609_v57 = vpop.permute.xlu0 %3608 }
 0x3f0   : > { %8838 = vst [vmem:[#allocation61_spill] sm:$0xff] %v8064_v60  ;;  %v8068_v25 = vpop.f32.mrf.mxu1 }
 0x3f1   : > { %8839 = vst [vmem:[#allocation62_spill] sm:$0xff] %v8066_v33  ;;  %8840 = vst [vmem:[#allocation63_spill] sm:$0xff] %v8068_v25  ;;  %v8070_v40 = vpop.f32.mrf.mxu0  ;;  %v3604_v55 = vpop.permute.xlu1 %3603 }
 0x3f2   : > { %8841 = vst [vmem:[#allocation64_spill] sm:$0xff] %v8070_v40  ;;  %v8074_v54 = vpop.f32.mrf.mxu1 }
 0x3f3   : > { %v8076_v46 = vpop.f32.mrf.mxu0  ;;  %v3599_v44 = vpop.permute.xlu0 %3598 }
 0x3f4   : > { %8842 = vst [vmem:[#allocation65_spill] sm:$0xff] %v8076_v46  ;;  %v8080_v24 = vpop.f32.mrf.mxu1 }
 0x3f5   : > { %v8082_v2 = vpop.f32.mrf.mxu0  ;;  %v3594_v42 = vpop.permute.xlu1 %3593 }
 0x3f6   : > { %8843 = vst [vmem:[#allocation66_spill] sm:$0xff] %v8082_v2  ;;  %v6579_v36 = vpop.f32.mrf.mxu1 }
 0x3f7   : > { %v8084_v20 = vpop.f32.mrf.mxu0  ;;  %v3589_v21 = vpop.permute.xlu0 %3588 }
 0x3f8   : > { %v8086_v58 = vpop.f32.mrf.mxu1 }
 0x3f9   : > { %v8088_v61 = vpop.f32.mrf.mxu0  ;;  %v3584_v17 = vpop.permute.xlu1 %3583 }
 0x3fa   : > { %8844 = vst [vmem:[#allocation67_spill] sm:$0xff] %v8088_v61  ;;  %v6582_v22 = vpop.f32.mrf.mxu1 }
 0x3fb   : > { %v8090_v38 = vpop.f32.mrf.mxu0 }
 0x3fc   : > { %v8092_v39 = vpop.f32.mrf.mxu1 }
 0x3fd   : > { %v8094_v63 = vpop.f32.mrf.mxu0  ;;  %v3574_v61 = vpop.permute.xlu1 %3573 }
 0x3fe   : > { %v6585_v59 = vpop.f32.mrf.mxu1 }
 0x3ff   : > { %v6665_v53 = vpop.f32.mrf.mxu0 }
 0x400   : > { %v3101_v51 = vpop.f32.mrf.mxu1 }
 0x401   : > { %v3358_v49 = vpop.f32.mrf.mxu0 }
 0x402   : > { %v6588_v47 = vpop.f32.mrf.mxu1 }
 0x403   : > { %v6668_v45 = vpop.f32.mrf.mxu0  ;;  %v3117_v23 = vadd.f32 %v6588_v47, %v8014_v34 }
 0x404   : > { %v3111_v43 = vpop.f32.mrf.mxu1 }
 0x405   : > { %v3368_v41 = vpop.f32.mrf.mxu0  ;;  %v3432_v47 = vadd.f32 %v6668_v45, %v3117_v23 }
 0x406   : > { %v6591_v14 = vpop.f32.mrf.mxu1 }
 0x407   : > { %v6671_v12 = vpop.f32.mrf.mxu0  ;;  %v3127_v19 = vadd.f32 %v6591_v14, %v8018_v0  ;;  %v3579_v0 = vpop.permute.xlu0 %3578  ;;  %v3112_v14 = vadd.f32 %v3111_v43, %v8016_v5  ;;  %v3087_v43 = vadd.f32 %v6579_v36, %v8001_v6  ;;  %v3077_v36 = vadd.f32 %v8074_v54, %v7997_v31 }
 0x408   : > { %v3121_v18 = vpop.f32.mrf.mxu1  ;;  %v3564_v6 = vpop.permute.xlu1 %3563 }
 0x409   : > { %v3378_v32 = vpop.f32.mrf.mxu0  ;;  %v3122_v62 = vadd.f32 %v3121_v18, %v8020_v52  ;;  %v3434_v40 = vadd.f32 %v6671_v12, %v3127_v19  ;;  %v3102_v19 = vadd.f32 %v3101_v51, %v8011_v9  ;;  %v3431_v5 = vadd.f32 %v3368_v41, %v3112_v14  ;;  %v8846_v14 = vld [vmem:[#allocation65_spill] sm:$0xff] }
 0x40a   : > { %v6594_v30 = vpop.f32.mrf.mxu1  ;;  %v3092_v9 = vadd.f32 %v8092_v39, %v8007_v26 }
 0x40b   : > { %v6674_v37 = vpop.f32.mrf.mxu0  ;;  %v3137_v28 = vadd.f32 %v6594_v30, %v8022_v15  ;;  %v3433_v2 = vadd.f32 %v3378_v32, %v3122_v62  ;;  %v3107_v15 = vadd.f32 %v6585_v59, %v8009_v27  ;;  %v3658_v34 = vadd.f32 %v3609_v57, %v3434_v40  ;;  %v3569_v57 = vpop.permute.xlu0 %3568 }
 0x40c   : > { %v3131_v3 = vpop.f32.mrf.mxu1  ;;  %v3097_v59 = vadd.f32 %v6582_v22, %v8005_v11  ;;  %v3429_v23 = vadd.f32 %v3358_v49, %v3102_v19  ;;  %v3655_v41 = vadd.f32 %v3594_v42, %v3431_v5  ;;  %v3427_v49 = vadd.f32 %v8094_v63, %v3092_v9  ;;  %v8845_v63 = vld [vmem:[#allocation67_spill] sm:$0xff] }
 0x40d   : > { %v3388_v33 = vpop.f32.mrf.mxu0  ;;  %v3436_v60 = vadd.f32 %v6674_v37, %v3137_v28  ;;  %v3132_v25 = vadd.f32 %v3131_v3, %v8024_v50  ;;  %v3657_v32 = vadd.f32 %v3604_v55, %v3433_v2  ;;  %v3656_v3 = vadd.f32 %v3599_v44, %v3432_v47 }
 0x40e   : > { %v6597_v1 = vpop.f32.mrf.mxu1  ;;  %v3674_v28 = vsub.f32 0.0, %v3658_v34  ;;  %v3428_v11 = vadd.f32 %v8090_v38, %v3097_v59  ;;  %v3653_v42 = vadd.f32 %v3584_v17, %v3429_v23  ;;  %v3651_v38 = vadd.f32 %v3574_v61, %v3427_v49  ;;  %v8849_v59 = vld [vmem:[#allocation60_spill] sm:$0xff] }
 0x40f   : > { %v3147_v10 = vadd.f32 %v6597_v1, %v8026_v16  ;;  %v6677_v4 = vpop.f32.mrf.mxu0  ;;  %v3660_v46 = vadd.f32 %v3619_v56, %v3436_v60  ;;  %v3435_v18 = vadd.f32 %v3388_v33, %v3132_v25  ;;  %v3673_v55 = vsub.f32 0.0, %v3657_v32  ;;  %v3559_v26 = vpop.permute.xlu0 %3558 }
 0x410   : > { %v3141_v52 = vpop.f32.mrf.mxu1  ;;  %v3672_v44 = vsub.f32 0.0, %v3656_v3  ;;  %v3701_v40 = vmul.f32 1.442695, %v3674_v28  ;;  %v3652_v56 = vadd.f32 %v3579_v0, %v3428_v11  ;;  %v3669_v17 = vsub.f32 0.0, %v3653_v42  ;;  %v8847_v0 = vld [vmem:[#allocation66_spill] sm:$0xff]  ;;  %v8851_v28 = vld [vmem:[#allocation63_spill] sm:$0xff] }
 0x411   : > { %v3438_v30 = vadd.f32 %v6677_v4, %v3147_v10  ;;  %v3676_v12 = vsub.f32 0.0, %v3660_v46  ;;  %v3142_v50 = vadd.f32 %v3141_v52, %v8028_v29  ;;  %v3659_v1 = vadd.f32 %v3614_v7, %v3435_v18  ;;  %v3398_v37 = vpop.f32.mrf.mxu0  ;;  %v8850_v3 = vld [vmem:[#allocation46_spill] sm:$0xff] }
 0x412   : > { %v3430_v4 = vadd.f32 %v6665_v53, %v3107_v15  ;;  %v3426_v53 = vadd.f32 %v8084_v20, %v3087_v43  ;;  %v3082_v46 = vadd.f32 %v8086_v58, %v8003_v13  ;;  %v3699_v2 = vmul.f32 1.442695, %v3673_v55 }
 0x413   : > { %v3662_v16 = vadd.f32 %v8072_v35, %v3438_v30  ;;  %v3437_v62 = vadd.f32 %v3398_v37, %v3142_v50  ;;  %v3675_v27 = vsub.f32 0.0, %v3659_v1  ;;  %v3705_v29 = vmul.f32 1.442695, %v3676_v12  ;;  %v3549_v31 = vpop.permute.xlu0 %3548 }
 0x414   : > { %v3654_v25 = vadd.f32 %v3589_v21, %v3430_v4  ;;  %v3650_v20 = vadd.f32 %v3569_v57, %v3426_v53  ;;  %v3554_v21 = vpop.permute.xlu1 %3553  ;;  %v3697_v22 = vmul.f32 1.442695, %v3672_v44  ;;  %v3072_v13 = vadd.f32 %v8080_v24, %v7999_v48  ;;  %v8853_v44 = vld [vmem:[#allocation64_spill] sm:$0xff] }
 0x415   : > { %v3678_v45 = vsub.f32 0.0, %v3662_v16  ;;  %v3661_v51 = vadd.f32 %v8078_v8, %v3437_v62  ;;  %v3703_v10 = vmul.f32 1.442695, %v3675_v27  ;;  %6964 = vpow2.f32 %v3705_v29  ;;  %v8848_v62 = vld [vmem:[#allocation45_spill] sm:$0xff] }
 0x416   : > { %v3671_v8 = vsub.f32 0.0, %v3655_v41  ;;  %v3670_v7 = vsub.f32 0.0, %v3654_v25  ;;  %v3425_v58 = vadd.f32 %v8845_v63, %v3082_v46  ;;  %v3424_v52 = vadd.f32 %v8846_v14, %v3077_v36 }
 0x417   : > { %v3709_v60 = vmul.f32 1.442695, %v3678_v45  ;;  %v3677_v33 = vsub.f32 0.0, %v3661_v51  ;;  %6966 = vpow2.f32 %v3703_v10  ;;  %v3666_v15 = vsub.f32 0.0, %v3650_v20  ;;  %v3539_v5 = vpop.permute.xlu0 %3538 }
 0x418   : > { %v3695_v39 = vmul.f32 1.442695, %v3671_v8  ;;  %v3668_v54 = vsub.f32 0.0, %v3652_v56  ;;  %v3693_v18 = vmul.f32 1.442695, %v3670_v7  ;;  %v3423_v30 = vadd.f32 %v8847_v0, %v3072_v13  ;;  %v3544_v12 = vpop.permute.xlu1 %3543  ;;  %v8854_v13 = vld [vmem:[#allocation59_spill] sm:$0xff] }
 0x419   : > { %v3707_v35 = vmul.f32 1.442695, %v3677_v33  ;;  %6968 = vpow2.f32 %v3709_v60  ;;  %v3649_v47 = vadd.f32 %v3564_v6, %v3425_v58  ;;  %v3667_v34 = vsub.f32 0.0, %v3651_v38  ;;  %v8852_v33 = vld [vmem:[#allocation61_spill] sm:$0xff] }
 0x41a   : > { %v3691_v50 = vmul.f32 1.442695, %v3669_v17  ;;  %v3648_v48 = vadd.f32 %v3559_v26, %v3424_v52  ;;  %v3685_v24 = vmul.f32 1.442695, %v3666_v15  ;;  %v3689_v61 = vmul.f32 1.442695, %v3668_v54 }
 0x41b   : > { %6970 = vpow2.f32 %v3707_v35  ;;  %v3647_v1 = vadd.f32 %v3554_v21, %v3423_v30  ;;  %v3665_v16 = vsub.f32 0.0, %v3649_v47  ;;  %v3687_v37 = vmul.f32 1.442695, %v3667_v34  ;;  %v3529_v25 = vpop.permute.xlu0 %3528  ;;  %v8855_v15 = vld [vmem:[#allocation62_spill] sm:$0xff]  ;;  %v8856_v30 = vld [vmem:[#allocation57_spill] sm:$0xff] }
 0x41c   : > { %6972 = vpow2.f32 %v3701_v40  ;;  %v3067_v4 = vadd.f32 %v8849_v59, %v8848_v62  ;;  %v3664_v27 = vsub.f32 0.0, %v3648_v48  ;;  %v3534_v57 = vpop.permute.xlu1 %3533  ;;  %v3062_v29 = vadd.f32 %v8851_v28, %v8850_v3 }
 0x41d   : > { %6974 = vpow2.f32 %v3699_v2  ;;  %v3663_v10 = vsub.f32 0.0, %v3647_v1  ;;  %v3683_v6 = vmul.f32 1.442695, %v3665_v16  ;;  %v3644_v63 = vadd.f32 %v3539_v5, %v8854_v13  ;;  %v8857_v16 = vld [vmem:[#allocation58_spill] sm:$0xff]  ;;  %v8863_v13 = vld [vmem:[#allocation51_spill] sm:$0xff] }
 0x41e   : > { %6976 = vpow2.f32 %v3697_v22  ;;  %v3422_v53 = vadd.f32 %v8852_v33, %v3067_v4  ;;  %v3681_v11 = vmul.f32 1.442695, %v3664_v27  ;;  %v3421_v40 = vadd.f32 %v8853_v44, %v3062_v29  ;;  %v8858_v27 = vld [vmem:[#allocation55_spill] sm:$0xff]  ;;  %v8861_v44 = vld [vmem:[#allocation53_spill] sm:$0xff] }
 0x41f   : > { %6978 = vpow2.f32 %v3695_v39  ;;  %v3679_v49 = vmul.f32 1.442695, %v3663_v10  ;;  %v3519_v56 = vpop.permute.xlu0 %3518  ;;  %v3642_v47 = vadd.f32 %v3529_v25, %v8856_v30  ;;  %vm3772_vm5 = vcmp.ge.f32.partialorder %v3644_v63, 0.0  ;;  %v8860_v10 = vld [vmem:[#allocation56_spill] sm:$0xff] }
 0x420   : > { %6980 = vpow2.f32 %v3693_v18  ;;  %v3524_v26 = vpop.permute.xlu1 %3523  ;;  %v3646_v2 = vadd.f32 %v3549_v31, %v3422_v53  ;;  %v3645_v36 = vadd.f32 %v3544_v12, %v3421_v40  ;;  %v3643_v31 = vadd.f32 %v3534_v57, %v8855_v15 }
 0x421   : > { %6982 = vpow2.f32 %v3691_v50  ;;  %v3788_v34 = vmul.f32 0.01, %v3644_v63  ;;  %v3786_v57 = vmul.f32 0.01, %v3642_v47  ;;  %v8859_v28 = vmov 0.0  }
 0x422   : > { %v6965_v19 = vpop.eup %6964  ;;  %6984 = vpow2.f32 %v3685_v24  ;;  %v3790_v58 = vmul.f32 0.01, %v3646_v2  ;;  %vm3774_vm3 = vcmp.ge.f32.partialorder %v3646_v2, 0.0  ;;  %v3789_v39 = vmul.f32 0.01, %v3645_v36 }
 0x423   : > { %6986 = vpow2.f32 %v3689_v61  ;;  %v3724_v51 = vadd.f32 1.0, %v6965_v19  ;;  %vm3773_vm4 = vcmp.ge.f32.partialorder %v3645_v36, 0.0  ;;  %v3509_v48 = vpop.permute.xlu0 %3508  ;;  %vm3771_vm6 = vcmp.ge.f32.partialorder %v3643_v31, 0.0 }
 0x424   : > { %v6967_v43 = vpop.eup %6966  ;;  %6988 = vpow2.f32 %v3687_v37  ;;  %v3514_v17 = vpop.permute.xlu1 %3513  ;;  %v3806_v12 = vsel %vm3774_vm3, %v3646_v2, %v3790_v58  ;;  %v3805_v24 = vsel %vm3773_vm4, %v3645_v36, %v3789_v39  ;;  %v3641_v37 = vadd.f32 %v3524_v26, %v8857_v16  ;;  %v8862_v2 = vld [vmem:[#allocation54_spill] sm:$0xff] }
 0x425   : > { %v3723_v55 = vadd.f32 1.0, %v6967_v43  ;;  %v3787_v43 = vmul.f32 0.01, %v3643_v31  ;;  %v3804_v3 = vsel %vm3772_vm5, %v3644_v63, %v3788_v34  ;;  %vm3770_vm7 = vcmp.ge.f32.partialorder %v3642_v47, 0.0 }
 0x426   : > { %v6969_v32 = vpop.eup %6968  ;;  %vm3769_vm8 = vcmp.ge.f32.partialorder %v3641_v37, 0.0  ;;  %v3638_v40 = vadd.f32 %v3509_v48, %v8861_v44  ;;  %vm3902_vm4 = vcmask 130048   ;;  %vm7180_vm5 = vmmov 0  }
 0x427   : > { %v3726_v9 = vadd.f32 1.0, %v6969_v32  ;;  %v3499_v33 = vpop.permute.xlu0 %3498  ;;  %6777 = vmatprep.mubr.msk.f32.mxu0 %vm7180_vm5, %v8859_v28 }
 0x428   : > { %v6971_v45 = vpop.eup %6970  ;;  %v3504_v62 = vpop.permute.xlu1 %3503  ;;  %v3636_v63 = vadd.f32 %v3499_v33, %v8863_v13  ;;  %v3782_v58 = vmul.f32 0.01, %v3638_v40  ;;  %vm3766_vm11 = vcmp.ge.f32.partialorder %v3638_v40, 0.0  ;;  %v3901_v13 = vld [vmem:[%s8869_s23 + $0x8] sm:$0xff] }
 0x429   : > { %v6973_v23 = vpop.eup %6972  ;;  %v3725_v41 = vadd.f32 1.0, %v6971_v45  ;;  %6990 = vrcp.f32 %v3726_v9  ;;  %v3640_v45 = vadd.f32 %v3519_v56, %v8858_v27  ;;  %v3637_v36 = vadd.f32 %v3504_v62, %v8862_v2 }
 0x42a   : > { %v6975_v60 = vpop.eup %6974  ;;  %v3722_v35 = vadd.f32 1.0, %v6973_v23  ;;  %vm3764_vm13 = vcmp.ge.f32.partialorder %v3636_v63, 0.0 }
 0x42b   : > { %6992 = vrcp.f32 %v3725_v41  ;;  %v6977_v46 = vpop.eup %6976  ;;  %v3721_v42 = vadd.f32 1.0, %v6975_v60  ;;  %v3785_v41 = vmul.f32 0.01, %v3641_v37  ;;  %vm3768_vm9 = vcmp.ge.f32.partialorder %v3640_v45, 0.0 }
 0x42c   : > { %6994 = vrcp.f32 %v3724_v51  ;;  %v6979_v8 = vpop.eup %6978  ;;  %v3720_v20 = vadd.f32 1.0, %v6977_v46  ;;  %v3802_v46 = vsel %vm3770_vm7, %v3642_v47, %v3786_v57  ;;  %vm3765_vm12 = vcmp.ge.f32.partialorder %v3637_v36, 0.0  ;;  %v8865_v47 = vld [vmem:[#allocation49_spill] sm:$0xff] }
 0x42d   : > { %6996 = vpow2.f32 %v3683_v6  ;;  %v6981_v21 = vpop.eup %6980  ;;  %v3719_v7 = vadd.f32 1.0, %v6979_v8  ;;  %v3639_v6 = vadd.f32 %v3514_v17, %v8860_v10  ;;  %v3489_v17 = vpop.permute.xlu0 %3488 }
 0x42e   : > { %6998 = vrcp.f32 %v3723_v55  ;;  %v6983_v22 = vpop.eup %6982  ;;  %v3718_v14 = vadd.f32 1.0, %v6981_v21  ;;  %v3803_v55 = vsel %vm3771_vm6, %v3643_v31, %v3787_v43  ;;  %v3801_v21 = vsel %vm3769_vm8, %v3641_v37, %v3785_v41 }
 0x42f   : > { %7000 = vpow2.f32 %v3681_v11  ;;  %v6985_v38 = vpop.eup %6984  ;;  %v3717_v18 = vadd.f32 1.0, %v6983_v22  ;;  %vm3767_vm10 = vcmp.ge.f32.partialorder %v3639_v6, 0.0  ;;  %v3781_v31 = vmul.f32 0.01, %v3637_v36 }
 0x430   : > { %7002 = vrcp.f32 %v3722_v35  ;;  %v6987_v52 = vpop.eup %6986  ;;  %v3714_v51 = vadd.f32 1.0, %v6985_v38  ;;  %v3784_v35 = vmul.f32 0.01, %v3640_v45  ;;  %v3634_v34 = vadd.f32 %v3489_v17, %v8865_v47  ;;  %v4071_v17 = vld [vmem:[%s8872_s3 + $0x8] sm:$0xff] }
 0x431   : > { %7004 = vpow2.f32 %v3679_v49  ;;  %v6989_v54 = vpop.eup %6988  ;;  %v3716_v61 = vadd.f32 1.0, %v6987_v52  ;;  %v3494_v49 = vpop.permute.xlu1 %3493  ;;  %v8864_v52 = vld [vmem:[#allocation52_spill] sm:$0xff]  ;;  %v3797_v37 = vsel %vm3765_vm12, %v3637_v36, %v3781_v31  ;;  %vm4451_vm6 = vcmask 64512  }
 0x432   : > { %7006 = vrcp.f32 %v3721_v42  ;;  %v3715_v59 = vadd.f32 1.0, %v6989_v54  ;;  %v3800_v38 = vsel %vm3768_vm9, %v3640_v45, %v3784_v35  ;;  %v3635_v15 = vadd.f32 %v3494_v49, %v8864_v52  ;;  %v3479_v43 = vpop.permute.xlu0 %3478  ;;  %v3824_v36 = vld [vmem:[%s8823_s11 + $0x8] sm:$0xff] }
 0x433   : > { %7008 = vrcp.f32 %v3720_v20  ;;  %v3783_v20 = vmul.f32 0.01, %v3639_v6  ;;  %v3778_v27 = vmul.f32 0.01, %v3634_v34  ;;  %vm3762_vm15 = vcmp.ge.f32.partialorder %v3634_v34, 0.0 }
 0x434   : > { %7010 = vrcp.f32 %v3719_v7  ;;  %v3779_v16 = vmul.f32 0.01, %v3635_v15  ;;  %vm3763_vm14 = vcmp.ge.f32.partialorder %v3635_v15, 0.0 }
 0x435   : > { %7012 = vrcp.f32 %v3718_v14  ;;  %v3799_v54 = vsel %vm3767_vm10, %v3639_v6, %v3783_v20  ;;  %v3794_v33 = vsel %vm3762_vm15, %v3634_v34, %v3778_v27  ;;  %v3900_v20 = vld [vmem:[%s8869_s23] sm:$0xff] }
 0x436   : > { %v6991_v0 = vpop.eup %6990  ;;  %7014 = vrcp.f32 %v3717_v18  ;;  %v3484_v18 = vpop.permute.xlu1 %3483  ;;  %v3795_v6 = vsel %vm3763_vm14, %v3635_v15, %v3779_v16  ;;  %v7054_v16 = vld [vmem:[%s7253_s30 + $0x8] sm:$0xff] }
 0x437   : > { %v8133_v19 = vmul.f32 %v6991_v0, %v3806_v12  ;;  %7016 = vrcp.f32 %v3716_v61  ;;  %v3780_v12 = vmul.f32 0.01, %v3636_v63  ;;  %v8866_v61 = vld [vmem:[#allocation50_spill] sm:$0xff] }
 0x438   : > { %v6993_v50 = vpop.eup %6992  ;;  %7018 = vrcp.f32 %v3715_v59  ;;  %v8867_v59 = vld [vmem:[#allocation47_spill] sm:$0xff] }
 0x439   : > { %v6995_v1 = vpop.eup %6994  ;;  %v8136_v5 = vmul.f32 %v6993_v50, %v3805_v24  ;;  %6678 = vmatprep.subr.mxu1 %v8133_v19  ;;  %6746 = vmatpush3.msra.mxu0 %v8133_v19  ;;  %7020 = vrcp.f32 %v3714_v51  ;;  %v3798_v50 = vsel %vm3766_vm11, %v3638_v40, %v3782_v58  ;;  %v3796_v45 = vsel %vm3764_vm13, %v3636_v63, %v3780_v12  ;;  %v8868_v51 = vld [vmem:[#allocation48_spill] sm:$0xff]  ;;  %v3987_v63 = vld [vmem:[%s8871_s1] sm:$0xff] }
 0x43a   : > { %v6997_v32 = vpop.eup %6996  ;;  %6679 = vmatpush3.msra.mxu1 %v8133_v19  ;;  %6747 = vmatprep.subr.mxu0 %v8859_v28  ;;  %v8146_v9 = vmul.f32 %v6995_v1, %v3804_v3  ;;  %v3633_v1 = vadd.f32 %v3484_v18, %v8866_v61  ;;  %v3474_v57 = vpop.permute.xlu1 %3473  ;;  %v3988_v58 = vld [vmem:[%s8871_s1 + $0x8] sm:$0xff]  ;;  %v7052_v61 = vld [vmem:[%s7248_s24] sm:$0xff]  ;;  %s8874_s1 = sld [smem:[#allocation23_spill]] }
 0x43b   : > { %v6999_v4 = vpop.eup %6998  ;;  %6680 = vmatprep.subr.mxu1 %v8136_v5  ;;  %6748 = vmatpush3.msra.mxu0 %v8136_v5  ;;  %v3713_v53 = vadd.f32 1.0, %v6997_v32 }
 0x43c   : > { %v7001_v29 = vpop.eup %7000  ;;  %6681 = vmatpush3.msra.mxu1 %v8136_v5  ;;  %6749 = vmatprep.subr.mxu0 %v8859_v28  ;;  %v8154_v11 = vmul.f32 %v6999_v4, %v3803_v55  ;;  %v3632_v4 = vadd.f32 %v3479_v43, %v8867_v59  ;;  %v3777_v10 = vmul.f32 0.01, %v3633_v1  ;;  %vm3761_vm1 = vcmp.ge.f32.partialorder %v3633_v1, 0.0 }
 0x43d   : > { %v7003_v23 = vpop.eup %7002  ;;  %6682 = vmatprep.subr.mxu1 %v8146_v9  ;;  %6750 = vmatpush3.msra.mxu0 %v8146_v9  ;;  %v3712_v26 = vadd.f32 1.0, %v7001_v29  ;;  %7022 = vrcp.f32 %v3713_v53 }
 0x43e   : > { %v7005_v60 = vpop.eup %7004  ;;  %6683 = vmatpush3.msra.mxu1 %v8146_v9  ;;  %6751 = vmatprep.subr.mxu0 %v8859_v28  ;;  %v8162_v42 = vmul.f32 %v7003_v23, %v3802_v46  ;;  %v3631_v23 = vadd.f32 %v3474_v57, %v8868_v51  ;;  %vm3760_vm2 = vcmp.ge.f32.partialorder %v3632_v4, 0.0  ;;  %v3793_v40 = vsel %vm3761_vm1, %v3633_v1, %v3777_v10  ;;  %v7053_v1 = vld [vmem:[%s7253_s30 + $0x10] sm:$0xff] }
 0x43f   : > { %v7007_v25 = vpop.eup %7006  ;;  %6684 = vmatprep.subr.mxu1 %v8154_v11  ;;  %6752 = vmatpush3.msra.mxu0 %v8154_v11  ;;  %v3711_v56 = vadd.f32 1.0, %v7005_v60  ;;  %7024 = vrcp.f32 %v3712_v26  ;;  %v3776_v60 = vmul.f32 0.01, %v3632_v4 }
 0x440   : > { %v7009_v8 = vpop.eup %7008  ;;  %6685 = vmatpush3.msra.mxu1 %v8154_v11  ;;  %6753 = vmatprep.subr.mxu0 %v8859_v28  ;;  %v8170_v7 = vmul.f32 %v7007_v25, %v3801_v21  ;;  %v3775_v44 = vmul.f32 0.01, %v3631_v23  ;;  %vm3759_vm3 = vcmp.ge.f32.partialorder %v3631_v23, 0.0  ;;  %v4235_v21 = vld [vmem:[%s8870_s28] sm:$0xff]  ;;  %s8873_s28 = sld [smem:[#allocation20_spill]] }
 0x441   : > { %6686 = vmatprep.subr.mxu1 %v8162_v42  ;;  %6754 = vmatpush3.msra.mxu0 %v8162_v42  ;;  %v7011_v22 = vpop.eup %7010  ;;  %v8178_v39 = vmul.f32 %v7009_v8, %v3800_v38  ;;  %7026 = vrcp.f32 %v3711_v56  ;;  %v3792_v49 = vsel %vm3760_vm2, %v3632_v4, %v3776_v60  ;;  %v4072_v38 = vld [vmem:[%s8872_s3 + $0x10] sm:$0xff]  ;;  %v4380_v57 = vld [vmem:[%s8874_s1] sm:$0xff]  ;;  %s8879_s1 = sld [smem:[#allocation28_spill]] }
 0x442   : > { %6687 = vmatpush3.msra.mxu1 %v8162_v42  ;;  %6755 = vmatprep.subr.mxu0 %v8859_v28  ;;  %v7013_v14 = vpop.eup %7012  ;;  %v8186_v0 = vmul.f32 %v7011_v22, %v3799_v54  ;;  %v3791_v8 = vsel %vm3759_vm3, %v3631_v23, %v3775_v44 }
 0x443   : > { %6688 = vmatprep.subr.mxu1 %v8170_v7  ;;  %6756 = vmatpush3.msra.mxu0 %v8170_v7  ;;  %v7015_v30 = vpop.eup %7014  ;;  %v8194_v48 = vmul.f32 %v7013_v14, %v3798_v50  ;;  %v4070_v14 = vld [vmem:[%s8872_s3] sm:$0xff]  ;;  %v7050_v50 = vld [vmem:[%s7248_s24 + $0x10] sm:$0xff]  ;;  %s8875_s3 = sld [smem:[#allocation22_spill]] }
 0x444   : > { %6689 = vmatpush3.msra.mxu1 %v8170_v7  ;;  %6757 = vmatprep.subr.mxu0 %v8859_v28  ;;  %v7017_v24 = vpop.eup %7016  ;;  %v8202_v32 = vmul.f32 %v7015_v30, %v3797_v37  ;;  %v7055_v37 = vld [vmem:[%s7253_s30] sm:$0xff] }
 0x445   : > { %6690 = vmatprep.subr.mxu1 %v8178_v39  ;;  %6758 = vmatpush3.msra.mxu0 %v8178_v39  ;;  %v7019_v62 = vpop.eup %7018  ;;  %v8210_v3 = vmul.f32 %v7017_v24, %v3796_v45  ;;  %v7051_v24 = vld [vmem:[%s7248_s24 + $0x8] sm:$0xff] }
 0x446   : > { %6691 = vmatpush3.msra.mxu1 %v8178_v39  ;;  %6759 = vmatprep.subr.mxu0 %v8859_v28  ;;  %v7021_v29 = vpop.eup %7020  ;;  %v8218_v41 = vmul.f32 %v7019_v62, %v3795_v6  ;;  %v3986_v52 = vld [vmem:[%s8873_s28 + $0x10] sm:$0xff]  ;;  %v3985_v34 = vld [vmem:[%s8873_s28 + $0x8] sm:$0xff]  ;;  %v3984_v12 = vld [vmem:[%s8873_s28] sm:$0xff] }
 0x447   : > { %6692 = vmatprep.subr.mxu1 %v8186_v0  ;;  %6760 = vmatpush3.msra.mxu0 %v8186_v0  ;;  %v8225_v53 = vmul.f32 %v7021_v29, %v3794_v33 }
 0x448   : > { %6693 = vmatpush3.msra.mxu1 %v8186_v0  ;;  %6761 = vmatprep.subr.mxu0 %v8859_v28 }
 0x449   : > { %6694 = vmatprep.subr.mxu1 %v8194_v48  ;;  %6762 = vmatpush3.msra.mxu0 %v8194_v48  ;;  %v4306_v23 = vld [vmem:[%s8875_s3] sm:$0xff]  ;;  %s8877_s3 = sld [smem:[#allocation26_spill]] }
 0x44a   : > { %6695 = vmatpush3.msra.mxu1 %v8194_v48  ;;  %6763 = vmatprep.subr.mxu0 %v8859_v28  ;;  %v7023_v55 = vpop.eup %7022 }
 0x44b   : > { %6696 = vmatprep.subr.mxu1 %v8202_v32  ;;  %6764 = vmatpush3.msra.mxu0 %v8202_v32  ;;  %v8231_v35 = vmul.f32 %v7023_v55, %v3793_v40  ;;  %v4598_v55 = vld [vmem:[%s8876_s4] sm:$0xff]  ;;  %s8878_s4 = sld [smem:[#allocation25_spill]] }
 0x44c   : > { %6697 = vmatpush3.msra.mxu1 %v8202_v32  ;;  %6765 = vmatprep.subr.mxu0 %v8859_v28  ;;  %v7025_v25 = vpop.eup %7024 }
 0x44d   : > { %6698 = vmatprep.subr.mxu1 %v8210_v3  ;;  %6766 = vmatpush3.msra.mxu0 %v8210_v3  ;;  %v8237_v26 = vmul.f32 %v7025_v25, %v3792_v49 }
 0x44e   : > { %6699 = vmatpush3.msra.mxu1 %v8210_v3  ;;  %6767 = vmatprep.subr.mxu0 %v8859_v28  ;;  %v7027_v46 = vpop.eup %7026 }
 0x44f   : > { %6700 = vmatprep.subr.mxu1 %v8218_v41  ;;  %6768 = vmatpush3.msra.mxu0 %v8218_v41  ;;  %v8243_v2 = vmul.f32 %v7027_v46, %v3791_v8  ;;  %v972_v8 = vld [vmem:[%s8796_s13 + $0x10] sm:$0xff] }
 0x450   : > { %6701 = vmatpush3.msra.mxu1 %v8218_v41  ;;  %6769 = vmatprep.subr.mxu0 %v8859_v28 }
 0x451   : > { %6702 = vmatprep.subr.mxu1 %v8225_v53  ;;  %6770 = vmatpush3.msra.mxu0 %v8225_v53 }
 0x452   : > { %6703 = vmatpush3.msra.mxu1 %v8225_v53  ;;  %6771 = vmatprep.subr.mxu0 %v8859_v28 }
 0x453   : > { %6704 = vmatprep.subr.mxu1 %v8231_v35  ;;  %6772 = vmatpush3.msra.mxu0 %v8231_v35 }
 0x454   : > { %6705 = vmatpush3.msra.mxu1 %v8231_v35  ;;  %6773 = vmatprep.subr.mxu0 %v8859_v28 }
 0x455   : > { %6706 = vmatprep.subr.mxu1 %v8237_v26  ;;  %6774 = vmatpush3.msra.mxu0 %v8237_v26 }
 0x456   : > { %6707 = vmatpush3.msra.mxu1 %v8237_v26  ;;  %6775 = vmatprep.subr.mxu0 %v8859_v28 }
 0x457   : > { %6708 = vmatprep.subr.mxu1 %v8243_v2  ;;  %6776 = vmatpush3.msra.mxu0 %v8243_v2 }
 0x458   : > { %6709 = vmatpush3.msra.mxu1 %v8243_v2  ;;  %6815 = vmatprep.subr.mxu0 %v8859_v28 }
 0x459   : > { %6711 = vmatmul.mubr.f32.vlgmr.msra.gmra.mxu1 %v3824_v36  ;;  %6778 = vmatmul.mubr.f32.vlgmr.msra.gmra.mxu0 %v4235_v21  ;;  %v985_v36 = vld [vmem:[%s8796_s13 + $0x78] sm:$0xff]  ;;  %s7181_s13 = smov [#allocation4]  }
 0x45a   : > { %6717 = vmatprep.mubr.msk.f32.mxu1 %vm3902_vm4, %v3900_v20  ;;  %6817 = vmatprep.mubr.msk.f32.mxu0 %vm7180_vm5, %v8859_v28  ;;  %s7060_s17 = sshll.u32 %s7181_s13, 4  ;;  %s7061_s17 = int_to_ptr.vmem [resolvable:$false] %s7060_s17 }
 0x45b   : > { %s7062_s19 = scalar_lea.vmem %s7061_s17, 768 }
 0x519   : > { %v6712_v56 = vpop.f32.mrf.mxu1  ;;  %v4302_v15 = vpop.f32.mrf.mxu0 }
 0x51a   : > { %6713 = vmatprep.subr.mxu1 %v6712_v56 }
 0x51b   : > { %v3891_v22 = vpop.f32.mrf.mxu1  ;;  %6714 = vmatpush3.msra.mxu1 %v6712_v56  ;;  %v6779_v31 = vpop.f32.mrf.mxu0 }
 0x51c   : > { %6715 = vmatprep.subr.mxu1 %v3891_v22 }
 0x51d   : > { %6716 = vmatpush3.msra.mxu1 %v3891_v22 }
 0x51e   : > { %6718 = vmatmul.mubr.msk.f32.vlgmr.msra.gmra.mxu1 %vm3902_vm4, %v3901_v13  ;;  %6720 = vmatprep.subr.mxu1 %v6712_v56  ;;  %v4815_v13 = vld [vmem:[%s8877_s3 + $0x8] sm:$0xff] }
 0x51f   : > { %6721 = vmatpush3.msra.mxu1 %v6712_v56  ;;  %6724 = vmatprep.mubr.msk.f32.mxu1 %vm3902_vm4, %v3987_v63  ;;  %v4814_v63 = vld [vmem:[%s8877_s3] sm:$0xff] }
 0x520   : > { %6722 = vmatprep.subr.mxu1 %v3891_v22 }
 0x521   : > { %6723 = vmatpush3.msra.mxu1 %v3891_v22  ;;  %v4816_v22 = vld [vmem:[%s8877_s3 + $0x10] sm:$0xff] }
 0x522   : > { %6725 = vmatmul.mubr.msk.f32.vlgmr.msra.gmra.mxu1 %vm3902_vm4, %v3988_v58  ;;  %6727 = vmatprep.subr.mxu1 %v4072_v38  ;;  %v4704_v58 = vld [vmem:[%s8878_s4] sm:$0xff] }
 0x523   : > { %6728 = vmatpush3.msra.mxu1 %v4072_v38 }
 0x524   : > { %6729 = vmatprep.subr.mxu1 %v4071_v17 }
 0x525   : > { %6730 = vmatpush3.msra.mxu1 %v4071_v17 }
 0x526   : > { %6731 = vmatprep.subr.mxu1 %v4070_v14 }
 0x527   : > { %6732 = vmatpush3.msra.mxu1 %v4070_v14 }
 0x528   : > { %6736 = vmatprep.subr.mxu1 %v3986_v52 }
 0x5de   : > { %v6719_v54 = vpop.f32.mrf.mxu1 }
 0x5e0   : > { %v3975_v18 = vpop.f32.mrf.mxu1 }
 0x5e2   : > { %v6726_v30 = vpop.f32.mrf.mxu1 }
 0x5e4   : > { %v4061_v47 = vpop.f32.mrf.mxu1 }
 0x5e5   : > { %6733 = vmatprep.mubr.msk.f32.mxu1 %vm1260_vm0, %v4061_v47 }
 0x5e6   : > { %6734 = vmatmul.mubr.msk.f32.vlgmr.msra.gmra.mxu1 %vm1260_vm0, %v6726_v30  ;;  %v4706_v30 = vld [vmem:[%s8878_s4 + $0x10] sm:$0xff] }
 0x5e7   : > { %6737 = vmatpush3.msra.mxu1 %v3986_v52  ;;  %6742 = vmatprep.mubr.msk.f32.mxu1 %vm1260_vm0, %v3975_v18  ;;  %v4705_v52 = vld [vmem:[%s8878_s4 + $0x8] sm:$0xff] }
 0x5e8   : > { %6738 = vmatprep.subr.mxu1 %v3985_v34 }
 0x5e9   : > { %6739 = vmatpush3.msra.mxu1 %v3985_v34 }
 0x5ea   : > { %6740 = vmatprep.subr.mxu1 %v3984_v12 }
 0x5eb   : > { %6741 = vmatpush3.msra.mxu1 %v3984_v12 }
 0x5ec   : > { %6780 = vmatprep.subr.mxu1 %v8859_v28  ;;  %6743 = vmatmul.mubr.msk.f32.vlgmr.msra.gmra.mxu1 %vm1260_vm0, %v6719_v54 }
 0x5ed   : > { %6781 = vmatpush3.msra.mxu1 %v7050_v50  ;;  %6786 = vmatprep.mubr.msk.f32.mxu1 %vm7180_vm5, %v8859_v28 }
 0x5ee   : > { %6782 = vmatprep.subr.mxu1 %v8859_v28 }
 0x5ef   : > { %6783 = vmatpush3.msra.mxu1 %v7051_v24 }
 0x5f0   : > { %6784 = vmatprep.subr.mxu1 %v8859_v28 }
 0x5f1   : > { %6785 = vmatpush3.msra.mxu1 %v7052_v61 }
 0x5f2   : > { %6789 = vmatprep.subr.mxu1 %v8859_v28  ;;  %6787 = vmatmul.mubr.msk.f32.vlgmr.msra.gmra.mxu1 %vm1260_vm0, %v4302_v15 }
 0x5f3   : > { %6790 = vmatpush3.msra.mxu1 %v7053_v1  ;;  %6795 = vmatprep.mubr.msk.f32.mxu1 %vm7180_vm5, %v8859_v28 }
 0x5f4   : > { %6791 = vmatprep.subr.mxu1 %v8859_v28 }
 0x5f5   : > { %6792 = vmatpush3.msra.mxu1 %v7054_v16 }
 0x5f6   : > { %6793 = vmatprep.subr.mxu1 %v8859_v28 }
 0x5f7   : > { %6794 = vmatpush3.msra.mxu1 %v7055_v37 }
 0x5f8   : > { %6796 = vmatmul.mubr.msk.f32.vlgmr.msra.gmra.mxu1 %vm1260_vm0, %v4302_v15  ;;  %6798 = vmatprep.subr.mxu1 %v8859_v28 }
 0x5f9   : > { %6800 = vmatprep.mubr.msk.f32.mxu1 %vm7180_vm5, %v8859_v28 }
 0x6a6   : > { %v6735_v43 = vpop.f32.mrf.mxu1 }
 0x6a8   : > { %v4145_v62 = vpop.f32.mrf.mxu1 }
 0x6ac   : > { %v6744_v59 = vpop.f32.mrf.mxu1 }
 0x6ad   : > { %v4232_v10 = vadd.f32 %v6744_v59, %v6735_v43 }
 0x6ae   : > { %v4226_v4 = vpop.f32.mrf.mxu1 }
 0x6af   : > { %v4227_v6 = vadd.f32 %v4226_v4, %v4145_v62 }
 0x6b2   : > { %v4376_v27 = vpop.f32.mrf.mxu1 }
 0x6b4   : > { %v6788_v45 = vpop.f32.mrf.mxu1 }
 0x6b8   : > { %v4447_v29 = vpop.f32.mrf.mxu1 }
 0x6b9   : > { %6799 = vmatpush3.msra.mxu1 %v4447_v29  ;;  %v4912_v29 = vpop.permute.xlu1 %4911 }
 0x6ba   : > { %6801 = vmatmul.mubr.msk.f32.vlgmr.msra.gmra.mxu1 %vm4451_vm6, %v4380_v57  ;;  %6803 = vmatprep.subr.mxu1 %v8859_v28  ;;  %v6797_v51 = vpop.f32.mrf.mxu1 }
 0x6bb   : > { %6804 = vmatpush3.msra.mxu1 %v4376_v27  ;;  %6805 = vmatprep.mubr.msk.f32.mxu1 %vm7180_vm5, %v8859_v28 }
 0x6bc   : > { %6808 = vmatprep.subr.mxu1 %v8859_v28 }
 0x6bd   : > { %v4917_v51 = vpop.permute.xlu1 %4916 }
 0x6be   : > { %6806 = vmatmul.mubr.msk.f32.vlgmr.msra.gmra.mxu1 %vm4451_vm6, %v4306_v23 }
 0x6bf   : > { %6809 = vmatpush3.msra.mxu1 %v4232_v10  ;;  %6812 = vmatprep.mubr.msk.f32.mxu1 %vm7180_vm5, %v8859_v28 }
 0x6c0   : > { %6810 = vmatprep.subr.mxu1 %v8859_v28 }
 0x6c1   : > { %6811 = vmatpush3.msra.mxu1 %v4227_v6  ;;  %v4922_v23 = vpop.permute.xlu1 %4921 }
 0x6c2   : > { %6813 = vmatmul.mubr.msk.f32.vlgmr.msra.gmra.mxu1 %vm3902_vm4, %v4598_v55  ;;  %6826 = vmatprep.subr.mxu1 %v8859_v28 }
 0x6c3   : > { %6832 = vmatprep.mubr.msk.f32.mxu1 %vm7180_vm5, %v8859_v28  ;;  %6827 = vmatpush3.msra.mxu1 %v4816_v22  ;;  %v4950_v22 = vld [vmem:[%s8879_s1 + $0x10] sm:$0xff] }
 0x6c4   : > { %6828 = vmatprep.subr.mxu1 %v8859_v28 }
 0x6c5   : > { %6829 = vmatpush3.msra.mxu1 %v4815_v13  ;;  %v4933_v10 = vpop.permute.xlu1 %4932 }
 0x6c6   : > { %6830 = vmatprep.subr.mxu1 %v8859_v28 }
 0x6c7   : > { %6831 = vmatpush3.msra.mxu1 %v4814_v63 }
 0x77a   : > { %v4521_v60 = vpop.f32.mrf.mxu1 }
 0x77c   : > { %v6802_v33 = vpop.f32.mrf.mxu1 }
 0x77d   : > { %v4938_v33 = vpop.permute.xlu1 %4937 }
 0x77e   : > { %v4594_v25 = vpop.f32.mrf.mxu1 }
 0x77f   : > { %v4595_v44 = vadd.f32 %v4594_v25, %v4521_v60 }
 0x780   : > { %v6807_v40 = vpop.f32.mrf.mxu1 }
 0x781   : > { %4672 = vxpose.xlu0.b32.start.end [1/1] (short) (narrow) %v4595_v44, 24 }
 0x782   : > { %v4668_v46 = vpop.f32.mrf.mxu1 }
 0x783   : > { %6816 = vmatpush3.msra.mxu0 %v4668_v46  ;;  %v4949_v46 = vld [vmem:[%s8879_s1 + $0x8] sm:$0xff] }
 0x784   : > { %v6814_v49 = vpop.f32.mrf.mxu1 }
 0x7b2   : > { %998 = vperm.xlu0 %6962, %v972_v8  }
 0x7b6   : > { %1063 = vperm.xlu0 %6962, %v985_v36  }
 0x7fd   : > { %v4688_v20 = vpop.trf.xlu0 }
 0x7fe   : > { %6818 = vmatmul.mubr.msk.f32.vlgmr.msra.gmra.mxu0 %vm4451_vm6, %v4688_v20 }
 0x7ff   : > { %6820 = vmatprep.mubr.msk.f32.mxu0 %vm7180_vm5, %v8859_v28 }
 0x801   : > { %v4689_v21 = vpop.trf.xlu0 }
 0x802   : > { %6821 = vmatmul.mubr.msk.f32.gmra.mxu0 %vm4451_vm6, %v4689_v21 }
 0x803   : > { %6823 = vmatprep.mubr.msk.f32.mxu0 %vm7180_vm5, %v8859_v28 }
 0x805   : > { %v4690_v56 = vpop.trf.xlu0 }
 0x806   : > { %6824 = vmatmul.mubr.msk.f32.gmra.mxu0 %vm4451_vm6, %v4690_v56  ;;  %v4943_v56 = vpop.permute.xlu1 %4942 }
 0x807   : > { %6847 = vmatprep.mubr.msk.f32.mxu0 %vm1260_vm0, %v8243_v2 }
 0x8be   : > { %v4782_v38 = vpop.f32.mrf.mxu0 }
 0x8bf   : > { %v4783_v17 = vadd.f32 %v4782_v38, %v4704_v58 }
 0x8c0   : > { %v6819_v14 = vpop.f32.mrf.mxu0 }
 0x8c1   : > { %v4796_v15 = vsub.f32 0.0, %v4783_v17 }
 0x8c2   : > { %v4787_v31 = vpop.f32.mrf.mxu0 }
 0x8c3   : > { %v4799_v54 = vmul.f32 1.442695, %v4796_v15  ;;  %v4788_v2 = vadd.f32 %v4787_v31, %v4705_v52 }
 0x8c4   : > { %v6822_v18 = vpop.f32.mrf.mxu0 }
 0x8c5   : > { %7028 = vpow2.f32 %v4799_v54  ;;  %v4797_v47 = vsub.f32 0.0, %v4788_v2 }
 0x8c6   : > { %v4792_v34 = vpop.f32.mrf.mxu0 }
 0x8c7   : > { %v4801_v12 = vmul.f32 1.442695, %v4797_v47  ;;  %v4793_v50 = vadd.f32 %v4792_v34, %v4706_v30 }
 0x8c8   : > { %v6825_v24 = vpop.f32.mrf.mxu0 }
 0x8c9   : > { %7030 = vpow2.f32 %v4801_v12  ;;  %v4798_v61 = vsub.f32 0.0, %v4793_v50 }
 0x8cb   : > { %v4803_v1 = vmul.f32 1.442695, %v4798_v61 }
 0x8cd   : > { %7032 = vpow2.f32 %v4803_v1 }
 0x8d2   : > { %v7029_v16 = vpop.eup %7028 }
 0x8d3   : > { %v4805_v37 = vadd.f32 1.0, %v7029_v16 }
 0x8d5   : > { %7034 = vrcp.f32 %v4805_v37 }
 0x8d6   : > { %v7031_v43 = vpop.eup %7030 }
 0x8d7   : > { %v4806_v62 = vadd.f32 1.0, %v7031_v43 }
 0x8d9   : > { %7036 = vrcp.f32 %v4806_v62 }
 0x8da   : > { %v7033_v59 = vpop.eup %7032 }
 0x8db   : > { %v4807_v4 = vadd.f32 1.0, %v7033_v59 }
 0x8dd   : > { %7038 = vrcp.f32 %v4807_v4 }
 0x8e2   : > { %v7035_v27 = vpop.eup %7034 }
 0x8e3   : > { %6833 = vmatmul.mubr.msk.f32.vlgmr.msra.gmra.mxu1 %vm1260_vm0, %v7035_v27 }
 0x8e4   : > { %6835 = vmatprep.mubr.msk.f32.mxu1 %vm7180_vm5, %v8859_v28 }
 0x8e6   : > { %v7037_v45 = vpop.eup %7036 }
 0x8e7   : > { %6836 = vmatmul.mubr.msk.f32.gmra.mxu1 %vm1260_vm0, %v7037_v45 }
 0x8e8   : > { %6838 = vmatprep.mubr.msk.f32.mxu1 %vm7180_vm5, %v8859_v28  ;;  %v4948_v28 = vld [vmem:[%s8879_s1] sm:$0xff]  ;;  %s8350_s1 = sand.u32 1, %s7138_s16  }
 0x8e9   : > { %s6877_s3 = smul.u32 24, %s8350_s1  ;;  %s5470_s9 = scalar_lea.sflag [#allocation5], %s8350_s1 }
 0x8ea   : > { %v7039_v57 = vpop.eup %7038 }
 0x8eb   : > { %6839 = vmatmul.mubr.msk.f32.gmra.mxu1 %vm1260_vm0, %v7039_v57  ;;  %s8353_s4 = scalar_lea.vmem [#allocation4], %s6877_s3 }
 0x8ec   : > { %6862 = vmatprep.mubr.msk.f32.mxu1 %vm1260_vm0, %v8170_v7  ;;  %s5499_s8 = sshll.u32 %s8353_s4, 4  ;;  %s8594_s8 = int_to_ptr.vmem [resolvable:$true] %s5499_s8 }
 0x8ed   : > { %s7056_s11 = scalar_lea.vmem %s8594_s8, 384  ;;  %p7063_p0 = scmp.lt.s32.totalorder %s8594_s8, %s7061_s17 }
 0x8ee   : > { %p7057_p11 = scmp.ne.s32.totalorder %s8594_s8, %s7056_s11  ;;  %p7064_p1 = scmp.lt.s32.totalorder %s7062_s19, %s7056_s11 }
 0x8f0   : > { %p7058_p12 = pnand %p7057_p11, %p7383_p5  ;;  %p7065_p2 = por %p7064_p1, %p7063_p0 }
 0x8f2   : > { %p7059_p13 = pneg %p7058_p12 }
 0x8f4   : > { %p7066_p3 = pnand %p7065_p2, %p7059_p13 }
 0x9a3   : > { %v4892_v6 = vpop.f32.mrf.mxu1 }
 0x9a4   : > { %v4924_v55 = vmul.f32 %v4912_v29, %v4892_v6 }
 0x9a5   : > { %v6834_v60 = vpop.f32.mrf.mxu1 }
 0x9a6   : > { %v4945_v44 = vadd.f32 %v4933_v10, %v4924_v55 }
 0x9a7   : > { %v4897_v25 = vpop.f32.mrf.mxu1 }
 0x9a8   : > { %v4925_v40 = vmul.f32 %v4917_v51, %v4897_v25  ;;  %v4951_v20 = vadd.f32 %v4948_v28, %v4945_v44 }
 0x9a9   : > { %v6837_v49 = vpop.f32.mrf.mxu1 }
 0x9aa   : > { %v4946_v8 = vadd.f32 %v4938_v33, %v4925_v40  ;;  %v4954_v38 = vsel %vm1260_vm0, %v4951_v20, -inf  ;;  %v8881_v49 = vld [vmem:[#allocation29_spill] sm:$0xff] }
 0x9ab   : > { %v4902_v36 = vpop.f32.mrf.mxu1 }
 0x9ac   : > { %v4952_v21 = vadd.f32 %v4949_v46, %v4946_v8  ;;  %v4926_v7 = vmul.f32 %v4922_v23, %v4902_v36 }
 0x9ad   : > { %v6840_v13 = vpop.f32.mrf.mxu1 }
 0x9ae   : > { %v4955_v63 = vsel %vm1260_vm0, %v4952_v21, -inf  ;;  %v4947_v58 = vadd.f32 %v4943_v56, %v4926_v7  ;;  %v999_v7 = vpop.permute.xlu0 %998 }
 0x9af   : > { %v4957_v14 = vmax.f32 %v4954_v38, %v4955_v63 }
 0x9b0   : > { %v4953_v17 = vadd.f32 %v4950_v22, %v4947_v58 }
 0x9b2   : > { %v4956_v52 = vsel %vm1260_vm0, %v4953_v17, -inf }
 0x9b3   : > { %v4958_v15 = vmax.f32 %v4957_v14, %v4956_v52  ;;  %v8882_v14 = vld [vmem:[#allocation31_spill] sm:$0xff] }
 0x9b5   : > { %v4959_v31 = vrot.slane %v4958_v15, 4 }
 0x9b7   : > { %v4960_v54 = vmax.f32 %v4958_v15, %v4959_v31  ;;  %v8883_v15 = vld [vmem:[#allocation32_spill] sm:$0xff] }
 0x9b8   : > { %v1192_v31 = vadd.f32 %v8883_v15, %v999_v7  ;;  %v8890_v15 = vld [vmem:[#allocation40_spill] sm:$0xff] }
 0x9b9   : > { %v4961_v2 = vrot.slane %v4960_v54, 2 }
 0x9bb   : > { %v4962_v18 = vmax.f32 %v4960_v54, %v4961_v2 }
 0x9bd   : > { %v4963_v30 = vrot.slane %v4962_v18, 1 }
 0x9bf   : > { %v4964_v47 = vmax.f32 %v4962_v18, %v4963_v30 }
 0x9c1   : > { %v4965_v34 = vsub.f32 %v4951_v20, %v4964_v47  ;;  %v4966_v12 = vsub.f32 %v4952_v21, %v4964_v47  ;;  %v4967_v50 = vsub.f32 %v4953_v17, %v4964_v47 }
 0x9c3   : > { %v4968_v24 = vmul.f32 1.442695, %v4965_v34  ;;  %v4970_v61 = vmul.f32 1.442695, %v4966_v12  ;;  %v4972_v1 = vmul.f32 1.442695, %v4967_v50 }
 0x9c5   : > { %7040 = vpow2.f32 %v4968_v24 }
 0x9c6   : > { %7042 = vpow2.f32 %v4970_v61 }
 0x9c7   : > { %7044 = vpow2.f32 %v4972_v1 }
 0x9d2   : > { %v7041_v16 = vpop.eup %7040 }
 0x9d3   : > { %v7043_v37 = vpop.eup %7042  ;;  %v4974_v43 = vsel %vm1260_vm0, %v7041_v16, 0.0 }
 0x9d4   : > { %v7045_v62 = vpop.eup %7044  ;;  %v4975_v59 = vsel %vm1260_vm0, %v7043_v37, 0.0 }
 0x9d5   : > { %v4976_v4 = vadd.f32 %v4975_v59, %v4974_v43  ;;  %v4977_v27 = vsel %vm1260_vm0, %v7045_v62, 0.0 }
 0x9d7   : > { %v4978_v45 = vadd.f32 %v4977_v27, %v4976_v4  ;;  %v8885_v4 = vld [vmem:[#allocation34_spill] sm:$0xff] }
 0x9d9   : > { %v4979_v57 = vrot.slane %v4978_v45, 4 }
 0x9db   : > { %v4980_v29 = vadd.f32 %v4979_v57, %v4978_v45  ;;  %v8886_v45 = vld [vmem:[#allocation35_spill] sm:$0xff] }
 0x9dd   : > { %v4981_v51 = vrot.slane %v4980_v29, 2 }
 0x9df   : > { %v4982_v23 = vadd.f32 %v4981_v51, %v4980_v29 }
 0x9e1   : > { %v4983_v10 = vrot.slane %v4982_v23, 1 }
 0x9e3   : > { %v4984_v6 = vadd.f32 %v4983_v10, %v4982_v23 }
 0x9e5   : > { %7046 = vrcp.f32 %v4984_v6 }
 0x9f2   : > { %v7047_v55 = vpop.eup %7046 }
 0x9f3   : > { %v4988_v60 = vmul.f32 %v7047_v55, %v7045_v62  ;;  %v4987_v33 = vmul.f32 %v7047_v55, %v7043_v37  ;;  %v4986_v25 = vmul.f32 %v7047_v55, %v7041_v16  ;;  %v8884_v62 = vld [vmem:[#allocation33_spill] sm:$0xff]  ;;  %v8887_v55 = vld [vmem:[#allocation36_spill] sm:$0xff] }
 0x9f5   : > { %6841 = vmatprep.subr.mxu0 %v4988_v60  ;;  %6871 = vmatprep.subr.mxu1 %v4988_v60  ;;  %4989 = vst.msk [vmem:[%s8353_s4] sm:$0xff] %vm1260_vm0, %v4986_v25  ;;  %4990 = vst.msk [vmem:[%s8353_s4 + $0x8] sm:$0xff] %vm1260_vm0, %v4987_v33 }
 0x9f6   : > { %4991 = vst.msk [vmem:[%s8353_s4 + $0x10] sm:$0xff] %vm1260_vm0, %v4988_v60  ;;  %6842 = vmatpush3.msra.mxu0 %v4988_v60  ;;  %6874 = vmatpush3.msra.mxu1 %v4988_v60 }
 0x9f7   : > { %6843 = vmatprep.subr.mxu0 %v4987_v33  ;;  %6872 = vmatprep.subr.mxu1 %v4987_v33 }
 0x9f8   : > { %6844 = vmatpush3.msra.mxu0 %v4987_v33  ;;  %6875 = vmatpush3.msra.mxu1 %v4987_v33 }
 0x9f9   : > { %6845 = vmatprep.subr.mxu0 %v4986_v25  ;;  %6873 = vmatprep.subr.mxu1 %v4986_v25 }
 0x9fa   : > { %6846 = vmatpush3.msra.mxu0 %v4986_v25  ;;  %6876 = vmatpush3.msra.mxu1 %v4986_v25 }
 0x9fb   : > { %6848 = vmatmul.mubr.msk.f32.vlgmr.msra.gmra.mxu0 %vm1260_vm0, %v8237_v26  ;;  %6863 = vmatmul.mubr.msk.f32.vlgmr.msra.gmra.mxu1 %vm1260_vm0, %v8162_v42 }
 0x9fc   : > { %6850 = vmatprep.mubr.msk.f32.mxu0 %vm1260_vm0, %v8231_v35  ;;  %6865 = vmatprep.mubr.msk.f32.mxu1 %vm1260_vm0, %v8154_v11 }
 0x9ff   : > { %6851 = vmatmul.mubr.msk.f32.gmra.mxu0 %vm1260_vm0, %v8225_v53  ;;  %6866 = vmatmul.mubr.msk.f32.gmra.mxu1 %vm1260_vm0, %v8146_v9  ;;  %v989_v9 = vpop.permute.xlu1 %988 }
 0xa00   : > { %6853 = vmatprep.mubr.msk.f32.mxu0 %vm1260_vm0, %v8218_v41  ;;  %6868 = vmatprep.mubr.msk.f32.mxu1 %vm1260_vm0, %v8136_v5 }
 0xa03   : > { %6854 = vmatmul.mubr.msk.f32.gmra.mxu0 %vm1260_vm0, %v8210_v3  ;;  %6869 = vmatmul.mubr.msk.f32.gmra.mxu1 %vm1260_vm0, %v8133_v19  ;;  %v994_v5 = vpop.permute.xlu1 %993 }
 0xa04   : > { %6856 = vmatprep.mubr.msk.f32.mxu0 %vm1260_vm0, %v8202_v32  ;;  %v1187_v8 = vadd.f32 %v8881_v49, %v994_v5 }
 0xa07   : > { %6857 = vmatmul.mubr.msk.f32.gmra.mxu0 %vm1260_vm0, %v8194_v48  ;;  %v1004_v11 = vpop.permute.xlu1 %1003 }
 0xa08   : > { %6859 = vmatprep.mubr.msk.f32.mxu0 %vm1260_vm0, %v8186_v0  ;;  %v8880_v0 = vld [vmem:[#allocation30_spill] sm:$0xff]  ;;  %v1197_v52 = vadd.f32 %v8882_v14, %v1004_v11 }
 0xa09   : > { %v1182_v40 = vadd.f32 %v8880_v0, %v989_v9 }
 0xa0b   : > { %6860 = vmatmul.mubr.msk.f32.gmra.mxu0 %vm1260_vm0, %v8178_v39  ;;  %v1009_v42 = vpop.permute.xlu1 %1008 }
 0xa0c   : > { %v1202_v27 = vadd.f32 %v8885_v4, %v1009_v42  ;;  %v8888_v42 = vld [vmem:[#allocation38_spill] sm:$0xff] }
 0xa0f   : > { %v1014_v3 = vpop.permute.xlu1 %1013 }
 0xa10   : > { %v1207_v59 = vadd.f32 %v8884_v62, %v1014_v3 }
 0xa13   : > { %v1019_v41 = vpop.permute.xlu1 %1018 }
 0xa14   : > { %v1212_v60 = vadd.f32 %v8887_v55, %v1019_v41 }
 0xa17   : > { %v1024_v53 = vpop.permute.xlu1 %1023 }
 0xa18   : > { %v1217_v57 = vadd.f32 %v8886_v45, %v1024_v53  ;;  %v8892_v45 = vld [vmem:[#allocation42_spill] sm:$0xff] }
 0xa1b   : > { %v1029_v19 = vpop.permute.xlu1 %1028 }
 0xa1c   : > { %v1222_v3 = vadd.f32 %v8888_v42, %v1029_v19 }
 0xa1f   : > { %v8389_v35 = vpop.permute.xlu1 %1033 }
 0xa23   : > { %v8395_v36 = vpop.permute.xlu1 %1038 }
 0xa27   : > { %v8407_v30 = vpop.permute.xlu1 %1043 }
 0xa2b   : > { %v1049_v53 = vpop.permute.xlu1 %1048 }
 0xabb   : > { %v6849_v32 = vpop.f32.mrf.mxu0  ;;  %v8392_v39 = vpop.f32.mrf.mxu1 }
 0xabc   : > { %vm5186_vm7 = vcmp.ge.f32.partialorder %v6849_v32, 0.0  ;;  %v5202_v26 = vmul.f32 0.01, %v6849_v32  ;;  %vm5196_vm3 = vcmp.ge.f32.partialorder %v8392_v39, 0.0 }
 0xabd   : > { %v5106_v48 = vpop.f32.mrf.mxu0  ;;  %v8401_v63 = vpop.f32.mrf.mxu1 }
 0xabe   : > { %vm5185_vm8 = vcmp.ge.f32.partialorder %v5106_v48, 0.0  ;;  %v5201_v44 = vmul.f32 0.01, %v5106_v48  ;;  %v5218_v28 = vsel %vm5186_vm7, %v6849_v32, %v5202_v26  ;;  %vm5195_vm2 = vcmp.ge.f32.partialorder %v8401_v63, 0.0 }
 0xabf   : > { %v6852_v46 = vpop.f32.mrf.mxu0  ;;  %v8399_v13 = vadd.f32 %v5218_v28, %v1187_v8  ;;  %v8415_v61 = vpop.f32.mrf.mxu1 }
 0xac0   : > { %v5217_v20 = vsel %vm5185_vm8, %v5106_v48, %v5201_v44  ;;  %vm5188_vm9 = vcmp.ge.f32.partialorder %v6852_v46, 0.0  ;;  %v5204_v21 = vmul.f32 0.01, %v6852_v46  ;;  %v5211_v48 = vmul.f32 0.01, %v8401_v63 }
 0xac1   : > { %v8397_v56 = vadd.f32 %v5217_v20, %v1182_v40  ;;  %v5116_v22 = vpop.f32.mrf.mxu0  ;;  %v5250_v47 = vsel %vm1260_vm0, %v8399_v13, 0.0  ;;  %v5166_v33 = vpop.f32.mrf.mxu1  ;;  %vm5198_vm5 = vcmp.ge.f32.partialorder %v8415_v61, 0.0 }
 0xac2   : > { %vm5187_vm10 = vcmp.ge.f32.partialorder %v5116_v22, 0.0  ;;  %v5220_v58 = vsel %vm5188_vm9, %v6852_v46, %v5204_v21  ;;  %v5203_v38 = vmul.f32 0.01, %v5116_v22  ;;  %v5212_v21 = vmul.f32 0.01, %v8392_v39 }
 0xac3   : > { %v6855_v17 = vpop.f32.mrf.mxu0  ;;  %v5249_v54 = vsel %vm1260_vm0, %v8397_v56, 0.0  ;;  %v8411_v34 = vadd.f32 %v5220_v58, %v1197_v52  ;;  %v6870_v49 = vpop.f32.mrf.mxu1  ;;  %vm5197_vm4 = vcmp.ge.f32.partialorder %v5166_v33, 0.0 }
 0xac4   : > { %v5219_v2 = vsel %vm5187_vm10, %v5116_v22, %v5203_v38  ;;  %vm5190_vm11 = vcmp.ge.f32.partialorder %v6855_v17, 0.0  ;;  %v5206_v50 = vmul.f32 0.01, %v6855_v17  ;;  %v5251_v24 = vadd.f32 %v5250_v47, %v5249_v54  ;;  %v8889_v38 = vld [vmem:[#allocation37_spill] sm:$0xff]  ;;  %v1054_v54 = vpop.permute.xlu1 %1053 }
 0xac5   : > { %v5126_v18 = vpop.f32.mrf.mxu0  ;;  %v8413_v12 = vadd.f32 %v5219_v2, %v1192_v31  ;;  %v5254_v23 = vsel %vm1260_vm0, %v8411_v34, 0.0  ;;  %v1232_v31 = vadd.f32 %v8890_v15, %v8395_v36  ;;  %v5227_v2 = vsel %vm5195_vm2, %v8401_v63, %v5211_v48 }
 0xac6   : > { %vm5189_vm12 = vcmp.ge.f32.partialorder %v5126_v18, 0.0  ;;  %v5205_v1 = vmul.f32 0.01, %v5126_v18  ;;  %v5222_v43 = vsel %vm5190_vm11, %v6855_v17, %v5206_v50  ;;  %v1227_v17 = vadd.f32 %v8889_v38, %v8389_v35  ;;  %v5176_v50 = vpop.f32.mrf.mxu1 }
 0xac7   : > { %v6858_v16 = vpop.f32.mrf.mxu0  ;;  %v5252_v37 = vsel %vm1260_vm0, %v8413_v12, 0.0  ;;  %v8425_v25 = vadd.f32 %v5222_v43, %v1207_v59  ;;  %v8891_v43 = vld [vmem:[#allocation39_spill] sm:$0xff]  ;;  %v8461_v62 = vadd.f32 %v5227_v2, %v1232_v31  ;;  %v5215_v4 = vmul.f32 0.01, %v5176_v50 }
 0xac8   : > { %v5253_v29 = vadd.f32 %v5252_v37, %v5251_v24  ;;  %v5221_v10 = vsel %vm5189_vm12, %v5126_v18, %v5205_v1  ;;  %vm5192_vm13 = vcmp.ge.f32.partialorder %v6858_v16, 0.0  ;;  %v5208_v6 = vmul.f32 0.01, %v6858_v16 }
 0xac9   : > { %v5136_v51 = vpop.f32.mrf.mxu0  ;;  %v8427_v9 = vadd.f32 %v5221_v10, %v1202_v27  ;;  %v5258_v19 = vsel %vm1260_vm0, %v8425_v25, 0.0  ;;  %v5213_v18 = vmul.f32 0.01, %v5166_v33  ;;  %v5214_v37 = vmul.f32 0.01, %v8415_v61 }
 0xaca   : > { %v5255_v5 = vadd.f32 %v5254_v23, %v5253_v29  ;;  %v5224_v32 = vsel %vm5192_vm13, %v6858_v16, %v5208_v6  ;;  %vm5191_vm14 = vcmp.ge.f32.partialorder %v5136_v51, 0.0  ;;  %v5207_v26 = vmul.f32 0.01, %v5136_v51  ;;  %v8893_v6 = vld [vmem:[#allocation41_spill] sm:$0xff] }
 0xacb   : > { %v6861_v11 = vpop.f32.mrf.mxu0  ;;  %v5256_v44 = vsel %vm1260_vm0, %v8427_v9, 0.0  ;;  %v8436_v8 = vadd.f32 %v5224_v32, %v1217_v57  ;;  %v5228_v16 = vsel %vm5196_vm3, %v8392_v39, %v5212_v21  ;;  %v1237_v63 = vadd.f32 %v8891_v43, %v8407_v30 }
 0xacc   : > { %vm5194_vm15 = vcmp.ge.f32.partialorder %v6861_v11, 0.0  ;;  %v5210_v41 = vmul.f32 0.01, %v6861_v11  ;;  %v5257_v40 = vadd.f32 %v5256_v44, %v5255_v5  ;;  %v5223_v28 = vsel %vm5191_vm14, %v5136_v51, %v5207_v26  ;;  %v1059_v51 = vpop.permute.xlu1 %1058  ;;  %v1064_v5 = vpop.permute.xlu0 %1063  ;;  %v8895_v44 = vld [vmem:[#allocation43_spill] sm:$0xff] }
 0xacd   : > { %v5146_v0 = vpop.f32.mrf.mxu0  ;;  %v8438_v20 = vadd.f32 %v5223_v28, %v1212_v60  ;;  %v5262_v35 = vsel %vm1260_vm0, %v8436_v8, 0.0  ;;  %v5229_v59 = vsel %vm5197_vm4, %v5166_v33, %v5213_v18  ;;  %v1242_v57 = vadd.f32 %v8892_v45, %v1049_v53 }
 0xace   : > { %vm5193_vm1 = vcmp.ge.f32.partialorder %v5146_v0, 0.0  ;;  %v5209_v46 = vmul.f32 0.01, %v5146_v0  ;;  %v5259_v7 = vadd.f32 %v5258_v19, %v5257_v40  ;;  %v5226_v22 = vsel %vm5194_vm15, %v6861_v11, %v5210_v41 }
 0xacf   : > { %v5260_v14 = vsel %vm1260_vm0, %v8438_v20, 0.0  ;;  %v8453_v24 = vadd.f32 %v5226_v22, %v1227_v17  ;;  %v8465_v29 = vadd.f32 %v5228_v16, %v1237_v63  ;;  %vm5199_vm6 = vcmp.ge.f32.partialorder %v5176_v50, 0.0 }
 0xad0   : > { %v5225_v58 = vsel %vm5193_vm1, %v5146_v0, %v5209_v46  ;;  %v5261_v47 = vadd.f32 %v5260_v14, %v5259_v7  ;;  %v5230_v23 = vsel %vm5198_vm5, %v8415_v61, %v5214_v37  ;;  %v5216_v10 = vmul.f32 0.01, %v6870_v49 }
 0xad1   : > { %v8446_v52 = vadd.f32 %v5225_v58, %v1222_v3  ;;  %v5266_v39 = vsel %vm1260_vm0, %v8453_v24, 0.0  ;;  %v1247_v55 = vadd.f32 %v8893_v6, %v1054_v54  ;;  %v5268_v60 = vsel %vm1260_vm0, %v8461_v62, 0.0  ;;  %v8894_v3 = vld [vmem:[#allocation44_spill] sm:$0xff] }
 0xad2   : > { %v5263_v36 = vadd.f32 %v5262_v35, %v5261_v47  ;;  %v8473_v33 = vadd.f32 %v5229_v59, %v1242_v57  ;;  %vm5200_vm7 = vcmp.ge.f32.partialorder %v6870_v49, 0.0  ;;  %v5231_v11 = vsel %vm5199_vm6, %v5176_v50, %v5215_v4 }
 0xad3   : > { %v5264_v1 = vsel %vm1260_vm0, %v8446_v52, 0.0  ;;  %v1252_v53 = vadd.f32 %v8894_v3, %v1059_v51  ;;  %v5270_v32 = vsel %vm1260_vm0, %v8465_v29, 0.0  ;;  %v8478_v26 = vadd.f32 %v5230_v23, %v1247_v55 }
 0xad4   : > { %v5265_v27 = vadd.f32 %v5264_v1, %v5263_v36  ;;  %v5232_v61 = vsel %vm5200_vm7, %v6870_v49, %v5216_v10  ;;  %v1257_v41 = vadd.f32 %v8895_v44, %v1064_v5  ;;  %v5272_v0 = vsel %vm1260_vm0, %v8473_v33, 0.0 }
 0xad5   : > { %v8483_v40 = vadd.f32 %v5231_v11, %v1252_v53  ;;  %v5274_v19 = vsel %vm1260_vm0, %v8478_v26, 0.0 }
 0xad6   : > { %v5267_v30 = vadd.f32 %v5266_v39, %v5265_v27  ;;  %v8485_v46 = vadd.f32 %v5232_v61, %v1257_v41 }
 0xad7   : > { %v5276_v7 = vsel %vm1260_vm0, %v8483_v40, 0.0 }
 0xad8   : > { %v5269_v42 = vadd.f32 %v5268_v60, %v5267_v30  ;;  %v5278_v49 = vsel %vm1260_vm0, %v8485_v46, 0.0 }
 0xada   : > { %v5271_v48 = vadd.f32 %v5270_v32, %v5269_v42 }
 0xadc   : > { %v5273_v28 = vadd.f32 %v5272_v0, %v5271_v48 }
 0xade   : > { %v5275_v21 = vadd.f32 %v5274_v19, %v5273_v28 }
 0xae0   : > { %v5277_v22 = vadd.f32 %v5276_v7, %v5275_v21 }
 0xae2   : > { %v5279_v58 = vadd.f32 %v5278_v49, %v5277_v22 }
 0xae4   : > { %5280 = vadd.xlane.f32.xlu1 %v5279_v58 }
 0xb6d   : > { %v5281_v38 = vpop.xlane.xlu1 %5280 }
 0xb6e   : > { %v5282_v17 = vrot.slane %v5281_v38, 4 }
 0xb70   : > { %v5283_v14 = vadd.f32 %v5282_v17, %v5281_v38 }
 0xb72   : > { %v5284_v15 = vrot.slane %v5283_v14, 2 }
 0xb74   : > { %v5285_v31 = vadd.f32 %v5284_v15, %v5283_v14 }
 0xb76   : > { %v5286_v54 = vrot.slane %v5285_v31, 1 }
 0xb78   : > { %v5287_v2 = vadd.f32 %v5286_v54, %v5285_v31 }
 0xb7a   : > { %6878 = vpush %v5287_v2 }
 0xbab   : > { %s6879_s3 = spop %6878 }
 0xbac   : > { %v5289_v18 = vstv %s6879_s3  ;;  %s6882_s3 = smul.u32 384, %s7366_s0 }
 0xbad   : > { %v5291_v47 = vmul.f32 0.00032552084, %v5289_v18 }
 0xbae   : > { %s8591_s5 = scalar_lea.hbm %s7343_s12, %s6882_s3 }
 0xbaf   : > { %v8494_v50 = vsub.f32 %v8397_v56, %v5291_v47  ;;  %v8497_v35 = vsub.f32 %v8399_v13, %v5291_v47  ;;  %v8500_v1 = vsub.f32 %v8413_v12, %v5291_v47  ;;  %v8503_v16 = vsub.f32 %v8411_v34, %v5291_v47 }
 0xbb0   : > { %v8510_v43 = vsub.f32 %v8427_v9, %v5291_v47  ;;  %v8515_v13 = vsub.f32 %v8425_v25, %v5291_v47  ;;  %v8522_v4 = vsub.f32 %v8438_v20, %v5291_v47  ;;  %v8528_v25 = vsub.f32 %v8436_v8, %v5291_v47 }
 0xbb1   : > { %v5308_v37 = vmul.f32 %v8494_v50, %v8494_v50  ;;  %v5309_v36 = vmul.f32 %v8497_v35, %v8497_v35  ;;  %v5310_v56 = vmul.f32 %v8500_v1, %v8500_v1  ;;  %v5311_v12 = vmul.f32 %v8503_v16, %v8503_v16 }
 0xbb2   : > { %v5312_v9 = vmul.f32 %v8510_v43, %v8510_v43  ;;  %v5313_v57 = vmul.f32 %v8515_v13, %v8515_v13  ;;  %v8534_v23 = vsub.f32 %v8446_v52, %v5291_v47  ;;  %v5314_v20 = vmul.f32 %v8522_v4, %v8522_v4 }
 0xbb3   : > { %v5324_v34 = vsel %vm1260_vm0, %v5308_v37, 0.0  ;;  %v5325_v63 = vsel %vm1260_vm0, %v5309_v36, 0.0  ;;  %v5327_v27 = vsel %vm1260_vm0, %v5310_v56, 0.0  ;;  %v5329_v39 = vsel %vm1260_vm0, %v5311_v12, 0.0 }
 0xbb4   : > { %v5326_v59 = vadd.f32 %v5325_v63, %v5324_v34  ;;  %v5331_v10 = vsel %vm1260_vm0, %v5312_v9, 0.0  ;;  %v8540_v6 = vsub.f32 %v8453_v24, %v5291_v47  ;;  %v5315_v8 = vmul.f32 %v8528_v25, %v8528_v25 }
 0xbb5   : > { %v5333_v55 = vsel %vm1260_vm0, %v5313_v57, 0.0  ;;  %v8546_v5 = vsub.f32 %v8461_v62, %v5291_v47  ;;  %v5316_v52 = vmul.f32 %v8534_v23, %v8534_v23  ;;  %v5335_v11 = vsel %vm1260_vm0, %v5314_v20, 0.0 }
 0xbb6   : > { %v5328_v45 = vadd.f32 %v5327_v27, %v5326_v59  ;;  %v8552_v3 = vsub.f32 %v8465_v29, %v5291_v47  ;;  %v5317_v24 = vmul.f32 %v8540_v6, %v8540_v6  ;;  %v5337_v53 = vsel %vm1260_vm0, %v5315_v8, 0.0 }
 0xbb7   : > { %v8558_v61 = vsub.f32 %v8473_v33, %v5291_v47  ;;  %v5318_v62 = vmul.f32 %v8546_v5, %v8546_v5  ;;  %v5339_v48 = vsel %vm1260_vm0, %v5316_v52, 0.0  ;;  %v8564_v41 = vsub.f32 %v8478_v26, %v5291_v47 }
 0xbb8   : > { %v5330_v51 = vadd.f32 %v5329_v39, %v5328_v45  ;;  %v5319_v29 = vmul.f32 %v8552_v3, %v8552_v3  ;;  %v5341_v0 = vsel %vm1260_vm0, %v5317_v24, 0.0  ;;  %v8570_v19 = vsub.f32 %v8483_v40, %v5291_v47 }
 0xbb9   : > { %v5320_v33 = vmul.f32 %v8558_v61, %v8558_v61  ;;  %v5343_v21 = vsel %vm1260_vm0, %v5318_v62, 0.0  ;;  %v8576_v22 = vsub.f32 %v8485_v46, %v5291_v47  ;;  %v5321_v26 = vmul.f32 %v8564_v41, %v8564_v41 }
 0xbba   : > { %v5332_v30 = vadd.f32 %v5331_v10, %v5330_v51  ;;  %v5345_v49 = vsel %vm1260_vm0, %v5319_v29, 0.0  ;;  %v5322_v40 = vmul.f32 %v8570_v19, %v8570_v19 }
 0xbbb   : > { %v5347_v38 = vsel %vm1260_vm0, %v5320_v33, 0.0  ;;  %v5323_v46 = vmul.f32 %v8576_v22, %v8576_v22  ;;  %v5349_v14 = vsel %vm1260_vm0, %v5321_v26, 0.0 }
 0xbbc   : > { %v5334_v60 = vadd.f32 %v5333_v55, %v5332_v30  ;;  %v5351_v31 = vsel %vm1260_vm0, %v5322_v40, 0.0 }
 0xbbd   : > { %v5353_v2 = vsel %vm1260_vm0, %v5323_v46, 0.0 }
 0xbbe   : > { %v5336_v42 = vadd.f32 %v5335_v11, %v5334_v60 }
 0xbc0   : > { %v5338_v32 = vadd.f32 %v5337_v53, %v5336_v42 }
 0xbc2   : > { %v5340_v44 = vadd.f32 %v5339_v48, %v5338_v32 }
 0xbc4   : > { %v5342_v28 = vadd.f32 %v5341_v0, %v5340_v44 }
 0xbc6   : > { %v5344_v7 = vadd.f32 %v5343_v21, %v5342_v28 }
 0xbc8   : > { %v5346_v58 = vadd.f32 %v5345_v49, %v5344_v7 }
 0xbca   : > { %v5348_v17 = vadd.f32 %v5347_v38, %v5346_v58 }
 0xbcc   : > { %v5350_v15 = vadd.f32 %v5349_v14, %v5348_v17 }
 0xbce   : > { %v5352_v54 = vadd.f32 %v5351_v31, %v5350_v15 }
 0xbd0   : > { %v5354_v18 = vadd.f32 %v5353_v2, %v5352_v54 }
 0xbd2   : > { %5355 = vadd.xlane.f32.xlu0 %v5354_v18 }
 0xbd3   : > { %7069 = shalt.err (!%p7066_p3)
}
 0xbd4   : > { %s7070_s4 = scalar_lea.hbm %s8591_s5, 384  ;;  %s7074_s3 = scalar_lea.hbm %s7343_s12, 768 }
 0xbd5   : > { %p7071_p4 = scmp.ne.s32.totalorder %s8591_s5, %s7070_s4  ;;  %p7075_p9 = scmp.lt.s32.totalorder %s8591_s5, %s7343_s12 }
 0xbd6   : > { %p7076_p10 = scmp.lt.s32.totalorder %s7074_s3, %s7070_s4 }
 0xbd7   : > { %p7072_p7 = pnand %p7071_p4, %p7383_p5 }
 0xbd8   : > { %p7077_p11 = por %p7076_p10, %p7075_p9 }
 0xbd9   : > { %p7073_p8 = pneg %p7072_p7 }
 0xbdb   : > { %p7078_p12 = pnand %p7077_p11, %p7073_p8 }
 0xbdd   : > { %7081 = shalt.err (!%p7078_p12)
}
 0xbde   : > { %s7182_s13 = smov 128   ;;  %s7183_s17 = smov 8   ;;  %v5384_v57 = vld [vmem:[%s7328_s6] sm:$0xff]  ;;  %v5385_v39 = vld [vmem:[%s7328_s6 + $0x8] sm:$0xff]  ;;  %v5386_v51 = vld [vmem:[%s7328_s6 + $0x10] sm:$0xff] }
 0xbdf   : > { %6884 = dma.vmem_to_hbm [thread:$0]  (%p7383_p5), %s8594_s8, 384, %s8591_s5, %s5470_s9, %s7182_s13, %s7182_s13, %s7183_s17  }
 0xbe0   : > { %v5387_v20 = vld [vmem:[%s7328_s6 + $0x18] sm:$0xff]  ;;  %v5388_v60 = vld [vmem:[%s7328_s6 + $0x20] sm:$0xff]  ;;  %v5389_v52 = vld [vmem:[%s7328_s6 + $0x28] sm:$0xff]  ;;  %s5627_s5 = sshll.u32 %s8350_s1, 7  ;;  %s5784_s9 = sshll.u32 %s7366_s0, 11 }
 0xbe1   : > { %v5390_v11 = vld [vmem:[%s7328_s6 + $0x30] sm:$0xff]  ;;  %v5391_v42 = vld [vmem:[%s7328_s6 + $0x38] sm:$0xff]  ;;  %v5416_v33 = vld [vmem:[%s7333_s20] sm:$0xff]  ;;  %s8670_s8 = scalar_lea.vmem [#allocation2], %s5627_s5  ;;  %s8690_s0 = scalar_lea.hbm %s7338_s14, %s5784_s9 }
 0xbe2   : > { %v5417_v49 = vld [vmem:[%s7333_s20 + $0x8] sm:$0xff]  ;;  %v5420_v38 = vld [vmem:[%s7333_s20 + $0x20] sm:$0xff]  ;;  %v5422_v46 = vld [vmem:[%s7333_s20 + $0x30] sm:$0xff]  ;;  %s5483_s11 = sshll.u32 %s8670_s8, 4  ;;  %s5465_s4 = scalar_lea.sflag [#allocation3], %s8350_s1  ;;  %s8692_s11 = int_to_ptr.vmem [resolvable:$true] %s5483_s11 }
 0xbe3   : > { %v5421_v17 = vld [vmem:[%s7333_s20 + $0x28] sm:$0xff]  ;;  %v5423_v2 = vld [vmem:[%s7333_s20 + $0x38] sm:$0xff]  ;;  %v5424_v18 = vld [vmem:[%s7333_s20 + $0x40] sm:$0xff]  ;;  %s7082_s3 = scalar_lea.vmem %s8692_s11, 2048 }
 0xbe4   : > { %p7083_p13 = scmp.ne.s32.totalorder %s8692_s11, %s7082_s3 }
 0xbe6   : > { %p7084_p0 = pnand %p7083_p13, %p7383_p5 }
 0xbe8   : > { %p7085_p1 = pneg %p7084_p0 }
 0xc5b   : > { %v5356_v47 = vpop.xlane.xlu0 %5355 }
 0xc5c   : > { %v5357_v37 = vrot.slane %v5356_v47, 4 }
 0xc5e   : > { %v5358_v36 = vadd.f32 %v5357_v37, %v5356_v47  ;;  %v5425_v47 = vld [vmem:[%s7333_s20 + $0x48] sm:$0xff] }
 0xc60   : > { %v5359_v56 = vrot.slane %v5358_v36, 2 }
 0xc62   : > { %v5360_v12 = vadd.f32 %v5359_v56, %v5358_v36 }
 0xc64   : > { %v5361_v34 = vrot.slane %v5360_v12, 1 }
 0xc66   : > { %v5362_v63 = vadd.f32 %v5361_v34, %v5360_v12  ;;  %v5426_v34 = vld [vmem:[%s7333_s20 + $0x50] sm:$0xff] }
 0xc68   : > { %6880 = vpush %v5362_v63  ;;  %v5427_v63 = vld [vmem:[%s7333_s20 + $0x58] sm:$0xff] }
 0xc99   : > { %s6881_s19 = spop %6880 }
 0xc9a   : > { %v5364_v59 = vstv %s6881_s19  ;;  %s7184_s19 = smov [#allocation2]  }
 0xc9b   : > { %v5365_v9 = vmul.f32 0.00032552084, %v5364_v59  ;;  %v5428_v59 = vld [vmem:[%s7333_s20 + $0x60] sm:$0xff]  ;;  %s7086_s5 = sshll.u32 %s7184_s19, 4  ;;  %s7087_s5 = int_to_ptr.vmem [resolvable:$false] %s7086_s5 }
 0xc9c   : > { %s7088_s9 = scalar_lea.vmem %s7087_s5, 4096  ;;  %p7089_p2 = scmp.lt.s32.totalorder %s8692_s11, %s7087_s5 }
 0xc9d   : > { %v5366_v27 = vadd.f32 1e-05, %v5365_v9  ;;  %v5429_v9 = vld [vmem:[%s7333_s20 + $0x68] sm:$0xff]  ;;  %p7090_p3 = scmp.lt.s32.totalorder %s7088_s9, %s7082_s3 }
 0xc9f   : > { %7048 = vrsqrt.f32 %v5366_v27  ;;  %v5430_v27 = vld [vmem:[%s7333_s20 + $0x70] sm:$0xff]  ;;  %p7091_p4 = por %p7090_p3, %p7089_p2 }
 0xca1   : > { %p7092_p7 = pnand %p7091_p4, %p7085_p1 }
 0xcac   : > { %v7049_v45 = vpop.eup %7048 }
 0xcad   : > { %v5368_v10 = vmul.f32 %v7049_v45, %v8494_v50  ;;  %v5369_v30 = vmul.f32 %v7049_v45, %v8497_v35  ;;  %v5370_v8 = vmul.f32 %v7049_v45, %v8500_v1  ;;  %v5371_v55 = vmul.f32 %v7049_v45, %v8503_v16  ;;  %v5392_v35 = vld [vmem:[%s7328_s6 + $0x40] sm:$0xff]  ;;  %v5393_v1 = vld [vmem:[%s7328_s6 + $0x48] sm:$0xff]  ;;  %v5394_v16 = vld [vmem:[%s7328_s6 + $0x50] sm:$0xff] }
 0xcae   : > { %v5372_v24 = vmul.f32 %v7049_v45, %v8510_v43  ;;  %v5373_v53 = vmul.f32 %v7049_v45, %v8515_v13  ;;  %v5374_v32 = vmul.f32 %v7049_v45, %v8522_v4  ;;  %v5375_v50 = vmul.f32 %v7049_v45, %v8528_v25  ;;  %v5395_v13 = vld [vmem:[%s7328_s6 + $0x58] sm:$0xff]  ;;  %v5396_v4 = vld [vmem:[%s7328_s6 + $0x60] sm:$0xff]  ;;  %v5397_v25 = vld [vmem:[%s7328_s6 + $0x68] sm:$0xff] }
 0xcaf   : > { %v5376_v62 = vmul.f32 %v7049_v45, %v8534_v23  ;;  %v5377_v48 = vmul.f32 %v7049_v45, %v8540_v6  ;;  %v5378_v44 = vmul.f32 %v7049_v45, %v8546_v5  ;;  %v5379_v43 = vmul.f32 %v7049_v45, %v8552_v3  ;;  %v5398_v6 = vld [vmem:[%s7328_s6 + $0x70] sm:$0xff]  ;;  %v5399_v5 = vld [vmem:[%s7328_s6 + $0x78] sm:$0xff] }
 0xcb0   : > { %v5380_v29 = vmul.f32 %v7049_v45, %v8558_v61  ;;  %v5381_v0 = vmul.f32 %v7049_v45, %v8564_v41  ;;  %v5382_v28 = vmul.f32 %v7049_v45, %v8570_v19  ;;  %v5383_v23 = vmul.f32 %v7049_v45, %v8576_v22  ;;  %v5418_v61 = vld [vmem:[%s7333_s20 + $0x10] sm:$0xff]  ;;  %v5419_v41 = vld [vmem:[%s7333_s20 + $0x18] sm:$0xff] }
 0xcb1   : > { %v5400_v3 = vmul.f32 %v5384_v57, %v5368_v10  ;;  %v5401_v21 = vmul.f32 %v5385_v39, %v5369_v30  ;;  %v5402_v7 = vmul.f32 %v5386_v51, %v5370_v8  ;;  %v5403_v26 = vmul.f32 %v5387_v20, %v5371_v55  ;;  %v5431_v45 = vld [vmem:[%s7333_s20 + $0x78] sm:$0xff] }
 0xcb2   : > { %v5404_v58 = vmul.f32 %v5388_v60, %v5372_v24  ;;  %v5405_v19 = vmul.f32 %v5389_v52, %v5373_v53  ;;  %v5406_v40 = vmul.f32 %v5390_v11, %v5374_v32  ;;  %v5407_v22 = vmul.f32 %v5391_v42, %v5375_v50 }
 0xcb3   : > { %v5408_v14 = vmul.f32 %v5392_v35, %v5376_v62  ;;  %v5409_v15 = vmul.f32 %v5393_v1, %v5377_v48  ;;  %v5410_v31 = vmul.f32 %v5394_v16, %v5378_v44  ;;  %v5411_v54 = vmul.f32 %v5395_v13, %v5379_v43 }
 0xcb4   : > { %v5412_v37 = vmul.f32 %v5396_v4, %v5380_v29  ;;  %v5413_v36 = vmul.f32 %v5397_v25, %v5381_v0  ;;  %v5414_v56 = vmul.f32 %v5398_v6, %v5382_v28  ;;  %v5415_v12 = vmul.f32 %v5399_v5, %v5383_v23 }
 0xcb5   : > { %v5432_v57 = vadd.f32 %v5416_v33, %v5400_v3  ;;  %v5433_v39 = vadd.f32 %v5417_v49, %v5401_v21  ;;  %v5434_v51 = vadd.f32 %v5418_v61, %v5402_v7  ;;  %v5435_v20 = vadd.f32 %v5419_v41, %v5403_v26 }
 0xcb6   : > { %v5436_v10 = vadd.f32 %v5420_v38, %v5404_v58  ;;  %v5437_v30 = vadd.f32 %v5421_v17, %v5405_v19  ;;  %v5438_v8 = vadd.f32 %v5422_v46, %v5406_v40  ;;  %v5439_v55 = vadd.f32 %v5423_v2, %v5407_v22 }
 0xcb7   : > { %v5440_v60 = vadd.f32 %v5424_v18, %v5408_v14  ;;  %v5441_v52 = vadd.f32 %v5425_v47, %v5409_v15  ;;  %v5442_v11 = vadd.f32 %v5426_v34, %v5410_v31  ;;  %v5443_v42 = vadd.f32 %v5427_v63, %v5411_v54  ;;  %5448 = vst.msk [vmem:[%s8670_s8] sm:$0xff] %vm1260_vm0, %v5432_v57 }
 0xcb8   : > { %5449 = vst.msk [vmem:[%s8670_s8 + $0x8] sm:$0xff] %vm1260_vm0, %v5433_v39  ;;  %5450 = vst.msk [vmem:[%s8670_s8 + $0x10] sm:$0xff] %vm1260_vm0, %v5434_v51  ;;  %v5444_v24 = vadd.f32 %v5428_v59, %v5412_v37  ;;  %v5445_v53 = vadd.f32 %v5429_v9, %v5413_v36  ;;  %v5446_v32 = vadd.f32 %v5430_v27, %v5414_v56 }
 0xcb9   : > { %5451 = vst.msk [vmem:[%s8670_s8 + $0x18] sm:$0xff] %vm1260_vm0, %v5435_v20  ;;  %v5447_v50 = vadd.f32 %v5431_v45, %v5415_v12  ;;  %5452 = vst.msk [vmem:[%s8670_s8 + $0x20] sm:$0xff] %vm1260_vm0, %v5436_v10 }
 0xcba   : > { %5453 = vst.msk [vmem:[%s8670_s8 + $0x28] sm:$0xff] %vm1260_vm0, %v5437_v30  ;;  %5454 = vst.msk [vmem:[%s8670_s8 + $0x30] sm:$0xff] %vm1260_vm0, %v5438_v8 }
 0xcbb   : > { %5455 = vst.msk [vmem:[%s8670_s8 + $0x38] sm:$0xff] %vm1260_vm0, %v5439_v55  ;;  %5456 = vst.msk [vmem:[%s8670_s8 + $0x40] sm:$0xff] %vm1260_vm0, %v5440_v60 }
 0xcbc   : > { %5457 = vst.msk [vmem:[%s8670_s8 + $0x48] sm:$0xff] %vm1260_vm0, %v5441_v52  ;;  %5458 = vst.msk [vmem:[%s8670_s8 + $0x50] sm:$0xff] %vm1260_vm0, %v5442_v11 }
 0xcbd   : > { %5459 = vst.msk [vmem:[%s8670_s8 + $0x58] sm:$0xff] %vm1260_vm0, %v5443_v42  ;;  %5460 = vst.msk [vmem:[%s8670_s8 + $0x60] sm:$0xff] %vm1260_vm0, %v5444_v24 }
 0xcbe   : > { %5461 = vst.msk [vmem:[%s8670_s8 + $0x68] sm:$0xff] %vm1260_vm0, %v5445_v53  ;;  %5462 = vst.msk [vmem:[%s8670_s8 + $0x70] sm:$0xff] %vm1260_vm0, %v5446_v32 }
 0xcbf   : > { %5463 = vst.msk [vmem:[%s8670_s8 + $0x78] sm:$0xff] %vm1260_vm0, %v5447_v50 }
 0xcc0   : > { %7095 = shalt.err (!%p7092_p7)
}
 0xcc1   : > { %s7096_s1 = scalar_lea.hbm %s8690_s0, 2048  ;;  %s7100_s8 = scalar_lea.hbm %s7338_s14, 4096 }
 0xcc2   : > { %p7097_p8 = scmp.ne.s32.totalorder %s8690_s0, %s7096_s1  ;;  %p7101_p11 = scmp.lt.s32.totalorder %s8690_s0, %s7338_s14 }
 0xcc3   : > { %p7102_p12 = scmp.lt.s32.totalorder %s7100_s8, %s7096_s1 }
 0xcc4   : > { %p7098_p9 = pnand %p7097_p8, %p7383_p5 }
 0xcc5   : > { %p7103_p13 = por %p7102_p12, %p7101_p11 }
 0xcc6   : > { %p7099_p10 = pneg %p7098_p9 }
 0xcc8   : > { %p7104_p0 = pnand %p7103_p13, %p7099_p10 }
 0xcca   : > { %7107 = shalt.err (!%p7104_p0)
}
 0xccb   : > { %6883 = dma.vmem_to_hbm [thread:$0]  (%p7383_p5), %s8692_s11, 2048, %s8690_s0, %s5465_s4, %s7182_s13, %s7182_s13, %s7183_s17  }
 0xccc PF: > { %p6894_p1 = scmp.ge.s32.totalorder %s7146_s22, 2  ;;  %s5514_s3 = sand.u32 1, %s7134_s15  }
 0xccd   : > { %s5515_s19 = scalar_lea.sflag [#allocation3], %s5514_s3 }
 0xcce   : > { %p6888_p2 = pnand %p6894_p1, %p7387_p6 }
 0xcd0   : > { %p6889_p3 = pneg %p6888_p2 }
 0xcd2   : > { %7125 = dma.done.wait (%p6889_p3), %s5515_s19, 2048  }
 0xcd3   : > { %7127 = vsyncadd (%p6889_p3), %s5515_s19, 4294965248  ;;  %s5524_s5 = scalar_lea.sflag [#allocation5], %s5514_s3 }
 0xcd4   : > { %7129 = dma.done.wait (%p6889_p3), %s5524_s5, 384  }
 0xcd5   : > { %7131 = vsyncadd (%p6889_p3), %s5524_s5, 4294966912  ;;  %p75_p5 = scmp.ge.s32.totalorder %s7370_s26, 4   ;;  %s8896_s15 = smov %s7138_s16 }
 0xcd6   : > { %s8897_s16 = smov %s7142_s18  ;;  %s8898_s18 = smov %s7381_s2 }
 0xcd7   : > { %s8899_s22 = smov %s7370_s26  ;;  %77 = sbr.rel (!%p75_p5) target bundleno = 64 (0x40), region = 218 }
 0xcdc   :  { %5529 = vsyncpa [#allocation3], 1 }
 0xcdd   :  { %5531 = vsyncpa [#allocation3 + $0x1], 1 }
 0xcde   :  { %5532 = vsyncpa [#allocation5], 1 }
 0xcdf   :  { %5534 = vsyncpa [#allocation5 + $0x1], 1 }

</bundles_post_ra>
